<compile_context>
chip_gen: v7x
topology: tpu7x:2x2x1
jax: 0.10.0
libtpu: 0.0.40
codegen_flags: <defaults>
</compile_context>

<pallas_src>
import functools

import jax
import jax.numpy as jnp
from jax.experimental import pallas as pl
from jax.experimental.pallas import tpu as pltpu


# ---------------------------------------------------------------------------
# Fused stage kernel:
#   per-channel affine (identity | folded BN) + ReLU
#   -> zero-pad into VMEM scratch
#   -> depthwise k x k conv (strided pl.ds taps)
#   -> 1x1 conv (VPU MAC for tiny C, MXU for wide C)
#   -> store y + per-image BN partial stats (sum, sum of squares)
# ---------------------------------------------------------------------------
def _sep_stage_kernel(x_ref, wdw_ref, wpw_ref, scale_ref, shift_ref,
                      y_ref, stats_ref, xpad_ref, *, stride, pad):
    _, h, w, c_in = x_ref.shape
    _, ho, wo, c_out = y_ref.shape
    k = wdw_ref.shape[0]

    # Prologue: x * scale + shift, ReLU, written into a zeroed padded scratch.
    # Padding after the affine+ReLU matches PyTorch: conv padding is applied to
    # the post-activation tensor and those pad values are exact zeros.
    xpad_ref[...] = jnp.zeros_like(xpad_ref)
    xv = jnp.maximum(x_ref[0] * scale_ref[...] + shift_ref[...], 0.0)
    xpad_ref[pl.ds(pad, h), pl.ds(pad, w), :] = xv

    # Depthwise k x k multiply-accumulate; every tap is a (strided) slice read
    # directly from the padded scratch ref (no full-tile load + k*k reslices).
    w_dw = wdw_ref[...]                                   # (k, k, C_in)
    acc = jnp.zeros((ho, wo, c_in), jnp.float32)
    for kh in range(k):
        for kw in range(k):
            if stride == 1:
                tap = xpad_ref[pl.ds(kh, ho), pl.ds(kw, wo), :]
            else:
                tap = xpad_ref[pl.ds(kh, ho, stride), pl.ds(kw, wo, stride), :]
            acc = acc + tap * w_dw[kh, kw]

    # 1x1 conv across channels.
    w_pw = wpw_ref[...]                                   # (C_in, C_out)
    if c_in >= 32:
        # Wide channels: MXU matmul.
        y = jnp.dot(acc.reshape(ho * wo, c_in), w_pw,
                    preferred_element_type=jnp.float32).reshape(ho, wo, c_out)
    else:
        # Tiny channels: unrolled VPU multiply-accumulate.
        y = jnp.zeros((ho, wo, c_out), jnp.float32)
        for ci in range(c_in):
            y = y + acc[:, :, ci:ci + 1] * w_pw[ci]

    y_ref[0] = y.astype(y_ref.dtype)

    # Single-pass BatchNorm partial statistics for this image (fp32
    # accumulators); reduced across the batch in the wrapper.
    y2d = y.reshape(ho * wo, c_out)
    stats_ref[0, 0:1, :] = jnp.sum(y2d, axis=0, keepdims=True)
    stats_ref[0, 1:2, :] = jnp.sum(y2d * y2d, axis=0, keepdims=True)


def _fused_stage(x_nhwc, w_dw, w_pw, scale, shift, *, stride, padding):
    """One fused [affine+ReLU -> depthwise conv -> 1x1 conv (+BN stats)] stage.

    x_nhwc: (N, H, W, C_in); w_dw: (k, k, C_in); w_pw: (C_in, C_out);
    scale/shift: (1, C_in) per-channel prologue affine (identity for stage 1,
    folded bn1 for stage 2).
    Returns y: (N, Ho, Wo, C_out) and stats: (N, 2, C_out) = per-image [sum, sumsq].
    """
    n, h, w, c_in = x_nhwc.shape
    k = w_dw.shape[0]
    c_out = w_pw.shape[1]
    hp, wp = h + 2 * padding, w + 2 * padding
    ho = (hp - k) // stride + 1
    wo = (wp - k) // stride + 1

    # Explicit scoped-VMEM budget: double-buffered in/out blocks + padded
    # scratch + headroom (v7x has only 64 MiB VMEM / 32 MiB scoped default).
    itemsize = x_nhwc.dtype.itemsize
    block_bytes = (h * w * c_in * itemsize            # x block
                   + k * k * c_in * 4                 # depthwise weights
                   + c_in * c_out * 4                 # pointwise weights
                   + 2 * c_in * 4                     # scale/shift
                   + ho * wo * c_out * itemsize       # y block
                   + 2 * c_out * 4)                   # stats block
    vmem_limit = int(min(max(2 * block_bytes + hp * wp * c_in * 4 + (2 << 20),
                             4 << 20), 32 << 20))

    kernel = functools.partial(_sep_stage_kernel, stride=stride, pad=padding)

    # TODO(synk): for large spatial inputs, additionally tile the H axis with
    # halo blocks so a single image does not need to fit in VMEM.
    y, stats = pl.pallas_call(
        kernel,
        out_shape=(jax.ShapeDtypeStruct((n, ho, wo, c_out), x_nhwc.dtype),
                   jax.ShapeDtypeStruct((n, 2, c_out), jnp.float32)),
        grid=(n,),
        in_specs=[
            pl.BlockSpec((1, h, w, c_in), lambda i: (i, 0, 0, 0)),
            pl.BlockSpec((k, k, c_in), lambda i: (0, 0, 0)),
            pl.BlockSpec((c_in, c_out), lambda i: (0, 0)),
            pl.BlockSpec((1, c_in), lambda i: (0, 0)),
            pl.BlockSpec((1, c_in), lambda i: (0, 0)),
        ],
        out_specs=(
            pl.BlockSpec((1, ho, wo, c_out), lambda i: (i, 0, 0, 0)),
            pl.BlockSpec((1, 2, c_out), lambda i: (i, 0, 0)),
        ),
        scratch_shapes=[pltpu.VMEM((hp, wp, c_in), jnp.float32)],
        compiler_params=pltpu.CompilerParams(
            dimension_semantics=("parallel",),   # batch images are independent
            vmem_limit_bytes=vmem_limit,
        ),
    )(x_nhwc, w_dw, w_pw, scale, shift)
    return y, stats


def _bn_affine_from_stats(stats, count, gamma, beta, eps):
    """Fold training-mode BatchNorm (batch stats, biased variance) into a
    per-channel affine (scale, shift) from per-image (sum, sumsq) statistics."""
    total = jnp.sum(stats, axis=0)                        # (2, C)
    mean = total[0] / count
    # E[x^2] - E[x]^2 with fp32 accumulators; clamp tiny negative rounding.
    var = jnp.maximum(total[1] / count - mean * mean, 0.0)
    inv = jax.lax.rsqrt(var + eps)
    scale = gamma * inv
    shift = beta - mean * scale
    return (scale.reshape(1, -1).astype(jnp.float32),
            shift.reshape(1, -1).astype(jnp.float32))


# ---------------------------------------------------------------------------
# Parameters (PyTorch-shaped init) and one-time conversion to kernel layout.
# ---------------------------------------------------------------------------
def init_sep_conv_params(key, c_in, c_out, kernel_size):
    k1, k2, k3, k4 = jax.random.split(key, 4)
    return {
        # torch shapes: conv1/conv3 depthwise (C_in,1,k,k); conv2 (C_in,C_in,1,1);
        # conv4 (C_out,C_in,1,1); all bias-free.
        "w1": 0.1 * jax.random.normal(k1, (c_in, 1, kernel_size, kernel_size), jnp.float32),
        "w2": 0.1 * jax.random.normal(k2, (c_in, c_in, 1, 1), jnp.float32),
        "w3": 0.1 * jax.random.normal(k3, (c_in, 1, kernel_size, kernel_size), jnp.float32),
        "w4": 0.1 * jax.random.normal(k4, (c_out, c_in, 1, 1), jnp.float32),
        # BatchNorm2d(affine=True) default init: weight=1, bias=0
        "bn1_gamma": jnp.ones((c_in,), jnp.float32),
        "bn1_beta": jnp.zeros((c_in,), jnp.float32),
        "bn2_gamma": jnp.ones((c_out,), jnp.float32),
        "bn2_beta": jnp.zeros((c_out,), jnp.float32),
    }


def prepare_sep_conv_params(params):
    """Pre-transpose weights ONCE into kernel layout (hoisted out of the hot path)."""
    return {
        "w1": jnp.transpose(params["w1"][:, 0], (1, 2, 0)),      # (k, k, C_in)
        "w2": jnp.transpose(params["w2"][:, :, 0, 0], (1, 0)),   # (C_in, C_in)
        "w3": jnp.transpose(params["w3"][:, 0], (1, 2, 0)),      # (k, k, C_in)
        "w4": jnp.transpose(params["w4"][:, :, 0, 0], (1, 0)),   # (C_in, C_out)
        "bn1_gamma": params["bn1_gamma"], "bn1_beta": params["bn1_beta"],
        "bn2_gamma": params["bn2_gamma"], "bn2_beta": params["bn2_beta"],
    }


# ---------------------------------------------------------------------------
# Forward pass (accepts/returns NCHW like the PyTorch module).
# ---------------------------------------------------------------------------
def sep_conv_forward(prep, x_nchw, *, stride, padding, eps=1e-5):
    n, c_in = x_nchw.shape[0], x_nchw.shape[1]

    # Boundary layout plumbing (single XLA pass each way).
    x = jnp.transpose(x_nchw, (0, 2, 3, 1))                       # NCHW -> NHWC

    # Stage 1: relu1 -> conv1 (depthwise, stride) -> conv2 (1x1)  [+ bn1 stats]
    ident_scale = jnp.ones((1, c_in), jnp.float32)
    ident_shift = jnp.zeros((1, c_in), jnp.float32)
    y1, st1 = _fused_stage(x, prep["w1"], prep["w2"], ident_scale, ident_shift,
                           stride=stride, padding=padding)
    _, h1, w1, _ = y1.shape
    scale1, shift1 = _bn_affine_from_stats(st1, n * h1 * w1,
                                           prep["bn1_gamma"], prep["bn1_beta"], eps)

    # Stage 2: bn1 + relu2 (folded into the prologue) -> conv3 (depthwise, 1)
    #          -> conv4 (1x1)                                     [+ bn2 stats]
    y2, st2 = _fused_stage(y1, prep["w3"], prep["w4"], scale1, shift1,
                           stride=1, padding=padding)
    _, h2, w2, _ = y2.shape
    scale2, shift2 = _bn_affine_from_stats(st2, n * h2 * w2,
                                           prep["bn2_gamma"], prep["bn2_beta"], eps)

    # Final bn2 affine + NHWC -> NCHW (XLA fuses these into one output pass).
    out = y2 * scale2 + shift2
    return jnp.transpose(out, (0, 3, 1, 2))


# ---------------------------------------------------------------------------
# Pure-JAX reference (lax.conv) for a correctness cross-check.
# ---------------------------------------------------------------------------
def _conv2d_ref(x_nhwc, w_oihw, *, stride, padding, groups):
    return jax.lax.conv_general_dilated(
        x_nhwc,
        jnp.transpose(w_oihw, (2, 3, 1, 0)),              # OIHW -> HWIO
        window_strides=(stride, stride),
        padding=((padding, padding), (padding, padding)),
        dimension_numbers=("NHWC", "HWIO", "NHWC"),
        feature_group_count=groups,
        precision=jax.lax.Precision.HIGHEST,
    )


def _batchnorm_ref(y, gamma, beta, eps):
    mean = jnp.mean(y, axis=(0, 1, 2), keepdims=True)
    var = jnp.mean(jnp.square(y - mean), axis=(0, 1, 2), keepdims=True)
    return (y - mean) * jax.lax.rsqrt(var + eps) * gamma + beta


def sep_conv_reference(params, x_nchw, *, stride, padding, eps=1e-5):
    c_in = params["w1"].shape[0]
    x = jnp.transpose(x_nchw, (0, 2, 3, 1))
    y = jnp.maximum(x, 0.0)
    y = _conv2d_ref(y, params["w1"], stride=stride, padding=padding, groups=c_in)
    y = _conv2d_ref(y, params["w2"], stride=1, padding=0, groups=1)
    y = _batchnorm_ref(y, params["bn1_gamma"], params["bn1_beta"], eps)
    y = jnp.maximum(y, 0.0)
    y = _conv2d_ref(y, params["w3"], stride=1, padding=padding, groups=c_in)
    y = _conv2d_ref(y, params["w4"], stride=1, padding=0, groups=1)
    y = _batchnorm_ref(y, params["bn2_gamma"], params["bn2_beta"], eps)
    return jnp.transpose(y, (0, 3, 1, 2))


if __name__ == "__main__":
    N, C_IN, C_OUT, H, W = 2, 4, 8, 16, 16
    KERNEL_SIZE, STRIDE, PADDING = 3, 1, 1

    key = jax.random.PRNGKey(0)
    pkey, xkey = jax.random.split(key)
    params = init_sep_conv_params(pkey, C_IN, C_OUT, KERNEL_SIZE)
    prep = prepare_sep_conv_params(params)
    x = jax.random.normal(xkey, (N, C_IN, H, W), jnp.float32)     # NCHW like PyTorch

    fwd = jax.jit(functools.partial(sep_conv_forward, stride=STRIDE, padding=PADDING))
    out = jax.block_until_ready(fwd(prep, x))
    assert out.shape == (N, C_OUT, H, W), out.shape

    # Cross-check against the pure-JAX reference of the same module.
    ref = jax.block_until_ready(
        sep_conv_reference(params, x, stride=STRIDE, padding=PADDING))
    max_err = float(jnp.max(jnp.abs(out - ref)))
    assert max_err < 2e-3, f"kernel/reference mismatch: max abs err {max_err}"

    print("KERNEL_OK")
</pallas_src>

<mosaic_0001>
module attributes {stable_mosaic.version = 11 : i64} {
  func.func @_sep_stage_kernel(%arg0: i32, %arg1: memref<1x16x16x4xf32, #tpu.memory_space<vmem>>, %arg2: memref<3x3x4xf32, #tpu.memory_space<vmem>>, %arg3: memref<4x4xf32, #tpu.memory_space<vmem>>, %arg4: memref<1x4xf32, #tpu.memory_space<vmem>>, %arg5: memref<1x4xf32, #tpu.memory_space<vmem>>, %arg6: memref<1x16x16x4xf32, #tpu.memory_space<vmem>>, %arg7: memref<1x2x4xf32, #tpu.memory_space<vmem>>, %arg8: memref<18x18x4xf32, #tpu.memory_space<vmem>>) attributes {dimension_semantics = [#tpu.dimension_semantics<parallel>], iteration_bounds = array<i64: 2>, scalar_prefetch = 0 : i64, scratch_operands = 1 : i64, tpu.core_type = #tpu.core_type<tc>, window_params = [{transform_indices = @transform_0, window_bounds = array<i64: 1, 16, 16, 4>}, {pipeline_mode = #tpu.pipeline_mode<synchronous>, transform_indices = @transform_1, window_bounds = array<i64: 3, 3, 4>}, {pipeline_mode = #tpu.pipeline_mode<synchronous>, transform_indices = @transform_2, window_bounds = array<i64: 4, 4>}, {pipeline_mode = #tpu.pipeline_mode<synchronous>, transform_indices = @transform_3, window_bounds = array<i64: 1, 4>}, {pipeline_mode = #tpu.pipeline_mode<synchronous>, transform_indices = @transform_4, window_bounds = array<i64: 1, 4>}, {transform_indices = @transform_5, window_bounds = array<i64: 1, 16, 16, 4>}, {transform_indices = @transform_6, window_bounds = array<i64: 1, 2, 4>}]} {
    %cst = arith.constant 0.000000e+00 : f32
    %0 = vector.broadcast %cst : f32 to vector<18x18x4xf32>
    %c0 = arith.constant 0 : index
    %c0_0 = arith.constant 0 : index
    %c0_1 = arith.constant 0 : index
    %1 = vector.load %arg8[%c0, %c0_0, %c0_1] : memref<18x18x4xf32, #tpu.memory_space<vmem>>, vector<18x18x4xf32>
    tpu.vector_store %arg8[%c0, %c0_0, %c0_1], %0 {strides = array<i32>} : memref<18x18x4xf32, #tpu.memory_space<vmem>>, vector<18x18x4xf32>,
    %c0_2 = arith.constant 0 : index
    %c0_3 = arith.constant 0 : index
    %c0_4 = arith.constant 0 : index
    %c0_5 = arith.constant 0 : index
    %2 = vector.load %arg1[%c0_2, %c0_3, %c0_4, %c0_5] : memref<1x16x16x4xf32, #tpu.memory_space<vmem>>, vector<1x16x16x4xf32>
    %3 = vector.shape_cast %2 : vector<1x16x16x4xf32> to vector<16x16x4xf32>
    %c0_6 = arith.constant 0 : index
    %c0_7 = arith.constant 0 : index
    %4 = vector.load %arg4[%c0_6, %c0_7] : memref<1x4xf32, #tpu.memory_space<vmem>>, vector<1x4xf32>
    %5 = vector.shape_cast %4 : vector<1x4xf32> to vector<1x1x4xf32>
    %6 = vector.broadcast %5 : vector<1x1x4xf32> to vector<16x16x4xf32>
    %7 = arith.mulf %3, %6 : vector<16x16x4xf32>
    %c0_8 = arith.constant 0 : index
    %c0_9 = arith.constant 0 : index
    %8 = vector.load %arg5[%c0_8, %c0_9] : memref<1x4xf32, #tpu.memory_space<vmem>>, vector<1x4xf32>
    %9 = vector.shape_cast %8 : vector<1x4xf32> to vector<1x1x4xf32>
    %10 = vector.broadcast %9 : vector<1x1x4xf32> to vector<16x16x4xf32>
    %11 = arith.addf %7, %10 : vector<16x16x4xf32>
    %cst_10 = arith.constant 0.000000e+00 : f32
    %12 = vector.broadcast %cst_10 : f32 to vector<16x16x4xf32>
    %13 = arith.maximumf %11, %12 : vector<16x16x4xf32>
    %c1 = arith.constant 1 : index
    %c1_11 = arith.constant 1 : index
    %c0_12 = arith.constant 0 : index
    %14 = vector.load %arg8[%c1, %c1_11, %c0_12] : memref<18x18x4xf32, #tpu.memory_space<vmem>>, vector<16x16x4xf32>
    tpu.vector_store %arg8[%c1, %c1_11, %c0_12], %13 {strides = array<i32>} : memref<18x18x4xf32, #tpu.memory_space<vmem>>, vector<16x16x4xf32>,
    %c0_13 = arith.constant 0 : index
    %c0_14 = arith.constant 0 : index
    %c0_15 = arith.constant 0 : index
    %15 = vector.load %arg2[%c0_13, %c0_14, %c0_15] : memref<3x3x4xf32, #tpu.memory_space<vmem>>, vector<3x3x4xf32>
    %cst_16 = arith.constant 0.000000e+00 : f32
    %16 = vector.broadcast %cst_16 : f32 to vector<16x16x4xf32>
    %c0_17 = arith.constant 0 : index
    %c0_18 = arith.constant 0 : index
    %c0_19 = arith.constant 0 : index
    %17 = vector.load %arg8[%c0_17, %c0_18, %c0_19] : memref<18x18x4xf32, #tpu.memory_space<vmem>>, vector<16x16x4xf32>
    %18 = vector.extract_strided_slice %15 {offsets = [0, 0, 0], sizes = [1, 1, 4], strides = [1, 1, 1]} : vector<3x3x4xf32> to vector<1x1x4xf32>
    %19 = vector.shape_cast %18 : vector<1x1x4xf32> to vector<4xf32>
    %20 = vector.shape_cast %19 : vector<4xf32> to vector<1x1x4xf32>
    %21 = vector.broadcast %20 : vector<1x1x4xf32> to vector<16x16x4xf32>
    %22 = arith.mulf %17, %21 : vector<16x16x4xf32>
    %23 = arith.addf %16, %22 : vector<16x16x4xf32>
    %c0_20 = arith.constant 0 : index
    %c1_21 = arith.constant 1 : index
    %c0_22 = arith.constant 0 : index
    %24 = vector.load %arg8[%c0_20, %c1_21, %c0_22] : memref<18x18x4xf32, #tpu.memory_space<vmem>>, vector<16x16x4xf32>
    %25 = vector.extract_strided_slice %15 {offsets = [0, 1, 0], sizes = [1, 1, 4], strides = [1, 1, 1]} : vector<3x3x4xf32> to vector<1x1x4xf32>
    %26 = vector.shape_cast %25 : vector<1x1x4xf32> to vector<4xf32>
    %27 = vector.shape_cast %26 : vector<4xf32> to vector<1x1x4xf32>
    %28 = vector.broadcast %27 : vector<1x1x4xf32> to vector<16x16x4xf32>
    %29 = arith.mulf %24, %28 : vector<16x16x4xf32>
    %30 = arith.addf %23, %29 : vector<16x16x4xf32>
    %c0_23 = arith.constant 0 : index
    %c2 = arith.constant 2 : index
    %c0_24 = arith.constant 0 : index
    %31 = vector.load %arg8[%c0_23, %c2, %c0_24] : memref<18x18x4xf32, #tpu.memory_space<vmem>>, vector<16x16x4xf32>
    %32 = vector.extract_strided_slice %15 {offsets = [0, 2, 0], sizes = [1, 1, 4], strides = [1, 1, 1]} : vector<3x3x4xf32> to vector<1x1x4xf32>
    %33 = vector.shape_cast %32 : vector<1x1x4xf32> to vector<4xf32>
    %34 = vector.shape_cast %33 : vector<4xf32> to vector<1x1x4xf32>
    %35 = vector.broadcast %34 : vector<1x1x4xf32> to vector<16x16x4xf32>
    %36 = arith.mulf %31, %35 : vector<16x16x4xf32>
    %37 = arith.addf %30, %36 : vector<16x16x4xf32>
    %c1_25 = arith.constant 1 : index
    %c0_26 = arith.constant 0 : index
    %c0_27 = arith.constant 0 : index
    %38 = vector.load %arg8[%c1_25, %c0_26, %c0_27] : memref<18x18x4xf32, #tpu.memory_space<vmem>>, vector<16x16x4xf32>
    %39 = vector.extract_strided_slice %15 {offsets = [1, 0, 0], sizes = [1, 1, 4], strides = [1, 1, 1]} : vector<3x3x4xf32> to vector<1x1x4xf32>
    %40 = vector.shape_cast %39 : vector<1x1x4xf32> to vector<4xf32>
    %41 = vector.shape_cast %40 : vector<4xf32> to vector<1x1x4xf32>
    %42 = vector.broadcast %41 : vector<1x1x4xf32> to vector<16x16x4xf32>
    %43 = arith.mulf %38, %42 : vector<16x16x4xf32>
    %44 = arith.addf %37, %43 : vector<16x16x4xf32>
    %c1_28 = arith.constant 1 : index
    %c1_29 = arith.constant 1 : index
    %c0_30 = arith.constant 0 : index
    %45 = vector.load %arg8[%c1_28, %c1_29, %c0_30] : memref<18x18x4xf32, #tpu.memory_space<vmem>>, vector<16x16x4xf32>
    %46 = vector.extract_strided_slice %15 {offsets = [1, 1, 0], sizes = [1, 1, 4], strides = [1, 1, 1]} : vector<3x3x4xf32> to vector<1x1x4xf32>
    %47 = vector.shape_cast %46 : vector<1x1x4xf32> to vector<4xf32>
    %48 = vector.shape_cast %47 : vector<4xf32> to vector<1x1x4xf32>
    %49 = vector.broadcast %48 : vector<1x1x4xf32> to vector<16x16x4xf32>
    %50 = arith.mulf %45, %49 : vector<16x16x4xf32>
    %51 = arith.addf %44, %50 : vector<16x16x4xf32>
    %c1_31 = arith.constant 1 : index
    %c2_32 = arith.constant 2 : index
    %c0_33 = arith.constant 0 : index
    %52 = vector.load %arg8[%c1_31, %c2_32, %c0_33] : memref<18x18x4xf32, #tpu.memory_space<vmem>>, vector<16x16x4xf32>
    %53 = vector.extract_strided_slice %15 {offsets = [1, 2, 0], sizes = [1, 1, 4], strides = [1, 1, 1]} : vector<3x3x4xf32> to vector<1x1x4xf32>
    %54 = vector.shape_cast %53 : vector<1x1x4xf32> to vector<4xf32>
    %55 = vector.shape_cast %54 : vector<4xf32> to vector<1x1x4xf32>
    %56 = vector.broadcast %55 : vector<1x1x4xf32> to vector<16x16x4xf32>
    %57 = arith.mulf %52, %56 : vector<16x16x4xf32>
    %58 = arith.addf %51, %57 : vector<16x16x4xf32>
    %c2_34 = arith.constant 2 : index
    %c0_35 = arith.constant 0 : index
    %c0_36 = arith.constant 0 : index
    %59 = vector.load %arg8[%c2_34, %c0_35, %c0_36] : memref<18x18x4xf32, #tpu.memory_space<vmem>>, vector<16x16x4xf32>
    %60 = vector.extract_strided_slice %15 {offsets = [2, 0, 0], sizes = [1, 1, 4], strides = [1, 1, 1]} : vector<3x3x4xf32> to vector<1x1x4xf32>
    %61 = vector.shape_cast %60 : vector<1x1x4xf32> to vector<4xf32>
    %62 = vector.shape_cast %61 : vector<4xf32> to vector<1x1x4xf32>
    %63 = vector.broadcast %62 : vector<1x1x4xf32> to vector<16x16x4xf32>
    %64 = arith.mulf %59, %63 : vector<16x16x4xf32>
    %65 = arith.addf %58, %64 : vector<16x16x4xf32>
    %c2_37 = arith.constant 2 : index
    %c1_38 = arith.constant 1 : index
    %c0_39 = arith.constant 0 : index
    %66 = vector.load %arg8[%c2_37, %c1_38, %c0_39] : memref<18x18x4xf32, #tpu.memory_space<vmem>>, vector<16x16x4xf32>
    %67 = vector.extract_strided_slice %15 {offsets = [2, 1, 0], sizes = [1, 1, 4], strides = [1, 1, 1]} : vector<3x3x4xf32> to vector<1x1x4xf32>
    %68 = vector.shape_cast %67 : vector<1x1x4xf32> to vector<4xf32>
    %69 = vector.shape_cast %68 : vector<4xf32> to vector<1x1x4xf32>
    %70 = vector.broadcast %69 : vector<1x1x4xf32> to vector<16x16x4xf32>
    %71 = arith.mulf %66, %70 : vector<16x16x4xf32>
    %72 = arith.addf %65, %71 : vector<16x16x4xf32>
    %c2_40 = arith.constant 2 : index
    %c2_41 = arith.constant 2 : index
    %c0_42 = arith.constant 0 : index
    %73 = vector.load %arg8[%c2_40, %c2_41, %c0_42] : memref<18x18x4xf32, #tpu.memory_space<vmem>>, vector<16x16x4xf32>
    %74 = vector.extract_strided_slice %15 {offsets = [2, 2, 0], sizes = [1, 1, 4], strides = [1, 1, 1]} : vector<3x3x4xf32> to vector<1x1x4xf32>
    %75 = vector.shape_cast %74 : vector<1x1x4xf32> to vector<4xf32>
    %76 = vector.shape_cast %75 : vector<4xf32> to vector<1x1x4xf32>
    %77 = vector.broadcast %76 : vector<1x1x4xf32> to vector<16x16x4xf32>
    %78 = arith.mulf %73, %77 : vector<16x16x4xf32>
    %79 = arith.addf %72, %78 : vector<16x16x4xf32>
    %c0_43 = arith.constant 0 : index
    %c0_44 = arith.constant 0 : index
    %80 = vector.load %arg3[%c0_43, %c0_44] : memref<4x4xf32, #tpu.memory_space<vmem>>, vector<4x4xf32>
    %cst_45 = arith.constant 0.000000e+00 : f32
    %81 = vector.broadcast %cst_45 : f32 to vector<16x16x4xf32>
    %82 = vector.extract_strided_slice %79 {offsets = [0, 0, 0], sizes = [16, 16, 1], strides = [1, 1, 1]} : vector<16x16x4xf32> to vector<16x16x1xf32>
    %83 = vector.extract_strided_slice %80 {offsets = [0, 0], sizes = [1, 4], strides = [1, 1]} : vector<4x4xf32> to vector<1x4xf32>
    %84 = vector.shape_cast %83 : vector<1x4xf32> to vector<4xf32>
    %85 = vector.shape_cast %84 : vector<4xf32> to vector<1x1x4xf32>
    %86 = vector.broadcast %82 : vector<16x16x1xf32> to vector<16x16x4xf32>
    %87 = vector.broadcast %85 : vector<1x1x4xf32> to vector<16x16x4xf32>
    %88 = arith.mulf %86, %87 : vector<16x16x4xf32>
    %89 = arith.addf %81, %88 : vector<16x16x4xf32>
    %90 = vector.extract_strided_slice %79 {offsets = [0, 0, 1], sizes = [16, 16, 1], strides = [1, 1, 1]} : vector<16x16x4xf32> to vector<16x16x1xf32>
    %91 = vector.extract_strided_slice %80 {offsets = [1, 0], sizes = [1, 4], strides = [1, 1]} : vector<4x4xf32> to vector<1x4xf32>
    %92 = vector.shape_cast %91 : vector<1x4xf32> to vector<4xf32>
    %93 = vector.shape_cast %92 : vector<4xf32> to vector<1x1x4xf32>
    %94 = vector.broadcast %90 : vector<16x16x1xf32> to vector<16x16x4xf32>
    %95 = vector.broadcast %93 : vector<1x1x4xf32> to vector<16x16x4xf32>
    %96 = arith.mulf %94, %95 : vector<16x16x4xf32>
    %97 = arith.addf %89, %96 : vector<16x16x4xf32>
    %98 = vector.extract_strided_slice %79 {offsets = [0, 0, 2], sizes = [16, 16, 1], strides = [1, 1, 1]} : vector<16x16x4xf32> to vector<16x16x1xf32>
    %99 = vector.extract_strided_slice %80 {offsets = [2, 0], sizes = [1, 4], strides = [1, 1]} : vector<4x4xf32> to vector<1x4xf32>
    %100 = vector.shape_cast %99 : vector<1x4xf32> to vector<4xf32>
    %101 = vector.shape_cast %100 : vector<4xf32> to vector<1x1x4xf32>
    %102 = vector.broadcast %98 : vector<16x16x1xf32> to vector<16x16x4xf32>
    %103 = vector.broadcast %101 : vector<1x1x4xf32> to vector<16x16x4xf32>
    %104 = arith.mulf %102, %103 : vector<16x16x4xf32>
    %105 = arith.addf %97, %104 : vector<16x16x4xf32>
    %106 = vector.extract_strided_slice %79 {offsets = [0, 0, 3], sizes = [16, 16, 1], strides = [1, 1, 1]} : vector<16x16x4xf32> to vector<16x16x1xf32>
    %107 = vector.extract_strided_slice %80 {offsets = [3, 0], sizes = [1, 4], strides = [1, 1]} : vector<4x4xf32> to vector<1x4xf32>
    %108 = vector.shape_cast %107 : vector<1x4xf32> to vector<4xf32>
    %109 = vector.shape_cast %108 : vector<4xf32> to vector<1x1x4xf32>
    %110 = vector.broadcast %106 : vector<16x16x1xf32> to vector<16x16x4xf32>
    %111 = vector.broadcast %109 : vector<1x1x4xf32> to vector<16x16x4xf32>
    %112 = arith.mulf %110, %111 : vector<16x16x4xf32>
    %113 = arith.addf %105, %112 : vector<16x16x4xf32>
    %c0_46 = arith.constant 0 : index
    %c0_47 = arith.constant 0 : index
    %c0_48 = arith.constant 0 : index
    %c0_49 = arith.constant 0 : index
    %114 = vector.load %arg6[%c0_46, %c0_47, %c0_48, %c0_49] : memref<1x16x16x4xf32, #tpu.memory_space<vmem>>, vector<1x16x16x4xf32>
    %115 = vector.shape_cast %114 : vector<1x16x16x4xf32> to vector<16x16x4xf32>
    %116 = vector.shape_cast %113 : vector<16x16x4xf32> to vector<1x16x16x4xf32>
    tpu.vector_store %arg6[%c0_46, %c0_47, %c0_48, %c0_49], %116 {strides = array<i32>} : memref<1x16x16x4xf32, #tpu.memory_space<vmem>>, vector<1x16x16x4xf32>,
    %117 = vector.shape_cast %113 : vector<16x16x4xf32> to vector<256x4xf32>
    %cst_50 = arith.constant dense<0.000000e+00> : vector<4xf32>
    %118 = vector.multi_reduction <add>, %117, %cst_50 [0] : vector<256x4xf32> to vector<4xf32>
    %119 = vector.shape_cast %118 : vector<4xf32> to vector<1x4xf32>
    %c0_51 = arith.constant 0 : index
    %c0_52 = arith.constant 0 : index
    %c0_53 = arith.constant 0 : index
    %120 = vector.load %arg7[%c0_51, %c0_52, %c0_53] : memref<1x2x4xf32, #tpu.memory_space<vmem>>, vector<1x1x4xf32>
    %121 = vector.shape_cast %120 : vector<1x1x4xf32> to vector<1x4xf32>
    %122 = vector.shape_cast %119 : vector<1x4xf32> to vector<1x1x4xf32>
    tpu.vector_store %arg7[%c0_51, %c0_52, %c0_53], %122 {strides = array<i32>} : memref<1x2x4xf32, #tpu.memory_space<vmem>>, vector<1x1x4xf32>,
    %123 = arith.mulf %117, %117 : vector<256x4xf32>
    %cst_54 = arith.constant dense<0.000000e+00> : vector<4xf32>
    %124 = vector.multi_reduction <add>, %123, %cst_54 [0] : vector<256x4xf32> to vector<4xf32>
    %125 = vector.shape_cast %124 : vector<4xf32> to vector<1x4xf32>
    %c0_55 = arith.constant 0 : index
    %c1_56 = arith.constant 1 : index
    %c0_57 = arith.constant 0 : index
    %126 = vector.load %arg7[%c0_55, %c1_56, %c0_57] : memref<1x2x4xf32, #tpu.memory_space<vmem>>, vector<1x1x4xf32>
    %127 = vector.shape_cast %126 : vector<1x1x4xf32> to vector<1x4xf32>
    %128 = vector.shape_cast %125 : vector<1x4xf32> to vector<1x1x4xf32>
    tpu.vector_store %arg7[%c0_55, %c1_56, %c0_57], %128 {strides = array<i32>} : memref<1x2x4xf32, #tpu.memory_space<vmem>>, vector<1x1x4xf32>,
    return
  }
  func.func @transform_0(%arg0: i32) -> (i32, i32, i32, i32) {
    %c0_i32 = arith.constant 0 : i32
    %c0_i32_0 = arith.constant 0 : i32
    %c0_i32_1 = arith.constant 0 : i32
    %c0_i32_2 = arith.constant 0 : i32
    return %arg0, %c0_i32, %c0_i32_0, %c0_i32_1 : i32, i32, i32, i32
  }
  func.func @transform_1(%arg0: i32) -> (i32, i32, i32) {
    %c0_i32 = arith.constant 0 : i32
    %c0_i32_0 = arith.constant 0 : i32
    %c0_i32_1 = arith.constant 0 : i32
    %c0_i32_2 = arith.constant 0 : i32
    return %c0_i32, %c0_i32_0, %c0_i32_1 : i32, i32, i32
  }
  func.func @transform_2(%arg0: i32) -> (i32, i32) {
    %c0_i32 = arith.constant 0 : i32
    %c0_i32_0 = arith.constant 0 : i32
    %c0_i32_1 = arith.constant 0 : i32
    return %c0_i32, %c0_i32_0 : i32, i32
  }
  func.func @transform_3(%arg0: i32) -> (i32, i32) {
    %c0_i32 = arith.constant 0 : i32
    %c0_i32_0 = arith.constant 0 : i32
    %c0_i32_1 = arith.constant 0 : i32
    return %c0_i32, %c0_i32_0 : i32, i32
  }
  func.func @transform_4(%arg0: i32) -> (i32, i32) {
    %c0_i32 = arith.constant 0 : i32
    %c0_i32_0 = arith.constant 0 : i32
    %c0_i32_1 = arith.constant 0 : i32
    return %c0_i32, %c0_i32_0 : i32, i32
  }
  func.func @transform_5(%arg0: i32) -> (i32, i32, i32, i32) {
    %c0_i32 = arith.constant 0 : i32
    %c0_i32_0 = arith.constant 0 : i32
    %c0_i32_1 = arith.constant 0 : i32
    %c0_i32_2 = arith.constant 0 : i32
    return %arg0, %c0_i32, %c0_i32_0, %c0_i32_1 : i32, i32, i32, i32
  }
  func.func @transform_6(%arg0: i32) -> (i32, i32, i32) {
    %c0_i32 = arith.constant 0 : i32
    %c0_i32_0 = arith.constant 0 : i32
    %c0_i32_1 = arith.constant 0 : i32
    return %arg0, %c0_i32, %c0_i32_0 : i32, i32, i32
  }
}

module attributes {stable_mosaic.version = 11 : i64} {
  func.func @_sep_stage_kernel(%arg0: i32, %arg1: memref<1x16x16x4xf32, #tpu.memory_space<vmem>>, %arg2: memref<3x3x4xf32, #tpu.memory_space<vmem>>, %arg3: memref<4x8xf32, #tpu.memory_space<vmem>>, %arg4: memref<1x4xf32, #tpu.memory_space<vmem>>, %arg5: memref<1x4xf32, #tpu.memory_space<vmem>>, %arg6: memref<1x16x16x8xf32, #tpu.memory_space<vmem>>, %arg7: memref<1x2x8xf32, #tpu.memory_space<vmem>>, %arg8: memref<18x18x4xf32, #tpu.memory_space<vmem>>) attributes {dimension_semantics = [#tpu.dimension_semantics<parallel>], iteration_bounds = array<i64: 2>, scalar_prefetch = 0 : i64, scratch_operands = 1 : i64, tpu.core_type = #tpu.core_type<tc>, window_params = [{transform_indices = @transform_0, window_bounds = array<i64: 1, 16, 16, 4>}, {pipeline_mode = #tpu.pipeline_mode<synchronous>, transform_indices = @transform_1, window_bounds = array<i64: 3, 3, 4>}, {pipeline_mode = #tpu.pipeline_mode<synchronous>, transform_indices = @transform_2, window_bounds = array<i64: 4, 8>}, {pipeline_mode = #tpu.pipeline_mode<synchronous>, transform_indices = @transform_3, window_bounds = array<i64: 1, 4>}, {pipeline_mode = #tpu.pipeline_mode<synchronous>, transform_indices = @transform_4, window_bounds = array<i64: 1, 4>}, {transform_indices = @transform_5, window_bounds = array<i64: 1, 16, 16, 8>}, {transform_indices = @transform_6, window_bounds = array<i64: 1, 2, 8>}]} {
    %cst = arith.constant 0.000000e+00 : f32
    %0 = vector.broadcast %cst : f32 to vector<18x18x4xf32>
    %c0 = arith.constant 0 : index
    %c0_0 = arith.constant 0 : index
    %c0_1 = arith.constant 0 : index
    %1 = vector.load %arg8[%c0, %c0_0, %c0_1] : memref<18x18x4xf32, #tpu.memory_space<vmem>>, vector<18x18x4xf32>
    tpu.vector_store %arg8[%c0, %c0_0, %c0_1], %0 {strides = array<i32>} : memref<18x18x4xf32, #tpu.memory_space<vmem>>, vector<18x18x4xf32>,
    %c0_2 = arith.constant 0 : index
    %c0_3 = arith.constant 0 : index
    %c0_4 = arith.constant 0 : index
    %c0_5 = arith.constant 0 : index
    %2 = vector.load %arg1[%c0_2, %c0_3, %c0_4, %c0_5] : memref<1x16x16x4xf32, #tpu.memory_space<vmem>>, vector<1x16x16x4xf32>
    %3 = vector.shape_cast %2 : vector<1x16x16x4xf32> to vector<16x16x4xf32>
    %c0_6 = arith.constant 0 : index
    %c0_7 = arith.constant 0 : index
    %4 = vector.load %arg4[%c0_6, %c0_7] : memref<1x4xf32, #tpu.memory_space<vmem>>, vector<1x4xf32>
    %5 = vector.shape_cast %4 : vector<1x4xf32> to vector<1x1x4xf32>
    %6 = vector.broadcast %5 : vector<1x1x4xf32> to vector<16x16x4xf32>
    %7 = arith.mulf %3, %6 : vector<16x16x4xf32>
    %c0_8 = arith.constant 0 : index
    %c0_9 = arith.constant 0 : index
    %8 = vector.load %arg5[%c0_8, %c0_9] : memref<1x4xf32, #tpu.memory_space<vmem>>, vector<1x4xf32>
    %9 = vector.shape_cast %8 : vector<1x4xf32> to vector<1x1x4xf32>
    %10 = vector.broadcast %9 : vector<1x1x4xf32> to vector<16x16x4xf32>
    %11 = arith.addf %7, %10 : vector<16x16x4xf32>
    %cst_10 = arith.constant 0.000000e+00 : f32
    %12 = vector.broadcast %cst_10 : f32 to vector<16x16x4xf32>
    %13 = arith.maximumf %11, %12 : vector<16x16x4xf32>
    %c1 = arith.constant 1 : index
    %c1_11 = arith.constant 1 : index
    %c0_12 = arith.constant 0 : index
    %14 = vector.load %arg8[%c1, %c1_11, %c0_12] : memref<18x18x4xf32, #tpu.memory_space<vmem>>, vector<16x16x4xf32>
    tpu.vector_store %arg8[%c1, %c1_11, %c0_12], %13 {strides = array<i32>} : memref<18x18x4xf32, #tpu.memory_space<vmem>>, vector<16x16x4xf32>,
    %c0_13 = arith.constant 0 : index
    %c0_14 = arith.constant 0 : index
    %c0_15 = arith.constant 0 : index
    %15 = vector.load %arg2[%c0_13, %c0_14, %c0_15] : memref<3x3x4xf32, #tpu.memory_space<vmem>>, vector<3x3x4xf32>
    %cst_16 = arith.constant 0.000000e+00 : f32
    %16 = vector.broadcast %cst_16 : f32 to vector<16x16x4xf32>
    %c0_17 = arith.constant 0 : index
    %c0_18 = arith.constant 0 : index
    %c0_19 = arith.constant 0 : index
    %17 = vector.load %arg8[%c0_17, %c0_18, %c0_19] : memref<18x18x4xf32, #tpu.memory_space<vmem>>, vector<16x16x4xf32>
    %18 = vector.extract_strided_slice %15 {offsets = [0, 0, 0], sizes = [1, 1, 4], strides = [1, 1, 1]} : vector<3x3x4xf32> to vector<1x1x4xf32>
    %19 = vector.shape_cast %18 : vector<1x1x4xf32> to vector<4xf32>
    %20 = vector.shape_cast %19 : vector<4xf32> to vector<1x1x4xf32>
    %21 = vector.broadcast %20 : vector<1x1x4xf32> to vector<16x16x4xf32>
    %22 = arith.mulf %17, %21 : vector<16x16x4xf32>
    %23 = arith.addf %16, %22 : vector<16x16x4xf32>
    %c0_20 = arith.constant 0 : index
    %c1_21 = arith.constant 1 : index
    %c0_22 = arith.constant 0 : index
    %24 = vector.load %arg8[%c0_20, %c1_21, %c0_22] : memref<18x18x4xf32, #tpu.memory_space<vmem>>, vector<16x16x4xf32>
    %25 = vector.extract_strided_slice %15 {offsets = [0, 1, 0], sizes = [1, 1, 4], strides = [1, 1, 1]} : vector<3x3x4xf32> to vector<1x1x4xf32>
    %26 = vector.shape_cast %25 : vector<1x1x4xf32> to vector<4xf32>
    %27 = vector.shape_cast %26 : vector<4xf32> to vector<1x1x4xf32>
    %28 = vector.broadcast %27 : vector<1x1x4xf32> to vector<16x16x4xf32>
    %29 = arith.mulf %24, %28 : vector<16x16x4xf32>
    %30 = arith.addf %23, %29 : vector<16x16x4xf32>
    %c0_23 = arith.constant 0 : index
    %c2 = arith.constant 2 : index
    %c0_24 = arith.constant 0 : index
    %31 = vector.load %arg8[%c0_23, %c2, %c0_24] : memref<18x18x4xf32, #tpu.memory_space<vmem>>, vector<16x16x4xf32>
    %32 = vector.extract_strided_slice %15 {offsets = [0, 2, 0], sizes = [1, 1, 4], strides = [1, 1, 1]} : vector<3x3x4xf32> to vector<1x1x4xf32>
    %33 = vector.shape_cast %32 : vector<1x1x4xf32> to vector<4xf32>
    %34 = vector.shape_cast %33 : vector<4xf32> to vector<1x1x4xf32>
    %35 = vector.broadcast %34 : vector<1x1x4xf32> to vector<16x16x4xf32>
    %36 = arith.mulf %31, %35 : vector<16x16x4xf32>
    %37 = arith.addf %30, %36 : vector<16x16x4xf32>
    %c1_25 = arith.constant 1 : index
    %c0_26 = arith.constant 0 : index
    %c0_27 = arith.constant 0 : index
    %38 = vector.load %arg8[%c1_25, %c0_26, %c0_27] : memref<18x18x4xf32, #tpu.memory_space<vmem>>, vector<16x16x4xf32>
    %39 = vector.extract_strided_slice %15 {offsets = [1, 0, 0], sizes = [1, 1, 4], strides = [1, 1, 1]} : vector<3x3x4xf32> to vector<1x1x4xf32>
    %40 = vector.shape_cast %39 : vector<1x1x4xf32> to vector<4xf32>
    %41 = vector.shape_cast %40 : vector<4xf32> to vector<1x1x4xf32>
    %42 = vector.broadcast %41 : vector<1x1x4xf32> to vector<16x16x4xf32>
    %43 = arith.mulf %38, %42 : vector<16x16x4xf32>
    %44 = arith.addf %37, %43 : vector<16x16x4xf32>
    %c1_28 = arith.constant 1 : index
    %c1_29 = arith.constant 1 : index
    %c0_30 = arith.constant 0 : index
    %45 = vector.load %arg8[%c1_28, %c1_29, %c0_30] : memref<18x18x4xf32, #tpu.memory_space<vmem>>, vector<16x16x4xf32>
    %46 = vector.extract_strided_slice %15 {offsets = [1, 1, 0], sizes = [1, 1, 4], strides = [1, 1, 1]} : vector<3x3x4xf32> to vector<1x1x4xf32>
    %47 = vector.shape_cast %46 : vector<1x1x4xf32> to vector<4xf32>
    %48 = vector.shape_cast %47 : vector<4xf32> to vector<1x1x4xf32>
    %49 = vector.broadcast %48 : vector<1x1x4xf32> to vector<16x16x4xf32>
    %50 = arith.mulf %45, %49 : vector<16x16x4xf32>
    %51 = arith.addf %44, %50 : vector<16x16x4xf32>
    %c1_31 = arith.constant 1 : index
    %c2_32 = arith.constant 2 : index
    %c0_33 = arith.constant 0 : index
    %52 = vector.load %arg8[%c1_31, %c2_32, %c0_33] : memref<18x18x4xf32, #tpu.memory_space<vmem>>, vector<16x16x4xf32>
    %53 = vector.extract_strided_slice %15 {offsets = [1, 2, 0], sizes = [1, 1, 4], strides = [1, 1, 1]} : vector<3x3x4xf32> to vector<1x1x4xf32>
    %54 = vector.shape_cast %53 : vector<1x1x4xf32> to vector<4xf32>
    %55 = vector.shape_cast %54 : vector<4xf32> to vector<1x1x4xf32>
    %56 = vector.broadcast %55 : vector<1x1x4xf32> to vector<16x16x4xf32>
    %57 = arith.mulf %52, %56 : vector<16x16x4xf32>
    %58 = arith.addf %51, %57 : vector<16x16x4xf32>
    %c2_34 = arith.constant 2 : index
    %c0_35 = arith.constant 0 : index
    %c0_36 = arith.constant 0 : index
    %59 = vector.load %arg8[%c2_34, %c0_35, %c0_36] : memref<18x18x4xf32, #tpu.memory_space<vmem>>, vector<16x16x4xf32>
    %60 = vector.extract_strided_slice %15 {offsets = [2, 0, 0], sizes = [1, 1, 4], strides = [1, 1, 1]} : vector<3x3x4xf32> to vector<1x1x4xf32>
    %61 = vector.shape_cast %60 : vector<1x1x4xf32> to vector<4xf32>
    %62 = vector.shape_cast %61 : vector<4xf32> to vector<1x1x4xf32>
    %63 = vector.broadcast %62 : vector<1x1x4xf32> to vector<16x16x4xf32>
    %64 = arith.mulf %59, %63 : vector<16x16x4xf32>
    %65 = arith.addf %58, %64 : vector<16x16x4xf32>
    %c2_37 = arith.constant 2 : index
    %c1_38 = arith.constant 1 : index
    %c0_39 = arith.constant 0 : index
    %66 = vector.load %arg8[%c2_37, %c1_38, %c0_39] : memref<18x18x4xf32, #tpu.memory_space<vmem>>, vector<16x16x4xf32>
    %67 = vector.extract_strided_slice %15 {offsets = [2, 1, 0], sizes = [1, 1, 4], strides = [1, 1, 1]} : vector<3x3x4xf32> to vector<1x1x4xf32>
    %68 = vector.shape_cast %67 : vector<1x1x4xf32> to vector<4xf32>
    %69 = vector.shape_cast %68 : vector<4xf32> to vector<1x1x4xf32>
    %70 = vector.broadcast %69 : vector<1x1x4xf32> to vector<16x16x4xf32>
    %71 = arith.mulf %66, %70 : vector<16x16x4xf32>
    %72 = arith.addf %65, %71 : vector<16x16x4xf32>
    %c2_40 = arith.constant 2 : index
    %c2_41 = arith.constant 2 : index
    %c0_42 = arith.constant 0 : index
    %73 = vector.load %arg8[%c2_40, %c2_41, %c0_42] : memref<18x18x4xf32, #tpu.memory_space<vmem>>, vector<16x16x4xf32>
    %74 = vector.extract_strided_slice %15 {offsets = [2, 2, 0], sizes = [1, 1, 4], strides = [1, 1, 1]} : vector<3x3x4xf32> to vector<1x1x4xf32>
    %75 = vector.shape_cast %74 : vector<1x1x4xf32> to vector<4xf32>
    %76 = vector.shape_cast %75 : vector<4xf32> to vector<1x1x4xf32>
    %77 = vector.broadcast %76 : vector<1x1x4xf32> to vector<16x16x4xf32>
    %78 = arith.mulf %73, %77 : vector<16x16x4xf32>
    %79 = arith.addf %72, %78 : vector<16x16x4xf32>
    %c0_43 = arith.constant 0 : index
    %c0_44 = arith.constant 0 : index
    %80 = vector.load %arg3[%c0_43, %c0_44] : memref<4x8xf32, #tpu.memory_space<vmem>>, vector<4x8xf32>
    %cst_45 = arith.constant 0.000000e+00 : f32
    %81 = vector.broadcast %cst_45 : f32 to vector<16x16x8xf32>
    %82 = vector.extract_strided_slice %79 {offsets = [0, 0, 0], sizes = [16, 16, 1], strides = [1, 1, 1]} : vector<16x16x4xf32> to vector<16x16x1xf32>
    %83 = vector.extract_strided_slice %80 {offsets = [0, 0], sizes = [1, 8], strides = [1, 1]} : vector<4x8xf32> to vector<1x8xf32>
    %84 = vector.shape_cast %83 : vector<1x8xf32> to vector<8xf32>
    %85 = vector.shape_cast %84 : vector<8xf32> to vector<1x1x8xf32>
    %86 = vector.broadcast %82 : vector<16x16x1xf32> to vector<16x16x8xf32>
    %87 = vector.broadcast %85 : vector<1x1x8xf32> to vector<16x16x8xf32>
    %88 = arith.mulf %86, %87 : vector<16x16x8xf32>
    %89 = arith.addf %81, %88 : vector<16x16x8xf32>
    %90 = vector.extract_strided_slice %79 {offsets = [0, 0, 1], sizes = [16, 16, 1], strides = [1, 1, 1]} : vector<16x16x4xf32> to vector<16x16x1xf32>
    %91 = vector.extract_strided_slice %80 {offsets = [1, 0], sizes = [1, 8], strides = [1, 1]} : vector<4x8xf32> to vector<1x8xf32>
    %92 = vector.shape_cast %91 : vector<1x8xf32> to vector<8xf32>
    %93 = vector.shape_cast %92 : vector<8xf32> to vector<1x1x8xf32>
    %94 = vector.broadcast %90 : vector<16x16x1xf32> to vector<16x16x8xf32>
    %95 = vector.broadcast %93 : vector<1x1x8xf32> to vector<16x16x8xf32>
    %96 = arith.mulf %94, %95 : vector<16x16x8xf32>
    %97 = arith.addf %89, %96 : vector<16x16x8xf32>
    %98 = vector.extract_strided_slice %79 {offsets = [0, 0, 2], sizes = [16, 16, 1], strides = [1, 1, 1]} : vector<16x16x4xf32> to vector<16x16x1xf32>
    %99 = vector.extract_strided_slice %80 {offsets = [2, 0], sizes = [1, 8], strides = [1, 1]} : vector<4x8xf32> to vector<1x8xf32>
    %100 = vector.shape_cast %99 : vector<1x8xf32> to vector<8xf32>
    %101 = vector.shape_cast %100 : vector<8xf32> to vector<1x1x8xf32>
    %102 = vector.broadcast %98 : vector<16x16x1xf32> to vector<16x16x8xf32>
    %103 = vector.broadcast %101 : vector<1x1x8xf32> to vector<16x16x8xf32>
    %104 = arith.mulf %102, %103 : vector<16x16x8xf32>
    %105 = arith.addf %97, %104 : vector<16x16x8xf32>
    %106 = vector.extract_strided_slice %79 {offsets = [0, 0, 3], sizes = [16, 16, 1], strides = [1, 1, 1]} : vector<16x16x4xf32> to vector<16x16x1xf32>
    %107 = vector.extract_strided_slice %80 {offsets = [3, 0], sizes = [1, 8], strides = [1, 1]} : vector<4x8xf32> to vector<1x8xf32>
    %108 = vector.shape_cast %107 : vector<1x8xf32> to vector<8xf32>
    %109 = vector.shape_cast %108 : vector<8xf32> to vector<1x1x8xf32>
    %110 = vector.broadcast %106 : vector<16x16x1xf32> to vector<16x16x8xf32>
    %111 = vector.broadcast %109 : vector<1x1x8xf32> to vector<16x16x8xf32>
    %112 = arith.mulf %110, %111 : vector<16x16x8xf32>
    %113 = arith.addf %105, %112 : vector<16x16x8xf32>
    %c0_46 = arith.constant 0 : index
    %c0_47 = arith.constant 0 : index
    %c0_48 = arith.constant 0 : index
    %c0_49 = arith.constant 0 : index
    %114 = vector.load %arg6[%c0_46, %c0_47, %c0_48, %c0_49] : memref<1x16x16x8xf32, #tpu.memory_space<vmem>>, vector<1x16x16x8xf32>
    %115 = vector.shape_cast %114 : vector<1x16x16x8xf32> to vector<16x16x8xf32>
    %116 = vector.shape_cast %113 : vector<16x16x8xf32> to vector<1x16x16x8xf32>
    tpu.vector_store %arg6[%c0_46, %c0_47, %c0_48, %c0_49], %116 {strides = array<i32>} : memref<1x16x16x8xf32, #tpu.memory_space<vmem>>, vector<1x16x16x8xf32>,
    %117 = vector.shape_cast %113 : vector<16x16x8xf32> to vector<256x8xf32>
    %cst_50 = arith.constant dense<0.000000e+00> : vector<8xf32>
    %118 = vector.multi_reduction <add>, %117, %cst_50 [0] : vector<256x8xf32> to vector<8xf32>
    %119 = vector.shape_cast %118 : vector<8xf32> to vector<1x8xf32>
    %c0_51 = arith.constant 0 : index
    %c0_52 = arith.constant 0 : index
    %c0_53 = arith.constant 0 : index
    %120 = vector.load %arg7[%c0_51, %c0_52, %c0_53] : memref<1x2x8xf32, #tpu.memory_space<vmem>>, vector<1x1x8xf32>
    %121 = vector.shape_cast %120 : vector<1x1x8xf32> to vector<1x8xf32>
    %122 = vector.shape_cast %119 : vector<1x8xf32> to vector<1x1x8xf32>
    tpu.vector_store %arg7[%c0_51, %c0_52, %c0_53], %122 {strides = array<i32>} : memref<1x2x8xf32, #tpu.memory_space<vmem>>, vector<1x1x8xf32>,
    %123 = arith.mulf %117, %117 : vector<256x8xf32>
    %cst_54 = arith.constant dense<0.000000e+00> : vector<8xf32>
    %124 = vector.multi_reduction <add>, %123, %cst_54 [0] : vector<256x8xf32> to vector<8xf32>
    %125 = vector.shape_cast %124 : vector<8xf32> to vector<1x8xf32>
    %c0_55 = arith.constant 0 : index
    %c1_56 = arith.constant 1 : index
    %c0_57 = arith.constant 0 : index
    %126 = vector.load %arg7[%c0_55, %c1_56, %c0_57] : memref<1x2x8xf32, #tpu.memory_space<vmem>>, vector<1x1x8xf32>
    %127 = vector.shape_cast %126 : vector<1x1x8xf32> to vector<1x8xf32>
    %128 = vector.shape_cast %125 : vector<1x8xf32> to vector<1x1x8xf32>
    tpu.vector_store %arg7[%c0_55, %c1_56, %c0_57], %128 {strides = array<i32>} : memref<1x2x8xf32, #tpu.memory_space<vmem>>, vector<1x1x8xf32>,
    return
  }
  func.func @transform_0(%arg0: i32) -> (i32, i32, i32, i32) {
    %c0_i32 = arith.constant 0 : i32
    %c0_i32_0 = arith.constant 0 : i32
    %c0_i32_1 = arith.constant 0 : i32
    %c0_i32_2 = arith.constant 0 : i32
    return %arg0, %c0_i32, %c0_i32_0, %c0_i32_1 : i32, i32, i32, i32
  }
  func.func @transform_1(%arg0: i32) -> (i32, i32, i32) {
    %c0_i32 = arith.constant 0 : i32
    %c0_i32_0 = arith.constant 0 : i32
    %c0_i32_1 = arith.constant 0 : i32
    %c0_i32_2 = arith.constant 0 : i32
    return %c0_i32, %c0_i32_0, %c0_i32_1 : i32, i32, i32
  }
  func.func @transform_2(%arg0: i32) -> (i32, i32) {
    %c0_i32 = arith.constant 0 : i32
    %c0_i32_0 = arith.constant 0 : i32
    %c0_i32_1 = arith.constant 0 : i32
    return %c0_i32, %c0_i32_0 : i32, i32
  }
  func.func @transform_3(%arg0: i32) -> (i32, i32) {
    %c0_i32 = arith.constant 0 : i32
    %c0_i32_0 = arith.constant 0 : i32
    %c0_i32_1 = arith.constant 0 : i32
    return %c0_i32, %c0_i32_0 : i32, i32
  }
  func.func @transform_4(%arg0: i32) -> (i32, i32) {
    %c0_i32 = arith.constant 0 : i32
    %c0_i32_0 = arith.constant 0 : i32
    %c0_i32_1 = arith.constant 0 : i32
    return %c0_i32, %c0_i32_0 : i32, i32
  }
  func.func @transform_5(%arg0: i32) -> (i32, i32, i32, i32) {
    %c0_i32 = arith.constant 0 : i32
    %c0_i32_0 = arith.constant 0 : i32
    %c0_i32_1 = arith.constant 0 : i32
    %c0_i32_2 = arith.constant 0 : i32
    return %arg0, %c0_i32, %c0_i32_0, %c0_i32_1 : i32, i32, i32, i32
  }
  func.func @transform_6(%arg0: i32) -> (i32, i32, i32) {
    %c0_i32 = arith.constant 0 : i32
    %c0_i32_0 = arith.constant 0 : i32
    %c0_i32_1 = arith.constant 0 : i32
    return %arg0, %c0_i32, %c0_i32_0 : i32, i32, i32
  }
}

</mosaic_0001>

<bundles_post_ra>
// kernel: sep_conv_forward.2
= control target key start
LH: loop header
LB: loop body
LE: loop exit
PB: predicated region body
PF: predicated region fallthrough
CT: control target
= control target key end

     0   :  { %s2597_s21 = smov 0   ;;  %s4253_s0 = inlined_call_operand.vmem [shape: f32[2,16,16,4], index: 0, kind: input, shape index: {}]   ;;  %s4254_s1 = inlined_call_operand.vmem [shape: f32[3,3,4], index: 1, kind: input, shape index: {}]   ;;  %s4255_s2 = inlined_call_operand.vmem [shape: f32[4,4], index: 2, kind: input, shape index: {}]   ;;  %s4256_s3 = inlined_call_operand.vmem [shape: f32[1,4], index: 3, kind: input, shape index: {}]   ;;  %s4257_s4 = inlined_call_operand.vmem [shape: f32[1,4], index: 4, kind: input, shape index: {}]   ;;  %s4258_s5 = inlined_call_operand.vmem [shape: f32[2,16,16,4], index: 5, kind: output, shape index: {0}]   ;;  %s4259_s6 = inlined_call_operand.vmem [shape: f32[2,2,4], index: 6, kind: output, shape index: {1}]  }
   0x1 LB: > { %s2506_s22 = sadd.s32 4294967295, %s2555_s21   ;;  %p2510_p0 = scmp.ge.s32.totalorder %s2555_s21, 1  ;;  %s2555_s21 = sphi %s2597_s21, %s17_s21  }
   0x2   : > { %p215_p1 = scmp.lt.s32.totalorder %s2555_s21, 3 }
   0x4   : > { %p216_p2 = pnand %p2510_p0, %p215_p1 }
   0x6   : > { %219 = sbr.rel (%p216_p2) target bundleno = 571 (0x23b), region = 40 }
   0xd   : > { %p2607_p3 = scmp.lt.s32.totalorder %s2506_s22, 1  ;;  %vm263_vm0 = vcmask 31744   ;;  %vm266_vm1 = vcmask 25600   ;;  %v2557_v0 = vmov 0   ;;  %v2558_v1 = vmov 0.0  }
   0xe   : > { %2535 = vset.pattern.permute.xlu0 %v2557_v0  ;;  %264 = vst.msk [vmem:[#allocation2] sm:$0xff] %vm263_vm0, %v2558_v1  ;;  %265 = vst.msk [vmem:[#allocation2 + $0x8] sm:$0xff] %vm263_vm0, %v2558_v1  ;;  %v529_v2 = vlaneseq  ;;  %2536 = vset.pattern.permute.xlu1 %v2557_v0  ;;  %v2677_v4 = vld [vmem:[%s4256_s3] ss:$0 sm:$0xff]  ;;  %v495_v17 = vld [vmem:[%s4254_s1 + $0x4] sm:$0x7] }
   0xf   : > { %268 = vst.msk [vmem:[#allocation2 + $0x18] sm:$0xff] %vm263_vm0, %v2558_v1  ;;  %269 = vst.msk [vmem:[#allocation2 + $0x20] sm:$0xff] %vm263_vm0, %v2558_v1  ;;  %s4338_s22 = smov (!%p2607_p3, %s2506_s22), 1  ;;  %v494_v5 = vld [vmem:[%s4254_s1] sm:$0x7]  ;;  %vm2316_vm2 = vcmask 24576  }
  0x10   : > { %270 = vst.msk [vmem:[#allocation2 + $0x28] sm:$0x3] %vm266_vm1, %v2558_v1  ;;  %273 = vst.msk [vmem:[#allocation2 + $0x40] sm:$0x3] %vm266_vm1, %v2558_v1  ;;  %v2671_v3 = vshrl.u32 %v529_v2, 7  ;;  %s2520_s24 = sshll.u32 %s4338_s22, 8 }
  0x11   : > { %271 = vst.msk [vmem:[#allocation2 + $0x30] sm:$0xff] %vm263_vm0, %v2558_v1  ;;  %272 = vst.msk [vmem:[#allocation2 + $0x38] sm:$0xff] %vm263_vm0, %v2558_v1  ;;  %s2687_s7 = scalar_lea.vmem %s4253_s0, %s2520_s24  ;;  %v2692_v6 = vld [vmem:[%s4257_s4] ss:$0 sm:$0xff]  ;;  %v496_v28 = vld [vmem:[%s4254_s1 + $0x8] sm:$0x7]  ;;  %s3871_s25 = scalar_lea.vmem %s4258_s5, %s2520_s24 }
  0x12   : > { %267 = vst.msk [vmem:[#allocation2 + $0x10] sm:$0x3] %vm266_vm1, %v2558_v1  ;;  %276 = vst.msk [vmem:[#allocation2 + $0x58] sm:$0x3] %vm266_vm1, %v2558_v1  ;;  %v2695_v7 = vsub.s32 0, %v2671_v3  ;;  %v2698_v8 = vsub.s32 1, %v2671_v3 }
  0x13   : > { %274 = vst.msk [vmem:[#allocation2 + $0x48] sm:$0xff] %vm263_vm0, %v2558_v1  ;;  %275 = vst.msk [vmem:[#allocation2 + $0x50] sm:$0xff] %vm263_vm0, %v2558_v1  ;;  %v2701_v9 = vsub.s32 2, %v2671_v3  ;;  %v319_v10 = vld [vmem:[%s2687_s7] sm:$0xff]  ;;  %v320_v11 = vld [vmem:[%s2687_s7 + $0x8] sm:$0xff]  ;;  %s2515_s24 = sshll.u32 %s4338_s22, 1 }
  0x14   : > { %277 = vst.msk [vmem:[#allocation2 + $0x60] sm:$0xff] %vm263_vm0, %v2558_v1  ;;  %278 = vst.msk [vmem:[#allocation2 + $0x68] sm:$0xff] %vm263_vm0, %v2558_v1  ;;  %v321_v12 = vld [vmem:[%s2687_s7 + $0x10] sm:$0xff]  ;;  %v322_v13 = vld [vmem:[%s2687_s7 + $0x18] sm:$0xff]  ;;  %v358_v14 = vmul.f32 %v2677_v4, %v319_v10  ;;  %v359_v15 = vmul.f32 %v2677_v4, %v320_v11  ;;  %v2714_v18 = vrot.slane %v494_v5, %v2695_v7  ;;  %s262_s28 = scalar_lea.vmem %s4259_s6, %s2515_s24 }
  0x15   : > { %279 = vst.msk [vmem:[#allocation2 + $0x70] sm:$0x3] %vm266_vm1, %v2558_v1  ;;  %282 = vst.msk [vmem:[#allocation2 + $0x88] sm:$0x3] %vm266_vm1, %v2558_v1  ;;  %v360_v16 = vmul.f32 %v2677_v4, %v321_v12  ;;  %v361_v19 = vmul.f32 %v2677_v4, %v322_v13  ;;  %v497_v20 = vld [vmem:[#allocation2] sm:$0xff]  ;;  %v2718_v22 = vrot.slane %v494_v5, %v2698_v8  ;;  %v498_v34 = vld [vmem:[#allocation2 + $0x8] sm:$0xff] }
  0x16   : > { %280 = vst.msk [vmem:[#allocation2 + $0x78] sm:$0xff] %vm263_vm0, %v2558_v1  ;;  %281 = vst.msk [vmem:[#allocation2 + $0x80] sm:$0xff] %vm263_vm0, %v2558_v1  ;;  %v597_v21 = vld [vmem:[#allocation2 + $0x1] sm:$0xff]  ;;  %v2721_v24 = vrot.slane %v494_v5, %v2701_v9  ;;  %v397_v25 = vadd.f32 %v2692_v6, %v358_v14  ;;  %v398_v26 = vadd.f32 %v2692_v6, %v359_v15  ;;  %v325_v43 = vld [vmem:[%s2687_s7 + $0x30] sm:$0xff] }
  0x17   : > { %283 = vst.msk [vmem:[#allocation2 + $0x90] sm:$0xff] %vm263_vm0, %v2558_v1  ;;  %284 = vst.msk [vmem:[#allocation2 + $0x98] sm:$0xff] %vm263_vm0, %v2558_v1  ;;  %v697_v23 = vld [vmem:[#allocation2 + $0x2] sm:$0xff]  ;;  %v399_v27 = vadd.f32 %v2692_v6, %v360_v16  ;;  %v533_v29 = vmul.f32 %v2714_v18, %v497_v20  ;;  %v400_v30 = vadd.f32 %v2692_v6, %v361_v19  ;;  %v326_v48 = vld [vmem:[%s2687_s7 + $0x38] sm:$0xff] }
  0x18   : > { %285 = vst.msk [vmem:[#allocation2 + $0xa0] sm:$0x3] %vm266_vm1, %v2558_v1  ;;  %288 = vst.msk [vmem:[#allocation2 + $0xb8] sm:$0x3] %vm266_vm1, %v2558_v1  ;;  %v633_v31 = vmul.f32 %v2718_v22, %v597_v21  ;;  %v733_v32 = vmul.f32 %v2721_v24, %v697_v23  ;;  %v2734_v33 = vrot.slane %v495_v17, %v2695_v7  ;;  %v323_v36 = vld [vmem:[%s2687_s7 + $0x20] sm:$0xff]  ;;  %v429_v37 = vmax.f32 %v397_v25, 0.0 }
  0x19   : > { %286 = vst.msk [vmem:[#allocation2 + $0xa8] sm:$0xff] %vm263_vm0, %v2558_v1  ;;  %287 = vst.msk [vmem:[#allocation2 + $0xb0] sm:$0xff] %vm263_vm0, %v2558_v1  ;;  %v598_v35 = vld [vmem:[#allocation2 + $0x9] sm:$0xff]  ;;  %v430_v38 = vmax.f32 %v398_v26, 0.0  ;;  %v431_v39 = vmax.f32 %v399_v27, 0.0  ;;  %v2738_v40 = vrot.slane %v495_v17, %v2698_v8  ;;  %v432_v44 = vmax.f32 %v400_v30, 0.0 }
  0x1a   : > { %289 = vst.msk [vmem:[#allocation2 + $0xc0] sm:$0xff] %vm263_vm0, %v2558_v1  ;;  %290 = vst.msk [vmem:[#allocation2 + $0xc8] sm:$0xff] %vm263_vm0, %v2558_v1  ;;  %v698_v41 = vld [vmem:[#allocation2 + $0xa] sm:$0xff]  ;;  %v665_v45 = vadd.f32 %v633_v31, %v533_v29  ;;  %v2743_v46 = vrot.slane %v495_v17, %v2701_v9  ;;  %v2746_v47 = vrot.slane %v496_v28, %v2695_v7  ;;  %v327_v49 = vld [vmem:[%s2687_s7 + $0x40] sm:$0xff] }
  0x1b   : > { %291 = vst.msk [vmem:[#allocation2 + $0xd0] sm:$0x3] %vm266_vm1, %v2558_v1  ;;  %294 = vst.msk [vmem:[#allocation2 + $0xe8] sm:$0x3] %vm266_vm1, %v2558_v1  ;;  %v324_v42 = vld [vmem:[%s2687_s7 + $0x28] sm:$0xff]  ;;  %v2755_v51 = vrot.slane %v496_v28, %v2698_v8  ;;  %v2758_v52 = vrot.slane %v496_v28, %v2701_v9  ;;  %v534_v53 = vmul.f32 %v2714_v18, %v498_v34  ;;  %v329_v55 = vld [vmem:[%s2687_s7 + $0x50] sm:$0xff] }
  0x1c   : > { %292 = vst.msk [vmem:[#allocation2 + $0xd8] sm:$0xff] %vm263_vm0, %v2558_v1  ;;  %293 = vst.msk [vmem:[#allocation2 + $0xe0] sm:$0xff] %vm263_vm0, %v2558_v1  ;;  %v328_v50 = vld [vmem:[%s2687_s7 + $0x48] sm:$0xff]  ;;  %v634_v54 = vmul.f32 %v2718_v22, %v598_v35  ;;  %v734_v56 = vmul.f32 %v2721_v24, %v698_v41  ;;  %v362_v57 = vmul.f32 %v2677_v4, %v323_v36  ;;  %v330_v0 = vld [vmem:[%s2687_s7 + $0x58] sm:$0xff] }
  0x1d   : > { %295 = vst.msk [vmem:[#allocation2 + $0xf0] sm:$0xff] %vm263_vm0, %v2558_v1  ;;  %296 = vst.msk [vmem:[#allocation2 + $0xf8] sm:$0xff] %vm263_vm0, %v2558_v1  ;;  %v363_v58 = vmul.f32 %v2677_v4, %v324_v42  ;;  %v364_v59 = vmul.f32 %v2677_v4, %v325_v43  ;;  %v365_v61 = vmul.f32 %v2677_v4, %v326_v48  ;;  %v331_v15 = vld [vmem:[%s2687_s7 + $0x60] sm:$0xff]  ;;  %v332_v16 = vld [vmem:[%s2687_s7 + $0x68] sm:$0xff] }
  0x1e   : > { %297 = vst.msk [vmem:[#allocation2 + $0x100] sm:$0x3] %vm266_vm1, %v2558_v1  ;;  %300 = vst.msk [vmem:[#allocation2 + $0x118] sm:$0x3] %vm266_vm1, %v2558_v1  ;;  %v666_v60 = vadd.f32 %v634_v54, %v534_v53  ;;  %v366_v62 = vmul.f32 %v2677_v4, %v327_v49  ;;  %v367_v63 = vmul.f32 %v2677_v4, %v328_v50  ;;  %v333_v23 = vld [vmem:[%s2687_s7 + $0x70] sm:$0xff] }
  0x1f   : > { %298 = vst.msk [vmem:[#allocation2 + $0x108] sm:$0xff] %vm263_vm0, %v2558_v1  ;;  %299 = vst.msk [vmem:[#allocation2 + $0x110] sm:$0xff] %vm263_vm0, %v2558_v1  ;;  %v402_v2 = vadd.f32 %v2692_v6, %v363_v58  ;;  %v403_v5 = vadd.f32 %v2692_v6, %v364_v59  ;;  %v368_v10 = vmul.f32 %v2677_v4, %v329_v55 }
  0x20   : > { %301 = vst.msk [vmem:[#allocation2 + $0x120] sm:$0xff] %vm263_vm0, %v2558_v1  ;;  %302 = vst.msk [vmem:[#allocation2 + $0x128] sm:$0xff] %vm263_vm0, %v2558_v1  ;;  %v765_v11 = vadd.f32 %v733_v32, %v665_v45  ;;  %v404_v12 = vadd.f32 %v2692_v6, %v365_v61  ;;  %v405_v13 = vadd.f32 %v2692_v6, %v366_v62 }
  0x21   : > { %303 = vst.msk [vmem:[#allocation2 + $0x130] sm:$0x3] %vm266_vm1, %v2558_v1  ;;  %306 = vst.msk [vmem:[#allocation2 + $0x148] sm:$0x3] %vm266_vm1, %v2558_v1  ;;  %v406_v14 = vadd.f32 %v2692_v6, %v367_v63  ;;  %v434_v19 = vmax.f32 %v402_v2, 0.0  ;;  %v435_v20 = vmax.f32 %v403_v5, 0.0  ;;  %v369_v21 = vmul.f32 %v2677_v4, %v330_v0 }
  0x22   : > { %304 = vst.msk [vmem:[#allocation2 + $0x138] sm:$0xff] %vm263_vm0, %v2558_v1  ;;  %305 = vst.msk [vmem:[#allocation2 + $0x140] sm:$0xff] %vm263_vm0, %v2558_v1  ;;  %v766_v25 = vadd.f32 %v734_v56, %v666_v60  ;;  %v436_v26 = vmax.f32 %v404_v12, 0.0  ;;  %v437_v27 = vmax.f32 %v405_v13, 0.0  ;;  %v2787_v31 = vadd.f32 %v2692_v6, %v368_v10 }
  0x23   : > { %307 = vst.msk [vmem:[#allocation2 + $0x150] sm:$0xff] %vm263_vm0, %v2558_v1  ;;  %308 = vst.msk [vmem:[#allocation2 + $0x158] sm:$0xff] %vm263_vm0, %v2558_v1  ;;  %v438_v28 = vmax.f32 %v406_v14, 0.0  ;;  %v2790_v32 = vadd.f32 %v2692_v6, %v369_v21  ;;  %v2793_v34 = vmul.f32 %v2677_v4, %v331_v15  ;;  %v2796_v35 = vmul.f32 %v2677_v4, %v332_v16 }
  0x24   : > { %309 = vst.msk [vmem:[#allocation2 + $0x160] sm:$0x3] %vm266_vm1, %v2558_v1  ;;  %312 = vst.msk [vmem:[#allocation2 + $0x178] sm:$0x3] %vm266_vm1, %v2558_v1  ;;  %v2805_v43 = vmul.f32 %v2677_v4, %v333_v23 }
  0x25   : > { %310 = vst.msk [vmem:[#allocation2 + $0x168] sm:$0xff] %vm263_vm0, %v2558_v1  ;;  %311 = vst.msk [vmem:[#allocation2 + $0x170] sm:$0xff] %vm263_vm0, %v2558_v1 }
  0x26   : > { %313 = vst.msk [vmem:[#allocation2 + $0x180] sm:$0xff] %vm263_vm0, %v2558_v1  ;;  %314 = vst.msk [vmem:[#allocation2 + $0x188] sm:$0xff] %vm263_vm0, %v2558_v1 }
  0x27   : > { %315 = vst.msk [vmem:[#allocation2 + $0x190] sm:$0x3] %vm266_vm1, %v2558_v1  ;;  %318 = vst.msk [vmem:[#allocation2 + $0x1a8] sm:$0x3] %vm266_vm1, %v2558_v1 }
  0x28   : > { %316 = vst.msk [vmem:[#allocation2 + $0x198] sm:$0xff] %vm263_vm0, %v2558_v1  ;;  %317 = vst.msk [vmem:[#allocation2 + $0x1a0] sm:$0xff] %vm263_vm0, %v2558_v1  ;;  %v401_v1 = vadd.f32 %v2692_v6, %v362_v57 }
  0x29   : > { %4281 = vst [vmem:[#allocation3_spill] sm:$0xff] %v2671_v3  ;;  %4282 = vst [vmem:[#allocation4_spill] sm:$0xff] %v2695_v7 }
  0x2a   : > { %4283 = vst [vmem:[#allocation5_spill] sm:$0xff] %v2698_v8  ;;  %4284 = vst [vmem:[#allocation6_spill] sm:$0xff] %v2701_v9  ;;  %v433_v17 = vmax.f32 %v401_v1, 0.0 }
  0x2b   : > { %462 = vst.msk [vmem:[#allocation2 + $0x19] sm:$0xff] %vm263_vm0, %v429_v37  ;;  %463 = vst.msk [vmem:[#allocation2 + $0x21] sm:$0xff] %vm263_vm0, %v430_v38 }
  0x2c   : > { %464 = vst.msk [vmem:[#allocation2 + $0x31] sm:$0xff] %vm263_vm0, %v431_v39  ;;  %465 = vst.msk [vmem:[#allocation2 + $0x39] sm:$0xff] %vm263_vm0, %v432_v44 }
  0x2d   : > { %466 = vst.msk [vmem:[#allocation2 + $0x49] sm:$0xff] %vm263_vm0, %v433_v17  ;;  %467 = vst.msk [vmem:[#allocation2 + $0x51] sm:$0xff] %vm263_vm0, %v434_v19 }
  0x2e   : > { %468 = vst.msk [vmem:[#allocation2 + $0x61] sm:$0xff] %vm263_vm0, %v435_v20  ;;  %469 = vst.msk [vmem:[#allocation2 + $0x69] sm:$0xff] %vm263_vm0, %v436_v26 }
  0x2f   : > { %470 = vst.msk [vmem:[#allocation2 + $0x79] sm:$0xff] %vm263_vm0, %v437_v27  ;;  %471 = vst.msk [vmem:[#allocation2 + $0x81] sm:$0xff] %vm263_vm0, %v438_v28 }
  0x32   : > { %v797_v29 = vld [vmem:[#allocation2 + $0x18] sm:$0xff]  ;;  %v798_v50 = vld [vmem:[#allocation2 + $0x20] sm:$0xff] }
  0x33   : > { %v897_v30 = vld [vmem:[#allocation2 + $0x19] sm:$0xff]  ;;  %v833_v36 = vmul.f32 %v2734_v33, %v797_v29  ;;  %v1098_v39 = vld [vmem:[#allocation2 + $0x30] sm:$0xff]  ;;  %v535_v42 = vmul.f32 %v797_v29, %v2714_v18  ;;  %v898_v53 = vld [vmem:[#allocation2 + $0x21] sm:$0xff]  ;;  %v834_v57 = vmul.f32 %v2734_v33, %v798_v50 }
  0x34   : > { %v933_v37 = vmul.f32 %v2738_v40, %v897_v30  ;;  %v997_v38 = vld [vmem:[#allocation2 + $0x1a] sm:$0xff]  ;;  %v1198_v41 = vld [vmem:[#allocation2 + $0x31] sm:$0xff]  ;;  %v1134_v45 = vmul.f32 %v2746_v47, %v1098_v39  ;;  %v635_v54 = vmul.f32 %v897_v30, %v2718_v22  ;;  %v934_v58 = vmul.f32 %v2738_v40, %v898_v53  ;;  %v998_v59 = vld [vmem:[#allocation2 + $0x22] sm:$0xff] }
  0x35   : > { %v1033_v44 = vmul.f32 %v2743_v46, %v997_v38  ;;  %v1234_v48 = vmul.f32 %v2755_v51, %v1198_v41  ;;  %v1298_v49 = vld [vmem:[#allocation2 + $0x32] sm:$0xff]  ;;  %v865_v55 = vadd.f32 %v833_v36, %v765_v11  ;;  %v1034_v62 = vmul.f32 %v2743_v46, %v998_v59  ;;  %v2823_v10 = vld [vmem:[#allocation2 + $0x3a] sm:$0xff]  ;;  %v1100_v21 = vld [vmem:[#allocation2 + $0x48] sm:$0xff] }
  0x36   : > { %v1334_v56 = vmul.f32 %v2758_v52, %v1298_v49  ;;  %v2814_v60 = vld [vmem:[#allocation2 + $0x38] sm:$0xff]  ;;  %v667_v1 = vadd.f32 %v635_v54, %v535_v42  ;;  %v866_v5 = vadd.f32 %v834_v57, %v766_v25  ;;  %v735_v11 = vmul.f32 %v997_v38, %v2721_v24  ;;  %v1200_v23 = vld [vmem:[#allocation2 + $0x49] sm:$0xff] }
  0x37   : > { %v2816_v61 = vld [vmem:[#allocation2 + $0x39] sm:$0xff]  ;;  %v1135_v63 = vmul.f32 %v2746_v47, %v2814_v60  ;;  %v965_v2 = vadd.f32 %v933_v37, %v865_v55  ;;  %v835_v12 = vmul.f32 %v1098_v39, %v2734_v33  ;;  %v1335_v13 = vmul.f32 %v2758_v52, %v2823_v10  ;;  %v1300_v38 = vld [vmem:[#allocation2 + $0x4a] sm:$0xff] }
  0x38   : > { %v1235_v0 = vmul.f32 %v2755_v51, %v2816_v61  ;;  %v935_v14 = vmul.f32 %v1198_v41, %v2738_v40  ;;  %v537_v15 = vmul.f32 %v1098_v39, %v2714_v18  ;;  %v637_v16 = vmul.f32 %v1198_v41, %v2718_v22  ;;  %v2840_v55 = vld [vmem:[#allocation2 + $0x60] sm:$0xff] }
  0x39   : > { %v1065_v17 = vadd.f32 %v1033_v44, %v965_v2  ;;  %v966_v19 = vadd.f32 %v934_v58, %v866_v5  ;;  %v767_v20 = vadd.f32 %v735_v11, %v667_v1  ;;  %v737_v25 = vmul.f32 %v1298_v49, %v2721_v24 }
  0x3a   : > { %v1035_v26 = vmul.f32 %v1298_v49, %v2743_v46  ;;  %v1136_v27 = vmul.f32 %v2746_v47, %v1100_v21  ;;  %v1236_v28 = vmul.f32 %v2755_v51, %v1200_v23  ;;  %v669_v29 = vadd.f32 %v637_v16, %v537_v15 }
  0x3b   : > { %v1166_v30 = vadd.f32 %v1134_v45, %v1065_v17  ;;  %v1066_v36 = vadd.f32 %v1034_v62, %v966_v19  ;;  %v867_v37 = vadd.f32 %v835_v12, %v767_v20  ;;  %v837_v39 = vmul.f32 %v1100_v21, %v2734_v33  ;;  %v2844_v62 = vld [vmem:[#allocation2 + $0x61] sm:$0xff] }
  0x3c   : > { %v1336_v41 = vmul.f32 %v2758_v52, %v1300_v38  ;;  %v769_v42 = vadd.f32 %v737_v25, %v669_v29  ;;  %v937_v44 = vmul.f32 %v1200_v23, %v2738_v40  ;;  %v1037_v54 = vmul.f32 %v1300_v38, %v2743_v46  ;;  %v2868_v25 = vld [vmem:[#allocation2 + $0x51] sm:$0xff] }
  0x3d   : > { %v1266_v49 = vadd.f32 %v1234_v48, %v1166_v30  ;;  %v1167_v57 = vadd.f32 %v1135_v63, %v1066_v36  ;;  %v967_v58 = vadd.f32 %v935_v14, %v867_v37  ;;  %v1138_v45 = vmul.f32 %v2746_v47, %v2840_v55  ;;  %v2852_v48 = vld [vmem:[#allocation2 + $0x62] sm:$0xff] }
  0x3e   : > { %v869_v1 = vadd.f32 %v837_v39, %v769_v42  ;;  %v1238_v2 = vmul.f32 %v2755_v51, %v2844_v62  ;;  %v536_v5 = vmul.f32 %v798_v50, %v2714_v18  ;;  %v636_v11 = vmul.f32 %v898_v53, %v2718_v22 }
  0x3f   : > { %v2850_v12 = vadd.f32 %v1334_v56, %v1266_v49  ;;  %v1267_v15 = vadd.f32 %v1235_v0, %v1167_v57  ;;  %v1067_v16 = vadd.f32 %v1035_v26, %v967_v58  ;;  %v736_v63 = vmul.f32 %v998_v59, %v2721_v24  ;;  %v2866_v59 = vld [vmem:[#allocation2 + $0x50] sm:$0xff] }
  0x40   : > { %v969_v14 = vadd.f32 %v937_v44, %v869_v1  ;;  %v1338_v17 = vmul.f32 %v2758_v52, %v2852_v48  ;;  %v668_v19 = vadd.f32 %v636_v11, %v536_v5  ;;  %v836_v20 = vmul.f32 %v2814_v60, %v2734_v33 }
  0x41   : > { %1401 = vperm.xlu0 %2535, %v2850_v12   ;;  %v2860_v50 = vadd.f32 %v1335_v13, %v1267_v15  ;;  %v1168_v53 = vadd.f32 %v1136_v27, %v1067_v16  ;;  %v936_v56 = vmul.f32 %v2816_v61, %v2738_v40  ;;  %v1036_v0 = vmul.f32 %v2823_v10, %v2743_v46  ;;  %v1301_v27 = vld [vmem:[#allocation2 + $0x52] sm:$0xff]  ;;  %v2896_v16 = vld [vmem:[#allocation2 + $0x7a] sm:$0xff] }
  0x42   : > { %v1069_v26 = vadd.f32 %v1037_v54, %v969_v14  ;;  %v768_v29 = vadd.f32 %v736_v63, %v668_v19  ;;  %v1137_v30 = vmul.f32 %v2746_v47, %v2866_v59  ;;  %v1237_v13 = vmul.f32 %v2755_v51, %v2868_v25 }
  0x43   : > { %v1268_v36 = vadd.f32 %v1236_v28, %v1168_v53  ;;  %v539_v37 = vmul.f32 %v1100_v21, %v2714_v18  ;;  %v639_v39 = vmul.f32 %v1200_v23, %v2718_v22  ;;  %v739_v42 = vmul.f32 %v1300_v38, %v2721_v24  ;;  %v2887_v23 = vld [vmem:[#allocation2 + $0x78] sm:$0xff] }
  0x44   : > { %v1170_v44 = vadd.f32 %v1138_v45, %v1069_v26  ;;  %v868_v49 = vadd.f32 %v836_v20, %v768_v29  ;;  %v1337_v57 = vmul.f32 %v2758_v52, %v1301_v27  ;;  %v839_v54 = vmul.f32 %v2840_v55, %v2734_v33  ;;  %v2889_v38 = vld [vmem:[#allocation2 + $0x79] sm:$0xff] }
  0x45   : > { %1406 = vperm.xlu0 %2535, %v2860_v50   ;;  %v2881_v58 = vadd.f32 %v1336_v41, %v1268_v36  ;;  %v671_v1 = vadd.f32 %v639_v39, %v539_v37  ;;  %v939_v28 = vmul.f32 %v2844_v62, %v2738_v40  ;;  %v1039_v21 = vmul.f32 %v2852_v48, %v2743_v46  ;;  %v2915_v37 = vld [vmem:[#allocation2 + $0x69] sm:$0xff] }
  0x46   : > { %v1270_v45 = vadd.f32 %v1238_v2, %v1170_v44  ;;  %v968_v5 = vadd.f32 %v936_v56, %v868_v49  ;;  %v1140_v11 = vmul.f32 %v2746_v47, %v2887_v23  ;;  %v1240_v41 = vmul.f32 %v2755_v51, %v2889_v38  ;;  %v2923_v49 = vld [vmem:[#allocation2 + $0x6a] sm:$0xff] }
  0x47   : > { %1411 = vperm.xlu1 %2536, %v2881_v58   ;;  %v771_v15 = vadd.f32 %v739_v42, %v671_v1  ;;  %v538_v63 = vmul.f32 %v2814_v60, %v2714_v18  ;;  %v638_v14 = vmul.f32 %v2816_v61, %v2718_v22  ;;  %v738_v2 = vmul.f32 %v2823_v10, %v2721_v24  ;;  %v2913_v61 = vld [vmem:[#allocation2 + $0x68] sm:$0xff] }
  0x48   : > { %v2904_v19 = vadd.f32 %v1338_v17, %v1270_v45  ;;  %v1068_v20 = vadd.f32 %v1036_v0, %v968_v5  ;;  %v1340_v53 = vmul.f32 %v2758_v52, %v2896_v16  ;;  %v838_v56 = vmul.f32 %v2866_v59, %v2734_v33 }
  0x49   : > { %v871_v26 = vadd.f32 %v839_v54, %v771_v15  ;;  %v670_v29 = vadd.f32 %v638_v14, %v538_v63  ;;  %v938_v60 = vmul.f32 %v2868_v25, %v2738_v40  ;;  %v1038_v36 = vmul.f32 %v1301_v27, %v2743_v46 }
  0x4a   : > { %1421 = vperm.xlu0 %2535, %v2904_v19   ;;  %v1169_v10 = vadd.f32 %v1137_v30, %v1068_v20  ;;  %v1139_v17 = vmul.f32 %v2746_v47, %v2913_v61  ;;  %v1239_v0 = vmul.f32 %v2755_v51, %v2915_v37  ;;  %v439_v39 = vmax.f32 %v2787_v31, 0.0 }
  0x4b   : > { %v971_v42 = vadd.f32 %v939_v28, %v871_v26  ;;  %v770_v44 = vadd.f32 %v738_v2, %v670_v29  ;;  %v440_v54 = vmax.f32 %v2790_v32, 0.0  ;;  %v541_v1 = vmul.f32 %v2840_v55, %v2714_v18  ;;  %v2954_v29 = vld [vmem:[#allocation2 + $0x80] sm:$0xff] }
  0x4c   : > { %v1269_v45 = vadd.f32 %v1237_v13, %v1169_v10  ;;  %v1339_v30 = vmul.f32 %v2758_v52, %v2923_v49  ;;  %472 = vst.msk [vmem:[#allocation2 + $0x91] sm:$0xff] %vm263_vm0, %v439_v39  ;;  %v641_v5 = vmul.f32 %v2844_v62, %v2718_v22  ;;  %v741_v31 = vmul.f32 %v2852_v48, %v2721_v24  ;;  %v2960_v10 = vld [vmem:[#allocation2 + $0x81] sm:$0xff] }
  0x4d   : > { %v1071_v28 = vadd.f32 %v1039_v21, %v971_v42  ;;  %v870_v15 = vadd.f32 %v838_v56, %v770_v44  ;;  %473 = vst.msk [vmem:[#allocation2 + $0x99] sm:$0xff] %vm263_vm0, %v440_v54  ;;  %v841_v32 = vmul.f32 %v2887_v23, %v2734_v33  ;;  %v941_v55 = vmul.f32 %v2889_v38, %v2738_v40  ;;  %v2964_v54 = vld [vmem:[#allocation2 + $0x82] sm:$0xff] }
  0x4e   : > { %v2940_v13 = vadd.f32 %v1337_v57, %v1269_v45  ;;  %v673_v63 = vadd.f32 %v641_v5, %v541_v1  ;;  %v540_v14 = vmul.f32 %v2866_v59, %v2714_v18  ;;  %v640_v62 = vmul.f32 %v2868_v25, %v2718_v22 }
  0x4f   : > { %v1172_v48 = vadd.f32 %v1140_v11, %v1071_v28  ;;  %v970_v21 = vadd.f32 %v938_v60, %v870_v15  ;;  %v1041_v2 = vmul.f32 %v2896_v16, %v2743_v46  ;;  %v740_v20 = vmul.f32 %v1301_v27, %v2721_v24 }
  0x50   : > { %1416 = vperm.xlu1 %2536, %v2940_v13   ;;  %v773_v56 = vadd.f32 %v741_v31, %v673_v63  ;;  %v672_v26 = vadd.f32 %v640_v62, %v540_v14  ;;  %v840_v57 = vmul.f32 %v2913_v61, %v2734_v33  ;;  %v940_v59 = vmul.f32 %v2915_v37, %v2738_v40 }
  0x51   : > { %v1272_v25 = vadd.f32 %v1240_v41, %v1172_v48  ;;  %v1070_v11 = vadd.f32 %v1038_v36, %v970_v21  ;;  %v1040_v60 = vmul.f32 %v2923_v49, %v2743_v46  ;;  %v1141_v27 = vmul.f32 %v2746_v47, %v2954_v29 }
  0x52   : > { %v873_v39 = vadd.f32 %v841_v32, %v773_v56  ;;  %v772_v42 = vadd.f32 %v740_v20, %v672_v26  ;;  %v1241_v44 = vmul.f32 %v2755_v51, %v2960_v10  ;;  %v409_v1 = vadd.f32 %v2692_v6, %v2793_v34 }
  0x53   : > { %v2968_v41 = vadd.f32 %v1340_v53, %v1272_v25  ;;  %v1171_v36 = vadd.f32 %v1139_v17, %v1070_v11  ;;  %v1106_v45 = vld [vmem:[#allocation2 + $0x90] sm:$0xff]  ;;  %v1341_v5 = vmul.f32 %v2758_v52, %v2964_v54  ;;  %v410_v31 = vadd.f32 %v2692_v6, %v2796_v35 }
  0x54   : > { %v973_v28 = vadd.f32 %v941_v55, %v873_v39  ;;  %v1142_v15 = vmul.f32 %v2746_v47, %v1106_v45  ;;  %v1206_v32 = vld [vmem:[#allocation2 + $0x91] sm:$0xff]  ;;  %v872_v63 = vadd.f32 %v840_v57, %v772_v42  ;;  %v543_v14 = vmul.f32 %v2887_v23, %v2714_v18 }
  0x55   : > { %1431 = vperm.xlu0 %2535, %v2968_v41   ;;  %v1271_v34 = vadd.f32 %v1239_v0, %v1171_v36  ;;  %v1242_v53 = vmul.f32 %v2755_v51, %v1206_v32  ;;  %v441_v17 = vmax.f32 %v409_v1, 0.0  ;;  %v442_v62 = vmax.f32 %v410_v31, 0.0  ;;  %v1306_v21 = vld [vmem:[#allocation2 + $0x92] sm:$0xff] }
  0x56   : > { %v1073_v48 = vadd.f32 %v1041_v2, %v973_v28  ;;  %v972_v20 = vadd.f32 %v940_v59, %v872_v63  ;;  %v643_v35 = vmul.f32 %v2889_v38, %v2718_v22  ;;  %v743_v55 = vmul.f32 %v2896_v16, %v2721_v24  ;;  %v334_v39 = vld [vmem:[%s2687_s7 + $0x78] sm:$0xff] }
  0x57   : > { %v2983_v56 = vadd.f32 %v1339_v30, %v1271_v34  ;;  %v1342_v23 = vmul.f32 %v2758_v52, %v1306_v21  ;;  %474 = vst.msk [vmem:[#allocation2 + $0xa9] sm:$0xff] %vm263_vm0, %v441_v17  ;;  %475 = vst.msk [vmem:[#allocation2 + $0xb1] sm:$0xff] %vm263_vm0, %v442_v62  ;;  %v843_v0 = vmul.f32 %v1106_v45, %v2734_v33  ;;  %v3003_v36 = vld [vmem:[#allocation2 + $0x98] sm:$0xff] }
  0x58   : > { %v943_v2 = vmul.f32 %v1206_v32, %v2738_v40  ;;  %v1174_v26 = vadd.f32 %v1142_v15, %v1073_v48  ;;  %v1072_v57 = vadd.f32 %v1040_v60, %v972_v20  ;;  %v675_v59 = vadd.f32 %v643_v35, %v543_v14  ;;  %v3005_v31 = vld [vmem:[#allocation2 + $0x99] sm:$0xff] }
  0x59   : > { %v542_v38 = vmul.f32 %v2913_v61, %v2714_v18  ;;  %1426 = vperm.xlu1 %2536, %v2983_v56   ;;  %v1043_v16 = vmul.f32 %v1306_v21, %v2743_v46  ;;  %v642_v30 = vmul.f32 %v2915_v37, %v2718_v22  ;;  %v742_v25 = vmul.f32 %v2923_v49, %v2721_v24 }
  0x5a   : > { %v842_v11 = vmul.f32 %v2954_v29, %v2734_v33  ;;  %v1274_v42 = vadd.f32 %v1242_v53, %v1174_v26  ;;  %v1173_v60 = vadd.f32 %v1141_v27, %v1072_v57  ;;  %v775_v1 = vadd.f32 %v743_v55, %v675_v59  ;;  %v3023_v26 = vld [vmem:[#allocation2 + $0x9a] sm:$0xff] }
  0x5b   : > { %v942_v61 = vmul.f32 %v2960_v10, %v2738_v40  ;;  %v674_v28 = vadd.f32 %v642_v30, %v542_v38  ;;  %v1042_v37 = vmul.f32 %v2964_v54, %v2743_v46  ;;  %v1143_v49 = vmul.f32 %v2746_v47, %v3003_v36 }
  0x5c   : > { %v1243_v15 = vmul.f32 %v2755_v51, %v3005_v31  ;;  %v3013_v63 = vadd.f32 %v1342_v23, %v1274_v42  ;;  %v1273_v27 = vadd.f32 %v1241_v44, %v1173_v60  ;;  %v875_v14 = vadd.f32 %v843_v0, %v775_v1 }
  0x5d   : > { %v373_v34 = vmul.f32 %v2677_v4, %v334_v39  ;;  %v774_v53 = vadd.f32 %v742_v25, %v674_v28  ;;  %v411_v17 = vadd.f32 %v2692_v6, %v2805_v43  ;;  %v545_v62 = vmul.f32 %v1106_v45, %v2714_v18 }
  0x5e   : > { %v645_v48 = vmul.f32 %v1206_v32, %v2718_v22  ;;  %1441 = vperm.xlu0 %2535, %v3013_v63   ;;  %v3021_v20 = vadd.f32 %v1341_v5, %v1273_v27  ;;  %v975_v35 = vadd.f32 %v943_v2, %v875_v14  ;;  %v1108_v55 = vld [vmem:[#allocation2 + $0xa8] sm:$0xff]  ;;  %v745_v0 = vmul.f32 %v1306_v21, %v2721_v24 }
  0x5f   : > { %v1208_v23 = vld [vmem:[#allocation2 + $0xa9] sm:$0xff]  ;;  %v412_v44 = vadd.f32 %v2692_v6, %v373_v34  ;;  %v1144_v57 = vmul.f32 %v2746_v47, %v1108_v55  ;;  %v874_v45 = vadd.f32 %v842_v11, %v774_v53  ;;  %v1343_v32 = vmul.f32 %v2758_v52, %v3023_v26  ;;  %v335_v34 = vld [vmem:[%s2687_s7 + $0x80] sm:$0xff] }
  0x60   : > { %v1244_v43 = vmul.f32 %v2755_v51, %v1208_v23  ;;  %1436 = vperm.xlu1 %2536, %v3021_v20   ;;  %v1075_v5 = vadd.f32 %v1043_v16, %v975_v35  ;;  %v1308_v2 = vld [vmem:[#allocation2 + $0xaa] sm:$0xff]  ;;  %v443_v59 = vmax.f32 %v411_v17, 0.0  ;;  %v677_v30 = vadd.f32 %v645_v48, %v545_v62 }
  0x61   : > { %v444_v38 = vmax.f32 %v412_v44, 0.0  ;;  %v1344_v25 = vmul.f32 %v2758_v52, %v1308_v2  ;;  %v974_v39 = vadd.f32 %v942_v61, %v874_v45  ;;  %v845_v21 = vmul.f32 %v1108_v55, %v2734_v33  ;;  %v3051_v35 = vld [vmem:[#allocation2 + $0xb1] sm:$0xff] }
  0x62   : > { %v945_v42 = vmul.f32 %v1208_v23, %v2738_v40  ;;  %v1176_v60 = vadd.f32 %v1144_v57, %v1075_v5  ;;  %476 = vst.msk [vmem:[#allocation2 + $0xc1] sm:$0xff] %vm263_vm0, %v443_v59  ;;  %v777_v11 = vadd.f32 %v745_v0, %v677_v30  ;;  %v544_v16 = vmul.f32 %v2954_v29, %v2714_v18  ;;  %v3049_v29 = vld [vmem:[#allocation2 + $0xb0] sm:$0xff] }
  0x63   : > { %477 = vst.msk [vmem:[#allocation2 + $0xc9] sm:$0xff] %vm263_vm0, %v444_v38  ;;  %v644_v1 = vmul.f32 %v2960_v10, %v2718_v22  ;;  %v1074_v28 = vadd.f32 %v1042_v37, %v974_v39  ;;  %v1045_v61 = vmul.f32 %v1308_v2, %v2743_v46  ;;  %v744_v27 = vmul.f32 %v2964_v54, %v2721_v24  ;;  %v336_v10 = vld [vmem:[%s2687_s7 + $0x88] sm:$0xff] }
  0x64   : > { %v844_v14 = vmul.f32 %v3003_v36, %v2734_v33  ;;  %v1276_v53 = vadd.f32 %v1244_v43, %v1176_v60  ;;  %v877_v17 = vadd.f32 %v845_v21, %v777_v11  ;;  %v944_v48 = vmul.f32 %v3005_v31, %v2738_v40  ;;  %v3067_v60 = vld [vmem:[#allocation2 + $0xb2] sm:$0xff] }
  0x65   : > { %v676_v62 = vadd.f32 %v644_v1, %v544_v16  ;;  %v1175_v37 = vadd.f32 %v1143_v49, %v1074_v28  ;;  %v1044_v44 = vmul.f32 %v3023_v26, %v2743_v46  ;;  %v1145_v54 = vmul.f32 %v2746_v47, %v3049_v29 }
  0x66   : > { %v1245_v0 = vmul.f32 %v2755_v51, %v3051_v35  ;;  %v3060_v57 = vadd.f32 %v1344_v25, %v1276_v53  ;;  %v977_v43 = vadd.f32 %v945_v42, %v877_v17  ;;  %v374_v5 = vmul.f32 %v2677_v4, %v335_v34 }
  0x67   : > { %v776_v45 = vadd.f32 %v744_v27, %v676_v62  ;;  %v1275_v59 = vadd.f32 %v1243_v15, %v1175_v37  ;;  %v375_v38 = vmul.f32 %v2677_v4, %v336_v10  ;;  %v547_v49 = vmul.f32 %v1108_v55, %v2714_v18 }
  0x68   : > { %v647_v30 = vmul.f32 %v1208_v23, %v2718_v22  ;;  %1451 = vperm.xlu0 %2535, %v3060_v57   ;;  %v1077_v39 = vadd.f32 %v1045_v61, %v977_v43  ;;  %v413_v25 = vadd.f32 %v2692_v6, %v374_v5  ;;  %v747_v42 = vmul.f32 %v1308_v2, %v2721_v24 }
  0x69   : > { %v876_v21 = vadd.f32 %v844_v14, %v776_v45  ;;  %v3071_v11 = vadd.f32 %v1343_v32, %v1275_v59  ;;  %v1110_v16 = vld [vmem:[#allocation2 + $0xc0] sm:$0xff]  ;;  %v1345_v1 = vmul.f32 %v2758_v52, %v3067_v60  ;;  %v414_v55 = vadd.f32 %v2692_v6, %v375_v38  ;;  %v337_v59 = vld [vmem:[%s2687_s7 + $0x90] sm:$0xff] }
  0x6a   : > { %v1210_v15 = vld [vmem:[#allocation2 + $0xc1] sm:$0xff]  ;;  %v679_v23 = vadd.f32 %v647_v30, %v547_v49  ;;  %v1146_v28 = vmul.f32 %v2746_v47, %v1110_v16  ;;  %v546_v14 = vmul.f32 %v3003_v36, %v2714_v18  ;;  %v445_v2 = vmax.f32 %v413_v25, 0.0 }
  0x6b   : > { %v1246_v61 = vmul.f32 %v2755_v51, %v1210_v15  ;;  %v976_v27 = vadd.f32 %v944_v48, %v876_v21  ;;  %1446 = vperm.xlu1 %2536, %v3071_v11   ;;  %v1310_v32 = vld [vmem:[#allocation2 + $0xc2] sm:$0xff]  ;;  %v446_v34 = vmax.f32 %v414_v55, 0.0  ;;  %v847_v17 = vmul.f32 %v1110_v16, %v2734_v33  ;;  %v338_v21 = vld [vmem:[%s2687_s7 + $0x98] sm:$0xff] }
  0x6c   : > { %v779_v53 = vadd.f32 %v747_v42, %v679_v23  ;;  %v1178_v62 = vadd.f32 %v1146_v28, %v1077_v39  ;;  %v1346_v10 = vmul.f32 %v2758_v52, %v1310_v32  ;;  %v947_v43 = vmul.f32 %v1210_v15, %v2738_v40  ;;  %478 = vst.msk [vmem:[#allocation2 + $0xd9] sm:$0xff] %vm263_vm0, %v445_v2  ;;  %v3096_v39 = vld [vmem:[#allocation2 + $0xc8] sm:$0xff] }
  0x6d   : > { %v1076_v37 = vadd.f32 %v1044_v44, %v976_v27  ;;  %479 = vst.msk [vmem:[#allocation2 + $0xe1] sm:$0xff] %vm263_vm0, %v446_v34  ;;  %v1047_v48 = vmul.f32 %v1310_v32, %v2743_v46  ;;  %v646_v45 = vmul.f32 %v3005_v31, %v2718_v22  ;;  %v746_v5 = vmul.f32 %v3023_v26, %v2721_v24  ;;  %v3103_v55 = vld [vmem:[#allocation2 + $0xc9] sm:$0xff] }
  0x6e   : > { %v879_v36 = vadd.f32 %v847_v17, %v779_v53  ;;  %v1278_v38 = vadd.f32 %v1246_v61, %v1178_v62  ;;  %v846_v44 = vmul.f32 %v3049_v29, %v2734_v33  ;;  %v946_v30 = vmul.f32 %v3051_v35, %v2738_v40 }
  0x6f   : > { %v1177_v49 = vadd.f32 %v1145_v54, %v1076_v37  ;;  %v678_v42 = vadd.f32 %v646_v45, %v546_v14  ;;  %v1046_v31 = vmul.f32 %v3067_v60, %v2743_v46  ;;  %v1147_v26 = vmul.f32 %v2746_v47, %v3096_v39  ;;  %v3118_v37 = vld [vmem:[#allocation2 + $0xca] sm:$0xff] }
  0x70   : > { %v979_v25 = vadd.f32 %v947_v43, %v879_v36  ;;  %v3105_v54 = vadd.f32 %v1346_v10, %v1278_v38  ;;  %v1247_v28 = vmul.f32 %v2755_v51, %v3103_v55  ;;  %v376_v61 = vmul.f32 %v2677_v4, %v337_v59 }
  0x71   : > { %v1277_v23 = vadd.f32 %v1245_v0, %v1177_v49  ;;  %v778_v2 = vadd.f32 %v746_v5, %v678_v42  ;;  %v377_v14 = vmul.f32 %v2677_v4, %v338_v21  ;;  %v549_v34 = vmul.f32 %v1110_v16, %v2714_v18 }
  0x72   : > { %v1079_v27 = vadd.f32 %v1047_v48, %v979_v25  ;;  %1461 = vperm.xlu0 %2535, %v3105_v54   ;;  %v415_v17 = vadd.f32 %v2692_v6, %v376_v61  ;;  %v649_v62 = vmul.f32 %v1210_v15, %v2718_v22  ;;  %v749_v0 = vmul.f32 %v1310_v32, %v2721_v24 }
  0x73   : > { %v3113_v53 = vadd.f32 %v1345_v1, %v1277_v23  ;;  %v878_v10 = vadd.f32 %v846_v44, %v778_v2  ;;  %v416_v43 = vadd.f32 %v2692_v6, %v377_v14  ;;  %v548_v36 = vmul.f32 %v3049_v29, %v2714_v18  ;;  %v1112_v1 = vld [vmem:[#allocation2 + $0xd8] sm:$0xff]  ;;  %v339_v14 = vld [vmem:[%s2687_s7 + $0xa0] sm:$0xff] }
  0x74   : > { %v648_v16 = vmul.f32 %v3051_v35, %v2718_v22  ;;  %v1212_v48 = vld [vmem:[#allocation2 + $0xd9] sm:$0xff]  ;;  %v1347_v15 = vmul.f32 %v2758_v52, %v3118_v37  ;;  %v447_v45 = vmax.f32 %v415_v17, 0.0  ;;  %v681_v32 = vadd.f32 %v649_v62, %v549_v34  ;;  %v340_v34 = vld [vmem:[%s2687_s7 + $0xa8] sm:$0xff] }
  0x75   : > { %1456 = vperm.xlu1 %2536, %v3113_v53   ;;  %v748_v5 = vmul.f32 %v3067_v60, %v2721_v24  ;;  %v1148_v59 = vmul.f32 %v2746_v47, %v1112_v1  ;;  %v1248_v29 = vmul.f32 %v2755_v51, %v1212_v48  ;;  %v978_v38 = vadd.f32 %v946_v30, %v878_v10  ;;  %v1312_v49 = vld [vmem:[#allocation2 + $0xda] sm:$0xff] }
  0x76   : > { %v848_v35 = vmul.f32 %v3096_v39, %v2734_v33  ;;  %v448_v44 = vmax.f32 %v416_v43, 0.0  ;;  %480 = vst.msk [vmem:[#allocation2 + $0xf1] sm:$0xff] %vm263_vm0, %v447_v45  ;;  %v781_v21 = vadd.f32 %v749_v0, %v681_v32  ;;  %v849_v25 = vmul.f32 %v1112_v1, %v2734_v33  ;;  %v3146_v10 = vld [vmem:[#allocation2 + $0xe0] sm:$0xff] }
  0x77   : > { %v949_v42 = vmul.f32 %v1212_v48, %v2738_v40  ;;  %v1180_v23 = vadd.f32 %v1148_v59, %v1079_v27  ;;  %v1348_v60 = vmul.f32 %v2758_v52, %v1312_v49  ;;  %v1078_v61 = vadd.f32 %v1046_v31, %v978_v38 }
  0x78   : > { %v680_v2 = vadd.f32 %v648_v16, %v548_v36  ;;  %481 = vst.msk [vmem:[#allocation2 + $0xf9] sm:$0xff] %vm263_vm0, %v448_v44  ;;  %v881_v30 = vadd.f32 %v849_v25, %v781_v21  ;;  %v1049_v17 = vmul.f32 %v1312_v49, %v2743_v46  ;;  %v948_v62 = vmul.f32 %v3103_v55, %v2738_v40  ;;  %v3150_v36 = vld [vmem:[#allocation2 + $0xe1] sm:$0xff] }
  0x79   : > { %v1048_v0 = vmul.f32 %v3118_v37, %v2743_v46  ;;  %v1280_v27 = vadd.f32 %v1248_v29, %v1180_v23  ;;  %v1179_v43 = vadd.f32 %v1147_v26, %v1078_v61  ;;  %v1149_v31 = vmul.f32 %v2746_v47, %v3146_v10 }
  0x7a   : > { %v780_v45 = vadd.f32 %v748_v5, %v680_v2  ;;  %v981_v16 = vadd.f32 %v949_v42, %v881_v30  ;;  %v1249_v32 = vmul.f32 %v2755_v51, %v3150_v36  ;;  %v378_v59 = vmul.f32 %v2677_v4, %v339_v14 }
  0x7b   : > { %v379_v38 = vmul.f32 %v2677_v4, %v340_v34  ;;  %v3156_v44 = vadd.f32 %v1348_v60, %v1280_v27  ;;  %v1279_v21 = vadd.f32 %v1247_v28, %v1179_v43  ;;  %v551_v26 = vmul.f32 %v1112_v1, %v2714_v18  ;;  %v3170_v34 = vld [vmem:[#allocation2 + $0xe2] sm:$0xff] }
  0x7c   : > { %v880_v25 = vadd.f32 %v848_v35, %v780_v45  ;;  %v1081_v5 = vadd.f32 %v1049_v17, %v981_v16  ;;  %v417_v29 = vadd.f32 %v2692_v6, %v378_v59  ;;  %v651_v42 = vmul.f32 %v1212_v48, %v2718_v22 }
  0x7d   : > { %v418_v23 = vadd.f32 %v2692_v6, %v379_v38  ;;  %1471 = vperm.xlu0 %2535, %v3156_v44   ;;  %v3163_v61 = vadd.f32 %v1347_v15, %v1279_v21  ;;  %v1114_v2 = vld [vmem:[#allocation2 + $0xf0] sm:$0xff]  ;;  %v751_v60 = vmul.f32 %v1312_v49, %v2721_v24  ;;  %v550_v28 = vmul.f32 %v3096_v39, %v2714_v18 }
  0x7e   : > { %v1214_v14 = vld [vmem:[#allocation2 + $0xf1] sm:$0xff]  ;;  %v980_v4 = vadd.f32 %v948_v62, %v880_v25  ;;  %v1150_v1 = vmul.f32 %v2746_v47, %v1114_v2  ;;  %v449_v6 = vmax.f32 %v417_v29, 0.0  ;;  %v1349_v17 = vmul.f32 %v2758_v52, %v3170_v34 }
  0x7f   : > { %v1250_v35 = vmul.f32 %v2755_v51, %v1214_v14  ;;  %v450_v48 = vmax.f32 %v418_v23, 0.0  ;;  %1466 = vperm.xlu1 %2536, %v3163_v61   ;;  %v1314_v15 = vld [vmem:[#allocation2 + $0xf2] sm:$0xff]  ;;  %v683_v49 = vadd.f32 %v651_v42, %v551_v26  ;;  %v851_v62 = vmul.f32 %v1114_v2, %v2734_v33 }
  0x80   : > { %v1080_v30 = vadd.f32 %v1048_v0, %v980_v4  ;;  %v1182_v39 = vadd.f32 %v1150_v1, %v1081_v5  ;;  %v1350_v27 = vmul.f32 %v2758_v52, %v1314_v15  ;;  %482 = vst.msk [vmem:[#allocation2 + $0x109] sm:$0xff] %vm263_vm0, %v449_v6  ;;  %v951_v43 = vmul.f32 %v1214_v14, %v2738_v40  ;;  %v341_v21 = vld [vmem:[%s2687_s7 + $0xb0] sm:$0xff]  ;;  %v3190_v23 = vld [vmem:[#allocation2 + $0xf8] sm:$0xff]  ;;  %v3206_v6 = vld [vmem:[%s4256_s3] ss:$0 sm:$0xff] }
  0x81   : > { %483 = vst.msk [vmem:[#allocation2 + $0x111] sm:$0xff] %vm263_vm0, %v450_v48  ;;  %v650_v45 = vmul.f32 %v3103_v55, %v2718_v22  ;;  %v783_v16 = vadd.f32 %v751_v60, %v683_v49  ;;  %v1051_v59 = vmul.f32 %v1314_v15, %v2743_v46  ;;  %v750_v38 = vmul.f32 %v3118_v37, %v2721_v24  ;;  %v342_v42 = vld [vmem:[%s2687_s7 + $0xb8] sm:$0xff] }
  0x82   : > { %v1181_v0 = vadd.f32 %v1149_v31, %v1080_v30  ;;  %v1282_v25 = vadd.f32 %v1250_v35, %v1182_v39  ;;  %v850_v5 = vmul.f32 %v3146_v10, %v2734_v33  ;;  %v950_v29 = vmul.f32 %v3150_v36, %v2738_v40  ;;  %v3197_v60 = vld [vmem:[#allocation2 + $0xf9] sm:$0xff] }
  0x83   : > { %v682_v26 = vadd.f32 %v650_v45, %v550_v28  ;;  %v883_v31 = vadd.f32 %v851_v62, %v783_v16  ;;  %v1050_v4 = vmul.f32 %v3170_v34, %v2743_v46  ;;  %v1151_v37 = vmul.f32 %v2746_v47, %v3190_v23 }
  0x84   : > { %v1281_v55 = vadd.f32 %v1249_v32, %v1181_v0  ;;  %v3199_v28 = vadd.f32 %v1350_v27, %v1282_v25  ;;  %v1251_v35 = vmul.f32 %v2755_v51, %v3197_v60  ;;  %v380_v32 = vmul.f32 %v3206_v6, %v341_v21  ;;  %v3217_v27 = vld [vmem:[%s4257_s4] ss:$0 sm:$0xff] }
  0x85   : > { %v782_v1 = vadd.f32 %v750_v38, %v682_v26  ;;  %v983_v30 = vadd.f32 %v951_v43, %v883_v31  ;;  %v381_v49 = vmul.f32 %v3206_v6, %v342_v42  ;;  %v553_v62 = vmul.f32 %v1114_v2, %v2714_v18  ;;  %v3223_v2 = vld [vmem:[#allocation2 + $0xfa] sm:$0xff] }
  0x86   : > { %v3209_v48 = vadd.f32 %v1349_v17, %v1281_v55  ;;  %1481 = vperm.xlu0 %2535, %v3199_v28   ;;  %v419_v45 = vadd.f32 %v3217_v27, %v380_v32  ;;  %v653_v0 = vmul.f32 %v1214_v14, %v2718_v22  ;;  %v753_v17 = vmul.f32 %v1314_v15, %v2721_v24 }
  0x87   : > { %v882_v39 = vadd.f32 %v850_v5, %v782_v1  ;;  %v1083_v43 = vadd.f32 %v1051_v59, %v983_v30  ;;  %v1116_v16 = vld [vmem:[#allocation2 + $0x108] sm:$0xff]  ;;  %v420_v21 = vadd.f32 %v3217_v27, %v381_v49  ;;  %v552_v25 = vmul.f32 %v3146_v10, %v2714_v18 }
  0x88   : > { %1476 = vperm.xlu1 %2536, %v3209_v48   ;;  %v1216_v38 = vld [vmem:[#allocation2 + $0x109] sm:$0xff]  ;;  %v652_v26 = vmul.f32 %v3150_v36, %v2718_v22  ;;  %v1152_v5 = vmul.f32 %v2746_v47, %v1116_v16  ;;  %v1351_v59 = vmul.f32 %v2758_v52, %v3223_v2  ;;  %v451_v55 = vmax.f32 %v419_v45, 0.0  ;;  %v3269_v9 = vld [vmem:[#allocation2 + $0x112] sm:$0xff] }
  0x89   : > { %v1252_v14 = vmul.f32 %v2755_v51, %v1216_v38  ;;  %v982_v15 = vadd.f32 %v950_v29, %v882_v39  ;;  %v1316_v42 = vld [vmem:[#allocation2 + $0x10a] sm:$0xff]  ;;  %v452_v31 = vmax.f32 %v420_v21, 0.0  ;;  %v685_v1 = vadd.f32 %v653_v0, %v553_v62  ;;  %v343_v0 = vld [vmem:[%s2687_s7 + $0xc0] sm:$0xff] }
  0x8a   : > { %v853_v32 = vmul.f32 %v1116_v16, %v2734_v33  ;;  %v1184_v30 = vadd.f32 %v1152_v5, %v1083_v43  ;;  %v1352_v10 = vmul.f32 %v2758_v52, %v1316_v42  ;;  %v953_v49 = vmul.f32 %v1216_v38, %v2738_v40  ;;  %484 = vst.msk [vmem:[#allocation2 + $0x121] sm:$0xff] %vm263_vm0, %v451_v55  ;;  %v344_v55 = vld [vmem:[%s2687_s7 + $0xc8] sm:$0xff] }
  0x8b   : > { %v1082_v36 = vadd.f32 %v1050_v4, %v982_v15  ;;  %485 = vst.msk [vmem:[#allocation2 + $0x129] sm:$0xff] %vm263_vm0, %v452_v31  ;;  %v785_v29 = vadd.f32 %v753_v17, %v685_v1  ;;  %v684_v39 = vadd.f32 %v652_v26, %v552_v25  ;;  %v752_v45 = vmul.f32 %v3170_v34, %v2721_v24  ;;  %v3247_v15 = vld [vmem:[#allocation2 + $0x110] sm:$0xff] }
  0x8c   : > { %v852_v62 = vmul.f32 %v3190_v23, %v2734_v33  ;;  %v1284_v43 = vadd.f32 %v1252_v14, %v1184_v30  ;;  %v1053_v5 = vmul.f32 %v1316_v42, %v2743_v46  ;;  %v952_v4 = vmul.f32 %v3197_v60, %v2738_v40  ;;  %v3254_v26 = vld [vmem:[#allocation2 + $0x111] sm:$0xff] }
  0x8d   : > { %v1183_v21 = vadd.f32 %v1151_v37, %v1082_v36  ;;  %v885_v31 = vadd.f32 %v853_v32, %v785_v29  ;;  %v784_v17 = vadd.f32 %v752_v45, %v684_v39  ;;  %v1052_v25 = vmul.f32 %v3223_v2, %v2743_v46 }
  0x8e   : > { %v1153_v34 = vmul.f32 %v2746_v47, %v3247_v15  ;;  %v3256_v14 = vadd.f32 %v1352_v10, %v1284_v43  ;;  %v1253_v1 = vmul.f32 %v2755_v51, %v3254_v26  ;;  %v382_v30 = vmul.f32 %v3206_v6, %v343_v0 }
  0x8f   : > { %v1283_v37 = vadd.f32 %v1251_v35, %v1183_v21  ;;  %v985_v36 = vadd.f32 %v953_v49, %v885_v31  ;;  %v884_v3 = vadd.f32 %v852_v62, %v784_v17  ;;  %v383_v32 = vmul.f32 %v3206_v6, %v344_v55 }
  0x90   : > { %4285 = vst [vmem:[#allocation7_spill] sm:$0xff] %v3256_v14  ;;  %v555_v29 = vmul.f32 %v1116_v16, %v2714_v18  ;;  %1491 = vperm.xlu0 %2535, %v3256_v14   ;;  %v421_v45 = vadd.f32 %v3217_v27, %v382_v30  ;;  %v655_v10 = vmul.f32 %v1216_v38, %v2718_v22 }
  0x91   : > { %v3264_v39 = vadd.f32 %v1351_v59, %v1283_v37  ;;  %v755_v35 = vmul.f32 %v1316_v42, %v2721_v24  ;;  %v1085_v43 = vadd.f32 %v1053_v5, %v985_v36  ;;  %v984_v21 = vadd.f32 %v952_v4, %v884_v3  ;;  %v1118_v16 = vld [vmem:[#allocation2 + $0x120] sm:$0xff] }
  0x92   : > { %v422_v49 = vadd.f32 %v3217_v27, %v383_v32  ;;  %v554_v62 = vmul.f32 %v3190_v23, %v2714_v18  ;;  %v1218_v59 = vld [vmem:[#allocation2 + $0x121] sm:$0xff]  ;;  %v1353_v0 = vmul.f32 %v2758_v52, %v3269_v9  ;;  %v453_v55 = vmax.f32 %v421_v45, 0.0 }
  0x93   : > { %1486 = vperm.xlu1 %2536, %v3264_v39   ;;  %v687_v38 = vadd.f32 %v655_v10, %v555_v29  ;;  %v654_v3 = vmul.f32 %v3197_v60, %v2718_v22  ;;  %v1154_v42 = vmul.f32 %v2746_v47, %v1118_v16  ;;  %v1254_v5 = vmul.f32 %v2755_v51, %v1218_v59  ;;  %v1318_v31 = vld [vmem:[#allocation2 + $0x122] sm:$0xff]  ;;  %v345_v10 = vld [vmem:[%s2687_s7 + $0xd0] sm:$0xff] }
  0x94   : > { %v1084_v4 = vadd.f32 %v1052_v25, %v984_v21  ;;  %v754_v23 = vmul.f32 %v3223_v2, %v2721_v24  ;;  %v454_v17 = vmax.f32 %v422_v49, 0.0  ;;  %486 = vst.msk [vmem:[#allocation2 + $0x139] sm:$0xff] %vm263_vm0, %v453_v55  ;;  %v855_v30 = vmul.f32 %v1118_v16, %v2734_v33  ;;  %v346_v49 = vld [vmem:[%s2687_s7 + $0xd8] sm:$0xff] }
  0x95   : > { %v787_v37 = vadd.f32 %v755_v35, %v687_v38  ;;  %v955_v36 = vmul.f32 %v1218_v59, %v2738_v40  ;;  %v1186_v32 = vadd.f32 %v1154_v42, %v1085_v43  ;;  %v1354_v60 = vmul.f32 %v2758_v52, %v1318_v31 }
  0x96   : > { %v1185_v29 = vadd.f32 %v1153_v34, %v1084_v4  ;;  %v686_v45 = vadd.f32 %v654_v3, %v554_v62  ;;  %487 = vst.msk [vmem:[#allocation2 + $0x141] sm:$0xff] %vm263_vm0, %v454_v17  ;;  %v1055_v2 = vmul.f32 %v1318_v31, %v2743_v46  ;;  %v854_v21 = vmul.f32 %v3247_v15, %v2734_v33  ;;  %v3297_v62 = vld [vmem:[#allocation2 + $0x128] sm:$0xff] }
  0x97   : > { %v887_v25 = vadd.f32 %v855_v30, %v787_v37  ;;  %v954_v35 = vmul.f32 %v3254_v26, %v2738_v40  ;;  %v1286_v55 = vadd.f32 %v1254_v5, %v1186_v32  ;;  %v1054_v34 = vmul.f32 %v3269_v9, %v2743_v46  ;;  %v3299_v3 = vld [vmem:[#allocation2 + $0x129] sm:$0xff] }
  0x98   : > { %v1285_v38 = vadd.f32 %v1253_v1, %v1185_v29  ;;  %v786_v43 = vadd.f32 %v754_v23, %v686_v45  ;;  %v1155_v4 = vmul.f32 %v2746_v47, %v3297_v62  ;;  %v1255_v17 = vmul.f32 %v2755_v51, %v3299_v3 }
  0x99   : > { %v987_v42 = vadd.f32 %v955_v36, %v887_v25  ;;  %v384_v37 = vmul.f32 %v3206_v6, %v345_v10  ;;  %v3306_v30 = vadd.f32 %v1354_v60, %v1286_v55  ;;  %v385_v23 = vmul.f32 %v3206_v6, %v346_v49  ;;  %v3320_v55 = vld [vmem:[#allocation2 + $0x12a] sm:$0xff] }
  0x9a   : > { %v3308_v1 = vadd.f32 %v1353_v0, %v1285_v38  ;;  %v886_v5 = vadd.f32 %v854_v21, %v786_v43  ;;  %v557_v36 = vmul.f32 %v1118_v16, %v2714_v18  ;;  %v657_v45 = vmul.f32 %v1218_v59, %v2718_v22 }
  0x9b   : > { %4286 = vst [vmem:[#allocation8_spill] sm:$0xff] %v3306_v30  ;;  %v1087_v32 = vadd.f32 %v1055_v2, %v987_v42  ;;  %v423_v29 = vadd.f32 %v3217_v27, %v384_v37  ;;  %1501 = vperm.xlu0 %2535, %v3306_v30   ;;  %v1120_v25 = vld [vmem:[#allocation2 + $0x138] sm:$0xff]  ;;  %v424_v0 = vadd.f32 %v3217_v27, %v385_v23 }
  0x9c   : > { %1496 = vperm.xlu1 %2536, %v3308_v1   ;;  %v1220_v10 = vld [vmem:[#allocation2 + $0x139] sm:$0xff]  ;;  %v986_v60 = vadd.f32 %v954_v35, %v886_v5  ;;  %v757_v21 = vmul.f32 %v1318_v31, %v2721_v24  ;;  %v1156_v49 = vmul.f32 %v2746_v47, %v1120_v25  ;;  %v689_v38 = vadd.f32 %v657_v45, %v557_v36 }
  0x9d   : > { %v1256_v2 = vmul.f32 %v2755_v51, %v1220_v10  ;;  %v455_v16 = vmax.f32 %v423_v29, 0.0  ;;  %v1320_v59 = vld [vmem:[#allocation2 + $0x13a] sm:$0xff]  ;;  %v1355_v42 = vmul.f32 %v2758_v52, %v3320_v55  ;;  %v456_v37 = vmax.f32 %v424_v0, 0.0 }
  0x9e   : > { %v1086_v43 = vadd.f32 %v1054_v34, %v986_v60  ;;  %v857_v35 = vmul.f32 %v1120_v25, %v2734_v33  ;;  %v1188_v5 = vadd.f32 %v1156_v49, %v1087_v32  ;;  %v1356_v31 = vmul.f32 %v2758_v52, %v1320_v59  ;;  %v347_v49 = vld [vmem:[%s2687_s7 + $0xe0] sm:$0xff] }
  0x9f   : > { %488 = vst.msk [vmem:[#allocation2 + $0x151] sm:$0xff] %vm263_vm0, %v455_v16  ;;  %v789_v23 = vadd.f32 %v757_v21, %v689_v38  ;;  %v957_v8 = vmul.f32 %v1220_v10, %v2738_v40  ;;  %489 = vst.msk [vmem:[#allocation2 + $0x159] sm:$0xff] %vm263_vm0, %v456_v37  ;;  %v556_v34 = vmul.f32 %v3247_v15, %v2714_v18  ;;  %v348_v21 = vld [vmem:[%s2687_s7 + $0xe8] sm:$0xff] }
  0xa0   : > { %v1187_v29 = vadd.f32 %v1155_v4, %v1086_v43  ;;  %v656_v36 = vmul.f32 %v3254_v26, %v2718_v22  ;;  %v756_v45 = vmul.f32 %v3269_v9, %v2721_v24  ;;  %v1288_v32 = vadd.f32 %v1256_v2, %v1188_v5  ;;  %v3342_v43 = vld [vmem:[#allocation2 + $0x140] sm:$0xff] }
  0xa1   : > { %v889_v60 = vadd.f32 %v857_v35, %v789_v23  ;;  %v1057_v0 = vmul.f32 %v1320_v59, %v2743_v46  ;;  %v856_v4 = vmul.f32 %v3297_v62, %v2734_v33  ;;  %v956_v15 = vmul.f32 %v3299_v3, %v2738_v40 }
  0xa2   : > { %v1287_v16 = vadd.f32 %v1255_v17, %v1187_v29  ;;  %v688_v38 = vadd.f32 %v656_v36, %v556_v34  ;;  %v3344_v26 = vadd.f32 %v1356_v31, %v1288_v32  ;;  %v1056_v9 = vmul.f32 %v3320_v55, %v2743_v46  ;;  %v3355_v34 = vld [vmem:[#allocation2 + $0x141] sm:$0xff] }
  0xa3   : > { %v989_v37 = vadd.f32 %v957_v8, %v889_v60  ;;  %v1157_v2 = vmul.f32 %v2746_v47, %v3342_v43  ;;  %v386_v5 = vmul.f32 %v3206_v6, %v347_v49  ;;  %v387_v23 = vmul.f32 %v3206_v6, %v348_v21 }
  0xa4   : > { %4287 = vst [vmem:[#allocation9_spill] sm:$0xff] %v3344_v26  ;;  %v3350_v35 = vadd.f32 %v1355_v42, %v1287_v16  ;;  %v788_v17 = vadd.f32 %v756_v45, %v688_v38  ;;  %1511 = vperm.xlu0 %2535, %v3344_v26   ;;  %v559_v8 = vmul.f32 %v1120_v25, %v2714_v18 }
  0xa5   : > { %v1089_v29 = vadd.f32 %v1057_v0, %v989_v37  ;;  %v659_v31 = vmul.f32 %v1220_v10, %v2718_v22  ;;  %v759_v36 = vmul.f32 %v1320_v59, %v2721_v24  ;;  %v1257_v60 = vmul.f32 %v2755_v51, %v3355_v34 }
  0xa6   : > { %1506 = vperm.xlu1 %2536, %v3350_v35   ;;  %v1122_v42 = vld [vmem:[#allocation2 + $0x150] sm:$0xff]  ;;  %v888_v45 = vadd.f32 %v856_v4, %v788_v17  ;;  %v425_v49 = vadd.f32 %v3217_v27, %v386_v5  ;;  %v426_v0 = vadd.f32 %v3217_v27, %v387_v23  ;;  %v558_v4 = vmul.f32 %v3297_v62, %v2714_v18  ;;  %v1321_v23 = vld [vmem:[#allocation2 + $0x142] sm:$0xff] }
  0xa7   : > { %v1222_v32 = vld [vmem:[#allocation2 + $0x151] sm:$0xff]  ;;  %v1158_v21 = vmul.f32 %v2746_v47, %v1122_v42  ;;  %v691_v16 = vadd.f32 %v659_v31, %v559_v8  ;;  %v859_v10 = vmul.f32 %v1122_v42, %v2734_v33  ;;  %v1357_v8 = vmul.f32 %v2758_v52, %v1321_v23 }
  0xa8   : > { %v1258_v25 = vmul.f32 %v2755_v51, %v1222_v32  ;;  %v1322_v59 = vld [vmem:[#allocation2 + $0x152] sm:$0xff]  ;;  %v988_v38 = vadd.f32 %v956_v15, %v888_v45  ;;  %v457_v37 = vmax.f32 %v425_v49, 0.0  ;;  %v458_v7 = vmax.f32 %v426_v0, 0.0 }
  0xa9   : > { %v1190_v17 = vadd.f32 %v1158_v21, %v1089_v29  ;;  %v1358_v5 = vmul.f32 %v2758_v52, %v1322_v59  ;;  %v791_v26 = vadd.f32 %v759_v36, %v691_v16  ;;  %v959_v30 = vmul.f32 %v1222_v32, %v2738_v40  ;;  %v349_v29 = vld [vmem:[%s2687_s7 + $0xf0] sm:$0xff]  ;;  %v350_v49 = vld [vmem:[%s2687_s7 + $0xf8] sm:$0xff] }
  0xaa   : > { %v1088_v14 = vadd.f32 %v1056_v9, %v988_v38  ;;  %490 = vst.msk [vmem:[#allocation2 + $0x169] sm:$0xff] %vm263_vm0, %v457_v37  ;;  %491 = vst.msk [vmem:[#allocation2 + $0x171] sm:$0xff] %vm263_vm0, %v458_v7  ;;  %v658_v15 = vmul.f32 %v3299_v3, %v2718_v22  ;;  %v758_v62 = vmul.f32 %v3320_v55, %v2721_v24  ;;  %v3387_v3 = vld [vmem:[#allocation2 + $0x158] sm:$0xff] }
  0xab   : > { %v1290_v31 = vadd.f32 %v1258_v25, %v1190_v17  ;;  %v891_v45 = vadd.f32 %v859_v10, %v791_v26  ;;  %v1059_v36 = vmul.f32 %v1322_v59, %v2743_v46  ;;  %v858_v9 = vmul.f32 %v3342_v43, %v2734_v33 }
  0xac   : > { %v1189_v0 = vadd.f32 %v1157_v2, %v1088_v14  ;;  %v690_v21 = vadd.f32 %v658_v15, %v558_v4  ;;  %v958_v7 = vmul.f32 %v3355_v34, %v2738_v40  ;;  %v1058_v16 = vmul.f32 %v1321_v23, %v2743_v46 }
  0xad   : > { %v3389_v38 = vadd.f32 %v1358_v5, %v1290_v31  ;;  %v991_v55 = vadd.f32 %v959_v30, %v891_v45  ;;  %v1159_v26 = vmul.f32 %v2746_v47, %v3387_v3  ;;  %v388_v25 = vmul.f32 %v3206_v6, %v349_v29  ;;  %v3402_v45 = vld [vmem:[#allocation2 + $0x159] sm:$0xff] }
  0xae   : > { %v1289_v10 = vadd.f32 %v1257_v60, %v1189_v0  ;;  %v790_v37 = vadd.f32 %v758_v62, %v690_v21  ;;  %v389_v14 = vmul.f32 %v3206_v6, %v350_v49  ;;  %v561_v2 = vmul.f32 %v1122_v42, %v2714_v18 }
  0xaf   : > { %4288 = vst [vmem:[#allocation10_spill] sm:$0xff] %v3389_v38  ;;  %1521 = vperm.xlu0 %2535, %v3389_v38   ;;  %v1091_v4 = vadd.f32 %v1059_v36, %v991_v55  ;;  %v427_v17 = vadd.f32 %v3217_v27, %v388_v25  ;;  %v661_v5 = vmul.f32 %v1222_v32, %v2718_v22 }
  0xb0   : > { %v761_v30 = vmul.f32 %v1322_v59, %v2721_v24  ;;  %v3400_v15 = vadd.f32 %v1357_v8, %v1289_v10  ;;  %v890_v31 = vadd.f32 %v858_v9, %v790_v37  ;;  %v428_v60 = vadd.f32 %v3217_v27, %v389_v14  ;;  %v1323_v14 = vld [vmem:[#allocation2 + $0x15a] sm:$0xff] }
  0xb1   : > { %v560_v6 = vmul.f32 %v3342_v43, %v2714_v18  ;;  %v1124_v42 = vld [vmem:[#allocation2 + $0x168] sm:$0xff]  ;;  %v1259_v29 = vmul.f32 %v2755_v51, %v3402_v45  ;;  %v459_v36 = vmax.f32 %v427_v17, 0.0  ;;  %v693_v49 = vadd.f32 %v661_v5, %v561_v2 }
  0xb2   : > { %v1224_v62 = vld [vmem:[#allocation2 + $0x169] sm:$0xff]  ;;  %v660_v32 = vmul.f32 %v3355_v34, %v2718_v22  ;;  %1516 = vperm.xlu1 %2536, %v3400_v15   ;;  %v1160_v59 = vmul.f32 %v2746_v47, %v1124_v42  ;;  %v990_v27 = vadd.f32 %v958_v7, %v890_v31  ;;  %v760_v9 = vmul.f32 %v1321_v23, %v2721_v24 }
  0xb3   : > { %v1260_v8 = vmul.f32 %v2755_v51, %v1224_v62  ;;  %v1324_v43 = vld [vmem:[#allocation2 + $0x16a] sm:$0xff]  ;;  %v460_v0 = vmax.f32 %v428_v60, 0.0  ;;  %492 = vst.msk [vmem:[#allocation2 + $0x181] sm:$0xff] %vm263_vm0, %v459_v36  ;;  %v793_v21 = vadd.f32 %v761_v30, %v693_v49  ;;  %v861_v55 = vmul.f32 %v1124_v42, %v2734_v33 }
  0xb4   : > { %v961_v25 = vmul.f32 %v1224_v62, %v2738_v40  ;;  %v1192_v10 = vadd.f32 %v1160_v59, %v1091_v4  ;;  %v1360_v34 = vmul.f32 %v2758_v52, %v1324_v43  ;;  %v1090_v37 = vadd.f32 %v1058_v16, %v990_v27  ;;  %v1125_v27 = vld [vmem:[#allocation2 + $0x170] sm:$0xff] }
  0xb5   : > { %v692_v2 = vadd.f32 %v660_v32, %v560_v6  ;;  %v1359_v17 = vmul.f32 %v2758_v52, %v1323_v14  ;;  %493 = vst.msk [vmem:[#allocation2 + $0x189] sm:$0xff] %vm263_vm0, %v460_v0  ;;  %v893_v23 = vadd.f32 %v861_v55, %v793_v21  ;;  %v1061_v7 = vmul.f32 %v1324_v43, %v2743_v46  ;;  %v1225_v0 = vld [vmem:[#allocation2 + $0x171] sm:$0xff] }
  0xb6   : > { %v860_v5 = vmul.f32 %v3387_v3, %v2734_v33  ;;  %v1292_v30 = vadd.f32 %v1260_v8, %v1192_v10  ;;  %v1191_v31 = vadd.f32 %v1159_v26, %v1090_v37  ;;  %v960_v4 = vmul.f32 %v3402_v45, %v2738_v40 }
  0xb7   : > { %v792_v60 = vadd.f32 %v760_v9, %v692_v2  ;;  %v993_v36 = vadd.f32 %v961_v25, %v893_v23  ;;  %v1060_v16 = vmul.f32 %v1323_v14, %v2743_v46  ;;  %v563_v6 = vmul.f32 %v1124_v42, %v2714_v18  ;;  %v1325_v9 = vld [vmem:[#allocation2 + $0x172] sm:$0xff] }
  0xb8   : > { %v3428_v49 = vadd.f32 %v1360_v34, %v1292_v30  ;;  %v1291_v32 = vadd.f32 %v1259_v29, %v1191_v31  ;;  %v663_v21 = vmul.f32 %v1224_v62, %v2718_v22  ;;  %v1161_v26 = vmul.f32 %v2746_v47, %v1125_v27  ;;  %v1128_v31 = vld [vmem:[#allocation2 + $0x198] sm:$0xff] }
  0xb9   : > { %v892_v59 = vadd.f32 %v860_v5, %v792_v60  ;;  %v1093_v55 = vadd.f32 %v1061_v7, %v993_v36  ;;  %v1261_v8 = vmul.f32 %v2755_v51, %v1225_v0  ;;  %v763_v25 = vmul.f32 %v1324_v43, %v2721_v24  ;;  %v1228_v60 = vld [vmem:[#allocation2 + $0x199] sm:$0xff] }
  0xba   : > { %4289 = vst [vmem:[#allocation11_spill] sm:$0xff] %v3428_v49  ;;  %1531 = vperm.xlu0 %2535, %v3428_v49   ;;  %v3435_v10 = vadd.f32 %v1359_v17, %v1291_v32  ;;  %v1126_v42 = vld [vmem:[#allocation2 + $0x180] sm:$0xff]  ;;  %v1361_v37 = vmul.f32 %v2758_v52, %v1325_v9  ;;  %v695_v2 = vadd.f32 %v663_v21, %v563_v6 }
  0xbb   : > { %v1226_v34 = vld [vmem:[#allocation2 + $0x181] sm:$0xff]  ;;  %v992_v29 = vadd.f32 %v960_v4, %v892_v59  ;;  %v1162_v62 = vmul.f32 %v2746_v47, %v1126_v42  ;;  %v863_v7 = vmul.f32 %v1126_v42, %v2734_v33  ;;  %v562_v4 = vmul.f32 %v3387_v3, %v2714_v18 }
  0xbc   : > { %4290 = vst [vmem:[#allocation12_spill] sm:$0xff] %v3435_v10  ;;  %v1262_v23 = vmul.f32 %v2755_v51, %v1226_v34  ;;  %v963_v5 = vmul.f32 %v1226_v34, %v2738_v40  ;;  %1526 = vperm.xlu1 %2536, %v3435_v10   ;;  %v1326_v43 = vld [vmem:[#allocation2 + $0x182] sm:$0xff]  ;;  %v795_v17 = vadd.f32 %v763_v25, %v695_v2 }
  0xbd   : > { %v1092_v30 = vadd.f32 %v1060_v16, %v992_v29  ;;  %v662_v36 = vmul.f32 %v3402_v45, %v2718_v22  ;;  %v1194_v6 = vadd.f32 %v1162_v62, %v1093_v55  ;;  %v1362_v32 = vmul.f32 %v2758_v52, %v1326_v43  ;;  %v1127_v62 = vld [vmem:[#allocation2 + $0x188] sm:$0xff] }
  0xbe   : > { %v1063_v59 = vmul.f32 %v1326_v43, %v2743_v46  ;;  %v762_v21 = vmul.f32 %v1323_v14, %v2721_v24  ;;  %v895_v34 = vadd.f32 %v863_v7, %v795_v17  ;;  %v862_v16 = vmul.f32 %v1125_v27, %v2734_v33  ;;  %v1328_v43 = vld [vmem:[#allocation2 + $0x19a] sm:$0xff] }
  0xbf   : > { %v1193_v42 = vadd.f32 %v1161_v26, %v1092_v30  ;;  %v694_v49 = vadd.f32 %v662_v36, %v562_v4  ;;  %v1294_v25 = vadd.f32 %v1262_v23, %v1194_v6  ;;  %v1164_v29 = vmul.f32 %v2746_v47, %v1128_v31  ;;  %v1227_v31 = vld [vmem:[#allocation2 + $0x189] sm:$0xff] }
  0xc0   : > { %v1264_v3 = vmul.f32 %v2755_v51, %v1228_v60  ;;  %v995_v38 = vadd.f32 %v963_v5, %v895_v34  ;;  %v962_v55 = vmul.f32 %v1225_v0, %v2738_v40  ;;  %v1062_v14 = vmul.f32 %v1325_v9, %v2743_v46 }
  0xc1   : > { %v1293_v2 = vadd.f32 %v1261_v8, %v1193_v42  ;;  %v794_v45 = vadd.f32 %v762_v21, %v694_v49  ;;  %v3454_v10 = vadd.f32 %v1362_v32, %v1294_v25  ;;  %v564_v26 = vmul.f32 %v1125_v27, %v2714_v18  ;;  %v1327_v27 = vld [vmem:[#allocation2 + $0x18a] sm:$0xff]  ;;  %v1229_v42 = vld [vmem:[#allocation2 + $0x1a1] sm:$0xff] }
  0xc2   : > { %v664_v7 = vmul.f32 %v1225_v0, %v2718_v22  ;;  %v1095_v30 = vadd.f32 %v1063_v59, %v995_v38  ;;  %v764_v8 = vmul.f32 %v1325_v9, %v2721_v24  ;;  %v864_v5 = vmul.f32 %v1127_v62, %v2734_v33  ;;  %v1129_v9 = vld [vmem:[#allocation2 + $0x1a0] sm:$0xff] }
  0xc3   : > { %v3459_v23 = vadd.f32 %v1361_v37, %v1293_v2  ;;  %v894_v17 = vadd.f32 %v862_v16, %v794_v45  ;;  %1541 = vperm.xlu0 %2535, %v3454_v10   ;;  %v1364_v4 = vmul.f32 %v2758_v52, %v1328_v43  ;;  %v1163_v22 = vmul.f32 %v2746_v47, %v1127_v62  ;;  %v1329_v25 = vld [vmem:[#allocation2 + $0x1a2] sm:$0xff] }
  0xc4   : > { %v696_v49 = vadd.f32 %v664_v7, %v564_v26  ;;  %v1196_v60 = vadd.f32 %v1164_v29, %v1095_v30  ;;  %v964_v38 = vmul.f32 %v1227_v31, %v2738_v40  ;;  %v1263_v24 = vmul.f32 %v2755_v51, %v1227_v31  ;;  %v4291_v26 = vld [vmem:[#allocation7_spill] sm:$0xff]  ;;  %v4292_v7 = vld [vmem:[#allocation12_spill] sm:$0xff] }
  0xc5   : > { %1536 = vperm.xlu1 %2536, %v3459_v23   ;;  %v994_v18 = vadd.f32 %v962_v55, %v894_v17  ;;  %v1064_v33 = vmul.f32 %v1327_v27, %v2743_v46  ;;  %v1363_v21 = vmul.f32 %v2758_v52, %v1327_v27  ;;  %v1165_v16 = vmul.f32 %v2746_v47, %v1129_v9  ;;  %v4293_v17 = vld [vmem:[#allocation8_spill] sm:$0xff] }
  0xc6   : > { %v796_v0 = vadd.f32 %v764_v8, %v696_v49  ;;  %v1296_v37 = vadd.f32 %v1264_v3, %v1196_v60  ;;  %v1265_v3 = vmul.f32 %v2755_v51, %v1229_v42  ;;  %v1365_v46 = vmul.f32 %v2758_v52, %v1329_v25  ;;  %v3498_v51 = vpop.permute.xlu0 %1401  ;;  %v3507_v43 = vpop.permute.xlu1 %1411  ;;  %v4294_v8 = vld [vmem:[#allocation9_spill] sm:$0xff]  ;;  %v4295_v60 = vld [vmem:[#allocation10_spill] sm:$0xff] }
  0xc7   : > { %v1094_v36 = vadd.f32 %v1062_v14, %v994_v18  ;;  %v2559_v55 = vmov 1   ;;  %v4296_v18 = vld [vmem:[#allocation11_spill] sm:$0xff]  ;;  %v4276_v27 = vmov 2  }
  0xc8   : > { %v896_v6 = vadd.f32 %v864_v5, %v796_v0  ;;  %v3470_v32 = vadd.f32 %v1364_v4, %v1296_v37 }
  0xc9   : > { %v1195_v59 = vadd.f32 %v1163_v22, %v1094_v36 }
  0xca   : > { %v996_v34 = vadd.f32 %v964_v38, %v896_v6  ;;  %1551 = vperm.xlu0 %2535, %v3470_v32   ;;  %v3503_v52 = vpop.permute.xlu0 %1406 }
  0xcb   : > { %v1295_v40 = vadd.f32 %v1263_v24, %v1195_v59 }
  0xcc   : > { %v1096_v29 = vadd.f32 %v1064_v33, %v996_v34 }
  0xcd   : > { %v3476_v2 = vadd.f32 %v1363_v21, %v1295_v40 }
  0xce   : > { %v1197_v45 = vadd.f32 %v1165_v16, %v1096_v29  ;;  %2537 = vset.pattern.permute.xlu0 %v2559_v55  ;;  %v3510_v14 = vpop.permute.xlu0 %1421 }
  0xcf   : > { %1546 = vperm.xlu1 %2536, %v3476_v2   ;;  %1628 = vperm.xlu0 %2537, %v2850_v12   ;;  %v3514_v30 = vpop.permute.xlu1 %1416 }
  0xd0   : > { %v1297_v62 = vadd.f32 %v1265_v3, %v1197_v45 }
  0xd2   : > { %v3481_v47 = vadd.f32 %v1365_v46, %v1297_v62 }
  0xd3   : > { %1640 = vperm.xlu0 %2537, %v2940_v13  }
  0xd4   : > { %1556 = vperm.xlu1 %2536, %v3481_v47   ;;  %v3517_v31 = vpop.permute.xlu0 %1431 }
  0xd7   : > { %1648 = vperm.xlu0 %2537, %v2983_v56  }
  0xd8   : > { %2538 = vset.pattern.permute.xlu1 %v2559_v55  ;;  %v3521_v49 = vpop.permute.xlu1 %1426  ;;  %v4278_v55 = vmov 3  }
  0xd9   : > { %1632 = vperm.xlu1 %2538, %v2860_v50  }
  0xdb   : > { %1656 = vperm.xlu0 %2537, %v3021_v20  }
  0xdd   : > { %1636 = vperm.xlu1 %2538, %v2881_v58   ;;  %v3524_v5 = vpop.permute.xlu0 %1441 }
  0xdf   : > { %1664 = vperm.xlu0 %2537, %v3071_v11   ;;  %v3528_v4 = vpop.permute.xlu1 %1436 }
  0xe1   : > { %1644 = vperm.xlu1 %2538, %v2904_v19  }
  0xe3   : > { %1672 = vperm.xlu0 %2537, %v3113_v53  }
  0xe5   : > { %1652 = vperm.xlu1 %2538, %v2968_v41  }
  0xe7   : > { %1680 = vperm.xlu0 %2537, %v3163_v61   ;;  %v3531_v22 = vpop.permute.xlu0 %1451 }
  0xe9   : > { %1660 = vperm.xlu1 %2538, %v3013_v63  }
  0xea   : > { %v3536_v0 = vpop.permute.xlu1 %1446 }
  0xeb   : > { %1688 = vperm.xlu0 %2537, %v3209_v48  }
  0xed   : > { %1668 = vperm.xlu1 %2538, %v3060_v57  }
  0xef   : > { %1696 = vperm.xlu0 %2537, %v3264_v39  }
  0xf1   : > { %1676 = vperm.xlu1 %2538, %v3105_v54   ;;  %v3538_v38 = vpop.permute.xlu0 %1461 }
  0xf3   : > { %1704 = vperm.xlu0 %2537, %v3308_v1  }
  0xf4   : > { %v3542_v37 = vpop.permute.xlu1 %1456 }
  0xf5   : > { %1684 = vperm.xlu1 %2538, %v3156_v44  }
  0xf7   : > { %1712 = vperm.xlu0 %2537, %v3350_v35  }
  0xf9   : > { %1692 = vperm.xlu1 %2538, %v3199_v28  }
  0xfb   : > { %1720 = vperm.xlu0 %2537, %v3400_v15  }
  0xfc   : > { %v3547_v36 = vpop.permute.xlu0 %1471 }
  0xfd   : > { %1700 = vperm.xlu1 %2538, %v4291_v26  }
  0xfe   : > { %v3551_v24 = vpop.permute.xlu1 %1466 }
  0xff   : > { %1728 = vperm.xlu0 %2537, %v4292_v7  }
 0x101   : > { %1708 = vperm.xlu1 %2538, %v4293_v17  }
 0x103   : > { %1736 = vperm.xlu0 %2537, %v3459_v23  }
 0x105   : > { %1716 = vperm.xlu1 %2538, %v4294_v8   ;;  %v3553_v9 = vpop.permute.xlu0 %1481 }
 0x107   : > { %1744 = vperm.xlu0 %2537, %v3476_v2   ;;  %v3557_v6 = vpop.permute.xlu1 %1476 }
 0x109   : > { %1724 = vperm.xlu1 %2538, %v4295_v60  }
 0x10b   : > { %1752 = vperm.xlu0 %2537, %v3481_v47  }
 0x10d   : > { %1732 = vperm.xlu1 %2538, %v4296_v18  }
 0x10f   : > { %2540 = vset.pattern.permute.xlu0 %v4276_v27  ;;  %v3561_v33 = vpop.permute.xlu0 %1491 }
 0x110   : > { %1828 = vperm.xlu0 %2540, %v2860_v50  }
 0x111   : > { %1740 = vperm.xlu1 %2538, %v3454_v10  }
 0x112   : > { %v3565_v59 = vpop.permute.xlu1 %1486 }
 0x114   : > { %1840 = vperm.xlu0 %2540, %v2904_v19  }
 0x115   : > { %1748 = vperm.xlu1 %2538, %v3470_v32  }
 0x118   : > { %1848 = vperm.xlu0 %2540, %v2968_v41  }
 0x119   : > { %2539 = vset.pattern.permute.xlu1 %v4276_v27 }
 0x11a   : > { %1824 = vperm.xlu1 %2539, %v2850_v12   ;;  %v3567_v21 = vpop.permute.xlu0 %1501 }
 0x11b   : > { %v3571_v42 = vpop.permute.xlu1 %1496 }
 0x11c   : > { %1856 = vperm.xlu0 %2540, %v3013_v63  }
 0x11e   : > { %1832 = vperm.xlu1 %2539, %v2881_v58  }
 0x120   : > { %1864 = vperm.xlu0 %2540, %v3060_v57  }
 0x122   : > { %1836 = vperm.xlu1 %2539, %v2940_v13  }
 0x123   : > { %v3575_v34 = vpop.permute.xlu0 %1511 }
 0x124   : > { %1872 = vperm.xlu0 %2540, %v3105_v54  }
 0x125   : > { %v3579_v16 = vpop.permute.xlu1 %1506 }
 0x126   : > { %1844 = vperm.xlu1 %2539, %v2983_v56  }
 0x128   : > { %1880 = vperm.xlu0 %2540, %v3156_v44  }
 0x12a   : > { %1852 = vperm.xlu1 %2539, %v3021_v20  }
 0x12c   : > { %1888 = vperm.xlu0 %2540, %v3199_v28  }
 0x12e   : > { %1860 = vperm.xlu1 %2539, %v3071_v11   ;;  %v3581_v40 = vpop.permute.xlu0 %1521 }
 0x130   : > { %1896 = vperm.xlu0 %2540, %v4291_v26  }
 0x131   : > { %v3585_v25 = vpop.permute.xlu1 %1516 }
 0x132   : > { %1868 = vperm.xlu1 %2539, %v3113_v53   ;;  %4297 = vst [vmem:[#allocation7_spill] sm:$0xff] %v3585_v25  ;;  %v4302_v25 = vmov 3  }
 0x134   : > { %1904 = vperm.xlu0 %2540, %v4293_v17  }
 0x136   : > { %1876 = vperm.xlu1 %2539, %v3163_v61  }
 0x138   : > { %1912 = vperm.xlu0 %2540, %v4294_v8  }
 0x139   : > { %v3589_v29 = vpop.permute.xlu0 %1531 }
 0x13a   : > { %1884 = vperm.xlu1 %2539, %v3209_v48  }
 0x13b   : > { %v3593_v3 = vpop.permute.xlu1 %1526 }
 0x13c   : > { %1920 = vperm.xlu0 %2540, %v4295_v60   ;;  %4298 = vst [vmem:[#allocation12_spill] sm:$0xff] %v3593_v3 }
 0x13e   : > { %1892 = vperm.xlu1 %2539, %v3264_v39  }
 0x140   : > { %1928 = vperm.xlu0 %2540, %v4296_v18  }
 0x142   : > { %1900 = vperm.xlu1 %2539, %v3308_v1   ;;  %v3595_v45 = vpop.permute.xlu0 %1541 }
 0x144   : > { %1936 = vperm.xlu0 %2540, %v3454_v10   ;;  %v3599_v46 = vpop.permute.xlu1 %1536 }
 0x145   : > { %4299 = vst [vmem:[#allocation8_spill] sm:$0xff] %v3599_v46 }
 0x146   : > { %1908 = vperm.xlu1 %2539, %v3350_v35  }
 0x148   : > { %2542 = vset.pattern.permute.xlu0 %v4278_v55 }
 0x149   : > { %v3603_v62 = vpop.permute.xlu0 %1551  ;;  %2020 = vperm.xlu0 %2542, %v2850_v12  }
 0x14a   : > { %1916 = vperm.xlu1 %2539, %v3400_v15  }
 0x14d   : > { %2032 = vperm.xlu0 %2542, %v2940_v13  }
 0x14e   : > { %1924 = vperm.xlu1 %2539, %v4292_v7   ;;  %v3607_v27 = vpop.permute.xlu1 %1546  ;;  %v3610_v3 = vpop.permute.xlu0 %1628 }
 0x14f   : > { %4300 = vst [vmem:[#allocation9_spill] sm:$0xff] %v3607_v27 }
 0x151   : > { %2040 = vperm.xlu0 %2542, %v2983_v56  }
 0x152   : > { %1932 = vperm.xlu1 %2539, %v3459_v23   ;;  %v3616_v55 = vpop.permute.xlu0 %1640 }
 0x153   : > { %v3614_v46 = vpop.permute.xlu1 %1556 }
 0x154   : > { %4301 = vst [vmem:[#allocation10_spill] sm:$0xff] %v3614_v46 }
 0x155   : > { %2048 = vperm.xlu0 %2542, %v3021_v20  }
 0x156   : > { %2541 = vset.pattern.permute.xlu1 %v4302_v25  ;;  %v3621_v12 = vpop.permute.xlu0 %1648 }
 0x157   : > { %2024 = vperm.xlu1 %2541, %v2860_v50  }
 0x158   : > { %v3623_v27 = vpop.permute.xlu1 %1632 }
 0x159   : > { %2056 = vperm.xlu0 %2542, %v3071_v11  }
 0x15a   : > { %v3627_v13 = vpop.permute.xlu0 %1656 }
 0x15b   : > { %2028 = vperm.xlu1 %2541, %v2881_v58  }
 0x15c   : > { %v3629_v56 = vpop.permute.xlu1 %1636 }
 0x15d   : > { %2064 = vperm.xlu0 %2542, %v3113_v53  }
 0x15e   : > { %v3633_v46 = vpop.permute.xlu0 %1664 }
 0x15f   : > { %2036 = vperm.xlu1 %2541, %v2904_v19  }
 0x160   : > { %v1645_v20 = vpop.permute.xlu1 %1644 }
 0x161   : > { %2072 = vperm.xlu0 %2542, %v3163_v61  }
 0x162   : > { %v3637_v50 = vpop.permute.xlu0 %1672 }
 0x163   : > { %2044 = vperm.xlu1 %2541, %v2968_v41   ;;  %4303 = vst [vmem:[#allocation11_spill] sm:$0xff] %v3637_v50 }
 0x164   : > { %v3639_v11 = vpop.permute.xlu1 %1652 }
 0x165   : > { %2080 = vperm.xlu0 %2542, %v3209_v48  }
 0x166   : > { %v3643_v58 = vpop.permute.xlu0 %1680 }
 0x167   : > { %2052 = vperm.xlu1 %2541, %v3013_v63   ;;  %4304 = vst [vmem:[#allocation13_spill] sm:$0xff] %v3643_v58 }
 0x168   : > { %v3645_v53 = vpop.permute.xlu1 %1660 }
 0x169   : > { %2088 = vperm.xlu0 %2542, %v3264_v39  }
 0x16a   : > { %v3649_v19 = vpop.permute.xlu0 %1688 }
 0x16b   : > { %2060 = vperm.xlu1 %2541, %v3060_v57   ;;  %4305 = vst [vmem:[#allocation14_spill] sm:$0xff] %v3649_v19 }
 0x16c   : > { %v3651_v61 = vpop.permute.xlu1 %1668 }
 0x16d   : > { %2096 = vperm.xlu0 %2542, %v3308_v1  }
 0x16e   : > { %v3655_v41 = vpop.permute.xlu0 %1696 }
 0x16f   : > { %2068 = vperm.xlu1 %2541, %v3105_v54   ;;  %4306 = vst [vmem:[#allocation15_spill] sm:$0xff] %v3655_v41 }
 0x170   : > { %v3657_v48 = vpop.permute.xlu1 %1676 }
 0x171   : > { %2104 = vperm.xlu0 %2542, %v3350_v35  }
 0x172   : > { %v3661_v63 = vpop.permute.xlu0 %1704 }
 0x173   : > { %2076 = vperm.xlu1 %2541, %v3156_v44   ;;  %4307 = vst [vmem:[#allocation16_spill] sm:$0xff] %v3661_v63 }
 0x174   : > { %v3663_v39 = vpop.permute.xlu1 %1684 }
 0x175   : > { %2112 = vperm.xlu0 %2542, %v3400_v15  }
 0x176   : > { %v3667_v57 = vpop.permute.xlu0 %1712 }
 0x177   : > { %2084 = vperm.xlu1 %2541, %v3199_v28   ;;  %4308 = vst [vmem:[#allocation17_spill] sm:$0xff] %v3667_v57  ;;  %v4311_v28 = vmov 2  }
 0x178   : > { %v3669_v1 = vpop.permute.xlu1 %1692 }
 0x179   : > { %2120 = vperm.xlu0 %2542, %v4292_v7  }
 0x17a   : > { %v3673_v54 = vpop.permute.xlu0 %1720 }
 0x17b   : > { %2092 = vperm.xlu1 %2541, %v4291_v26   ;;  %4309 = vst [vmem:[#allocation18_spill] sm:$0xff] %v3673_v54  ;;  %v3691_v26 = vld [vmem:[%s4255_s2] sm:$0xf] }
 0x17c   : > { %v3675_v35 = vpop.permute.xlu1 %1700  ;;  %v4314_v54 = vld [vmem:[#allocation5_spill] sm:$0xff] }
 0x17d   : > { %2132 = vperm.xlu0 %2542, %v3454_v10   ;;  %v3701_v57 = vrot.slane %v3691_v26, %v4314_v54 }
 0x17e   : > { %v3679_v44 = vpop.permute.xlu0 %1728 }
 0x17f   : > { %2100 = vperm.xlu1 %2541, %v4293_v17   ;;  %4310 = vst [vmem:[#allocation19_spill] sm:$0xff] %v3679_v44  ;;  %v4313_v17 = vld [vmem:[#allocation4_spill] sm:$0xff] }
 0x180   : > { %v3681_v15 = vpop.permute.xlu1 %1708  ;;  %v3697_v44 = vrot.slane %v3691_v26, %v4313_v17 }
 0x181   : > { %2545 = vset.pattern.permute.xlu0 %v4311_v28 }
 0x182   : > { %1948 = vperm.xlu0 %2545, %v3481_v47   ;;  %v3686_v7 = vpop.permute.xlu0 %1736  ;;  %v1587_v63 = vmul.f32 %v3697_v44, %v3581_v40 }
 0x183   : > { %2108 = vperm.xlu1 %2541, %v4294_v8   ;;  %4312 = vst [vmem:[#allocation20_spill] sm:$0xff] %v3686_v7 }
 0x184   : > { %v3693_v10 = vpop.permute.xlu1 %1716 }
 0x186   : > { %v3704_v8 = vpop.permute.xlu0 %1744  ;;  %2546 = vset.pattern.permute.xlu0 %v4302_v25 }
 0x187   : > { %2116 = vperm.xlu1 %2541, %v4295_v60   ;;  %4315 = vst [vmem:[#allocation4_spill] sm:$0xff] %v3704_v8  ;;  %v1589_v60 = vmul.f32 %v3697_v44, %v3589_v29 }
 0x188   : > { %v1725_v7 = vpop.permute.xlu1 %1724 }
 0x189   : > { %v1783_v41 = vmul.f32 %v3701_v57, %v1725_v7  ;;  %v1567_v7 = vmul.f32 %v3697_v44, %v3510_v14 }
 0x18a   : > { %v3713_v17 = vpop.permute.xlu0 %1752 }
 0x18b   : > { %v3710_v19 = vadd.f32 %v1783_v41, %v1587_v63  ;;  %2124 = vperm.xlu1 %2541, %v4296_v18   ;;  %4316 = vst [vmem:[#allocation5_spill] sm:$0xff] %v3713_v17  ;;  %v1591_v41 = vmul.f32 %v3697_v44, %v3595_v45  ;;  %v1763_v18 = vmul.f32 %v3701_v57, %v1645_v20 }
 0x18c   : > { %v1733_v54 = vpop.permute.xlu1 %1732 }
 0x18d   : > { %v1785_v8 = vmul.f32 %v3701_v57, %v1733_v54  ;;  %v1593_v54 = vmul.f32 %v3697_v44, %v3603_v62 }
 0x18f   : > { %v3718_v58 = vadd.f32 %v1785_v8, %v1589_v60  ;;  %2128 = vperm.xlu1 %2541, %v3459_v23   ;;  %v3721_v40 = vpop.permute.xlu0 %1828  ;;  %v4317_v8 = vld [vmem:[#allocation6_spill] sm:$0xff]  ;;  %v1795_v60 = vadd.f32 %v1763_v18, %v1567_v7  ;;  %v1767_v18 = vmul.f32 %v3701_v57, %v3645_v53 }
 0x190   : > { %v1741_v50 = vpop.permute.xlu1 %1740  ;;  %v3734_v23 = vrot.slane %v3691_v26, %v4317_v8 }
 0x191   : > { %v1787_v63 = vmul.f32 %v3701_v57, %v1741_v50  ;;  %v1765_v50 = vmul.f32 %v3701_v57, %v3639_v11 }
 0x193   : > { %v3729_v29 = vadd.f32 %v1787_v63, %v1591_v41  ;;  %2543 = vset.pattern.permute.xlu1 %v4311_v28  ;;  %v1841_v20 = vpop.permute.xlu0 %1840  ;;  %v1569_v28 = vmul.f32 %v3697_v44, %v3517_v31 }
 0x194   : > { %1940 = vperm.xlu1 %2543, %v3476_v2   ;;  %v1749_v45 = vpop.permute.xlu1 %1748  ;;  %v1959_v41 = vmul.f32 %v3734_v23, %v1841_v20 }
 0x195   : > { %v1789_v14 = vmul.f32 %v3701_v57, %v1749_v45  ;;  %v1797_v17 = vadd.f32 %v1765_v50, %v1569_v28  ;;  %v1571_v45 = vmul.f32 %v3697_v44, %v3524_v5 }
 0x196   : > { %v3747_v8 = vadd.f32 %v1959_v41, %v1795_v60  ;;  %v1769_v60 = vmul.f32 %v3701_v57, %v3651_v61  ;;  %v1575_v61 = vmul.f32 %v3697_v44, %v3538_v38 }
 0x197   : > { %v3745_v63 = vadd.f32 %v1789_v14, %v1593_v54  ;;  %v1849_v62 = vpop.permute.xlu0 %1848  ;;  %v1799_v54 = vadd.f32 %v1767_v18, %v1571_v45  ;;  %v1573_v14 = vmul.f32 %v3697_v44, %v3531_v22 }
 0x198   : > { %1944 = vperm.xlu1 %2543, %v3470_v32   ;;  %v1961_v11 = vmul.f32 %v3734_v23, %v1849_v62 }
 0x199   : > { %4318 = vst [vmem:[#allocation6_spill] sm:$0xff] %v3745_v63  ;;  %v3752_v7 = vpop.permute.xlu1 %1824 }
 0x19a   : > { %v3757_v20 = vadd.f32 %v1961_v11, %v1797_v17  ;;  %v1801_v17 = vadd.f32 %v1769_v60, %v1573_v14  ;;  %v1773_v11 = vmul.f32 %v3701_v57, %v3663_v39  ;;  %v1775_v60 = vmul.f32 %v3701_v57, %v3669_v1 }
 0x19b   : > { %v1857_v31 = vpop.permute.xlu0 %1856  ;;  %v1581_v1 = vmul.f32 %v3697_v44, %v3561_v33  ;;  %v1781_v33 = vmul.f32 %v3701_v57, %v3693_v10 }
 0x19c   : > { %2544 = vset.pattern.permute.xlu1 %v4302_v25  ;;  %v1963_v53 = vmul.f32 %v3734_v23, %v1857_v31  ;;  %v1771_v25 = vmul.f32 %v3701_v57, %v3657_v48  ;;  %v1577_v48 = vmul.f32 %v3697_v44, %v3547_v36  ;;  %v1777_v36 = vmul.f32 %v3701_v57, %v3675_v35 }
 0x19d   : > { %2136 = vperm.xlu1 %2544, %v3476_v2   ;;  %v3763_v50 = vpop.permute.xlu1 %1832  ;;  %v1583_v35 = vmul.f32 %v3697_v44, %v3567_v21 }
 0x19e   : > { %v3768_v41 = vadd.f32 %v1963_v53, %v1799_v54  ;;  %v1803_v22 = vadd.f32 %v1771_v25, %v1575_v61  ;;  %v1805_v38 = vadd.f32 %v1773_v11, %v1577_v48 }
 0x19f   : > { %v1865_v5 = vpop.permute.xlu0 %1864 }
 0x1a0   : > { %v1965_v2 = vmul.f32 %v3734_v23, %v1865_v5 }
 0x1a1   : > { %2140 = vperm.xlu1 %2544, %v3470_v32   ;;  %v3773_v28 = vpop.permute.xlu1 %1836 }
 0x1a2   : > { %v3778_v62 = vadd.f32 %v1965_v2, %v1801_v17 }
 0x1a3   : > { %v1873_v18 = vpop.permute.xlu0 %1872 }
 0x1a4   : > { %v1967_v32 = vmul.f32 %v3734_v23, %v1873_v18 }
 0x1a5   : > { %2144 = vperm.xlu1 %2544, %v3481_v47   ;;  %v3783_v45 = vpop.permute.xlu1 %1844  ;;  %v1579_v47 = vmul.f32 %v3697_v44, %v3553_v9  ;;  %v1779_v9 = vmul.f32 %v3701_v57, %v3681_v15  ;;  %v1585_v15 = vmul.f32 %v3697_v44, %v3575_v34 }
 0x1a6   : > { %v3788_v31 = vadd.f32 %v1967_v32, %v1803_v22  ;;  %v1809_v22 = vadd.f32 %v1777_v36, %v1581_v1 }
 0x1a7   : > { %v1881_v54 = vpop.permute.xlu0 %1880  ;;  %v1807_v17 = vadd.f32 %v1775_v60, %v1579_v47 }
 0x1a8   : > { %v1969_v39 = vmul.f32 %v3734_v23, %v1881_v54 }
 0x1a9   : > { %v3792_v53 = vpop.permute.xlu1 %1852 }
 0x1aa   : > { %v3797_v14 = vadd.f32 %v1969_v39, %v1805_v38  ;;  %v1811_v38 = vadd.f32 %v1779_v9, %v1583_v35  ;;  %v4319_v35 = vld [vmem:[#allocation3_spill] sm:$0xff] }
 0x1ab   : > { %v1889_v5 = vpop.permute.xlu0 %1888 }
 0x1ac   : > { %v1971_v2 = vmul.f32 %v3734_v23, %v1889_v5 }
 0x1ad   : > { %v3801_v25 = vpop.permute.xlu1 %1860 }
 0x1ae   : > { %v3806_v61 = vadd.f32 %v1971_v2, %v1807_v17  ;;  %v1813_v17 = vadd.f32 %v1781_v33, %v1585_v15  ;;  %v1759_v33 = vmul.f32 %v3701_v57, %v3610_v3 }
 0x1af   : > { %v1897_v18 = vpop.permute.xlu0 %1896 }
 0x1b0   : > { %v1973_v32 = vmul.f32 %v3734_v23, %v1897_v18 }
 0x1b1   : > { %v3810_v11 = vpop.permute.xlu1 %1868 }
 0x1b2   : > { %v3815_v48 = vadd.f32 %v1973_v32, %v1809_v22 }
 0x1b3   : > { %v1905_v54 = vpop.permute.xlu0 %1904 }
 0x1b4   : > { %v1975_v39 = vmul.f32 %v3734_v23, %v1905_v54  ;;  %v2149_v54 = vsub.s32 3, %v4319_v35 }
 0x1b5   : > { %v3819_v60 = vpop.permute.xlu1 %1876 }
 0x1b6   : > { %v3824_v47 = vadd.f32 %v1975_v39, %v1811_v38 }
 0x1b7   : > { %v1913_v5 = vpop.permute.xlu0 %1912 }
 0x1b8   : > { %v1977_v21 = vmul.f32 %v3734_v23, %v1913_v5  ;;  %v1955_v5 = vmul.f32 %v3734_v23, %v3752_v7 }
 0x1b9   : > { %v3826_v36 = vpop.permute.xlu1 %1884 }
 0x1ba   : > { %v3829_v2 = vadd.f32 %v1977_v21, %v1813_v17  ;;  %v3855_v17 = vrot.slane %v3691_v26, %v2149_v54  ;;  %v1764_v26 = vmul.f32 %v3701_v57, %v3621_v12  ;;  %v1568_v54 = vmul.f32 %v3697_v44, %v3521_v49 }
 0x1bb   : > { %v1921_v1 = vpop.permute.xlu0 %1920  ;;  %v1574_v49 = vmul.f32 %v3697_v44, %v3542_v37  ;;  %v1761_v37 = vmul.f32 %v3701_v57, %v3629_v56  ;;  %v4320_v56 = vld [vmem:[#allocation11_spill] sm:$0xff] }
 0x1bc   : > { %v1979_v10 = vmul.f32 %v3734_v23, %v1921_v1 }
 0x1bd   : > { %v3831_v18 = vpop.permute.xlu1 %1892 }
 0x1be   : > { %v3835_v22 = vadd.f32 %v1979_v10, %v3710_v19  ;;  %v1563_v19 = vmul.f32 %v3697_v44, %v3498_v51  ;;  %v1566_v10 = vmul.f32 %v3697_v44, %v3514_v30  ;;  %v1958_v51 = vmul.f32 %v3734_v23, %v3773_v28 }
 0x1bf   : > { %v1929_v9 = vpop.permute.xlu0 %1928  ;;  %v1564_v30 = vmul.f32 %v3697_v44, %v3503_v52  ;;  %v1570_v52 = vmul.f32 %v3697_v44, %v3528_v4  ;;  %v1580_v4 = vmul.f32 %v3697_v44, %v3565_v59  ;;  %v1768_v59 = vmul.f32 %v3701_v57, %v3633_v46 }
 0x1c0   : > { %v1981_v32 = vmul.f32 %v3734_v23, %v1929_v9  ;;  %v1791_v21 = vadd.f32 %v1759_v33, %v1563_v19  ;;  %v1960_v19 = vmul.f32 %v3734_v23, %v3783_v45  ;;  %v1576_v45 = vmul.f32 %v3697_v44, %v3551_v24 }
 0x1c1   : > { %v3837_v34 = vpop.permute.xlu1 %1900 }
 0x1c2   : > { %v3842_v38 = vadd.f32 %v1981_v32, %v3718_v58  ;;  %v1762_v58 = vmul.f32 %v3701_v57, %v3616_v55  ;;  %v1987_v9 = vadd.f32 %v1955_v5, %v1791_v21  ;;  %v1565_v5 = vmul.f32 %v3697_v44, %v3507_v43 }
 0x1c3   : > { %v3846_v39 = vpop.permute.xlu0 %1936  ;;  %v1572_v21 = vmul.f32 %v3697_v44, %v3536_v0  ;;  %v1578_v43 = vmul.f32 %v3697_v44, %v3557_v6  ;;  %v1760_v0 = vmul.f32 %v3701_v57, %v3623_v27  ;;  %v1584_v27 = vmul.f32 %v3697_v44, %v3579_v16  ;;  %v4323_v16 = vld [vmem:[#allocation12_spill] sm:$0xff] }
 0x1c4   : > { %v1794_v55 = vadd.f32 %v1762_v58, %v1566_v10  ;;  %v1796_v58 = vadd.f32 %v1764_v26, %v1568_v54  ;;  %v4321_v26 = vld [vmem:[#allocation7_spill] sm:$0xff]  ;;  %v4322_v54 = vld [vmem:[#allocation13_spill] sm:$0xff] }
 0x1c5   : > { %v3848_v15 = vpop.permute.xlu1 %1908  ;;  %v1792_v46 = vadd.f32 %v1760_v0, %v1564_v30 }
 0x1c6   : > { %v1990_v33 = vadd.f32 %v1958_v51, %v1794_v55  ;;  %v1992_v51 = vadd.f32 %v1960_v19, %v1796_v58  ;;  %v1770_v55 = vmul.f32 %v3701_v57, %v4320_v56  ;;  %v1793_v58 = vadd.f32 %v1761_v37, %v1565_v5 }
 0x1c8   : > { %v2021_v3 = vpop.permute.xlu0 %2020  ;;  %v1802_v30 = vadd.f32 %v1770_v55, %v1574_v49 }
 0x1c9   : > { %v3859_v1 = vpop.permute.xlu1 %1916  ;;  %v2151_v32 = vmul.f32 %v3855_v17, %v2021_v3  ;;  %v1766_v3 = vmul.f32 %v3701_v57, %v3627_v13  ;;  %v1582_v13 = vmul.f32 %v3697_v44, %v3571_v42  ;;  %v1956_v42 = vmul.f32 %v3734_v23, %v3721_v40 }
 0x1cb   : > { %v3875_v7 = vadd.f32 %v2151_v32, %v1987_v9  ;;  %v1962_v32 = vmul.f32 %v3734_v23, %v3792_v53  ;;  %v3931_v53 = vmul.f32 %v3697_v44, %v4321_v26  ;;  %v1957_v26 = vmul.f32 %v3734_v23, %v3763_v50 }
 0x1cc   : > { %v2033_v28 = vpop.permute.xlu0 %2032  ;;  %v1988_v5 = vadd.f32 %v1956_v42, %v1792_v46  ;;  %v1966_v42 = vmul.f32 %v3734_v23, %v3810_v11 }
 0x1cd   : > { %v3879_v35 = vpop.permute.xlu1 %1924  ;;  %2215 = vst.msk [vmem:[%s3871_s25] sm:$0xff] %vm263_vm0, %v3875_v7  ;;  %v2154_v12 = vmul.f32 %v3855_v17, %v2033_v28  ;;  %v1798_v28 = vadd.f32 %v1766_v3, %v1570_v52  ;;  %v1964_v52 = vmul.f32 %v3734_v23, %v3801_v25  ;;  %v1989_v55 = vadd.f32 %v1957_v26, %v1793_v58 }
 0x1cf   : > { %v3901_v10 = vadd.f32 %v2154_v12, %v1990_v33  ;;  %v1772_v33 = vmul.f32 %v3701_v57, %v4322_v54  ;;  %v3939_v12 = vmul.f32 %v3697_v44, %v4323_v16  ;;  %v1994_v63 = vadd.f32 %v1962_v32, %v1798_v28  ;;  %v4325_v54 = vld [vmem:[#allocation15_spill] sm:$0xff]  ;;  %v4326_v32 = vld [vmem:[#allocation16_spill] sm:$0xff] }
 0x1d0   : > { %v2041_v24 = vpop.permute.xlu0 %2040  ;;  %v1776_v50 = vmul.f32 %v3701_v57, %v4325_v54  ;;  %v1778_v25 = vmul.f32 %v3701_v57, %v4326_v32  ;;  %v1998_v54 = vadd.f32 %v1966_v42, %v1802_v30 }
 0x1d1   : > { %v3911_v9 = vpop.permute.xlu1 %1932  ;;  %2218 = vst.msk [vmem:[%s3871_s25 + $0x18] sm:$0xff] %vm263_vm0, %v3901_v10  ;;  %v2156_v6 = vmul.f32 %v3855_v17, %v2041_v24  ;;  %v4324_v24 = vld [vmem:[#allocation14_spill] sm:$0xff]  ;;  %v1804_v37 = vadd.f32 %v1772_v33, %v1576_v45 }
 0x1d2   : > { %v1774_v56 = vmul.f32 %v3701_v57, %v4324_v24  ;;  %v4327_v24 = vld [vmem:[#allocation17_spill] sm:$0xff]  ;;  %v3974_v26 = vadd.f32 %v1776_v50, %v1580_v4  ;;  %v3976_v11 = vadd.f32 %v1778_v25, %v1582_v13  ;;  %v2321_v4 = vmul.f32 %v3901_v10, %v3901_v10 }
 0x1d3   : > { %v3935_v19 = vadd.f32 %v2156_v6, %v1992_v51  ;;  %v1800_v6 = vadd.f32 %v1768_v59, %v1572_v21  ;;  %v2318_v21 = vmul.f32 %v3875_v7, %v3875_v7 }
 0x1d4   : > { %v2049_v40 = vpop.permute.xlu0 %2048  ;;  %v1806_v16 = vadd.f32 %v1774_v56, %v1578_v43  ;;  %v2247_v43 = vsel %vm263_vm0, %v3875_v7, 0.0 }
 0x1d5   : > { %2220 = vst.msk [vmem:[%s3871_s25 + $0x28] sm:$0xff] %vm263_vm0, %v3935_v19  ;;  %v2158_v51 = vmul.f32 %v3855_v17, %v2049_v40  ;;  %v1780_v40 = vmul.f32 %v3701_v57, %v4327_v24  ;;  %v1996_v45 = vadd.f32 %v1964_v52, %v1800_v6  ;;  %v2350_v7 = vsel %vm263_vm0, %v2318_v21, 0.0  ;;  %v4328_v21 = vld [vmem:[#allocation18_spill] sm:$0xff] }
 0x1d6   : > { %v2025_v3 = vpop.permute.xlu1 %2024 }
 0x1d7   : > { %v2152_v0 = vmul.f32 %v3855_v17, %v2025_v3  ;;  %v3956_v28 = vadd.f32 %v2158_v51, %v1994_v63  ;;  %v1968_v51 = vmul.f32 %v3734_v23, %v3819_v60  ;;  %v3990_v25 = vadd.f32 %v1780_v40, %v1584_v27 }
 0x1d8   : > { %v2057_v59 = vpop.permute.xlu0 %2056  ;;  %v2252_v40 = vsel %vm263_vm0, %v3901_v10, 0.0 }
 0x1d9   : > { %v2184_v49 = vadd.f32 %v2152_v0, %v1988_v5  ;;  %2222 = vst.msk [vmem:[%s3871_s25 + $0x38] sm:$0xff] %vm263_vm0, %v3956_v28  ;;  %v2160_v63 = vmul.f32 %v3855_v17, %v2057_v59  ;;  %v1970_v59 = vmul.f32 %v3734_v23, %v3826_v36  ;;  %v2000_v27 = vadd.f32 %v1968_v51, %v1804_v37 }
 0x1da   : > { %v2029_v33 = vpop.permute.xlu1 %2028 }
 0x1db   : > { %2216 = vst.msk [vmem:[%s3871_s25 + $0x8] sm:$0xff] %vm263_vm0, %v2184_v49  ;;  %v2248_v46 = vsel %vm263_vm0, %v2184_v49, 0.0  ;;  %v2319_v56 = vmul.f32 %v2184_v49, %v2184_v49  ;;  %v2153_v58 = vmul.f32 %v3855_v17, %v2029_v33  ;;  %v3978_v3 = vadd.f32 %v2160_v63, %v1996_v45 }
 0x1dc   : > { %v2249_v52 = vadd.f32 %v2248_v46, %v2247_v43  ;;  %v2065_v0 = vpop.permute.xlu0 %2064  ;;  %v1782_v49 = vmul.f32 %v3701_v57, %v4328_v21  ;;  %v2355_v43 = vsel %vm263_vm0, %v2321_v4, 0.0  ;;  %v2323_v46 = vmul.f32 %v3935_v19, %v3935_v19 }
 0x1dd   : > { %v2351_v6 = vsel %vm263_vm0, %v2319_v56, 0.0  ;;  %v2185_v5 = vadd.f32 %v2153_v58, %v1989_v55  ;;  %2224 = vst.msk [vmem:[%s3871_s25 + $0x48] sm:$0xff] %vm263_vm0, %v3978_v3  ;;  %v2162_v32 = vmul.f32 %v3855_v17, %v2065_v0  ;;  %v2002_v51 = vadd.f32 %v1970_v59, %v1806_v16 }
 0x1de   : > { %v2352_v50 = vadd.f32 %v2351_v6, %v2350_v7  ;;  %v2037_v13 = vpop.permute.xlu1 %2036  ;;  %v1972_v7 = vmul.f32 %v3734_v23, %v3831_v18  ;;  %v2256_v0 = vsel %vm263_vm0, %v3935_v19, 0.0  ;;  %v1974_v16 = vmul.f32 %v3734_v23, %v3837_v34 }
 0x1df   : > { %2217 = vst.msk [vmem:[%s3871_s25 + $0x10] sm:$0xff] %vm263_vm0, %v2185_v5  ;;  %v2250_v60 = vsel %vm263_vm0, %v2185_v5, 0.0  ;;  %v2320_v24 = vmul.f32 %v2185_v5, %v2185_v5  ;;  %v2155_v30 = vmul.f32 %v3855_v17, %v2037_v13  ;;  %v4000_v45 = vadd.f32 %v2162_v32, %v1998_v54 }
 0x1e0   : > { %v2251_v55 = vadd.f32 %v2250_v60, %v2249_v52  ;;  %v2073_v63 = vpop.permute.xlu0 %2072  ;;  %v2325_v19 = vmul.f32 %v3956_v28, %v3956_v28 }
 0x1e1   : > { %v2353_v42 = vsel %vm263_vm0, %v2320_v24, 0.0  ;;  %v2187_v33 = vadd.f32 %v2155_v30, %v3747_v8  ;;  %2226 = vst.msk [vmem:[%s3871_s25 + $0x58] sm:$0xff] %vm263_vm0, %v4000_v45  ;;  %v2164_v8 = vmul.f32 %v3855_v17, %v2073_v63  ;;  %v2359_v30 = vsel %vm263_vm0, %v2323_v46, 0.0 }
 0x1e2   : > { %v2354_v56 = vadd.f32 %v2353_v42, %v2352_v50  ;;  %v2253_v58 = vadd.f32 %v2252_v40, %v2251_v55  ;;  %v2045_v36 = vpop.permute.xlu1 %2044  ;;  %v1814_v40 = vadd.f32 %v1782_v49, %v3931_v53  ;;  %v4329_v42 = vld [vmem:[#allocation19_spill] sm:$0xff]  ;;  %v2260_v63 = vsel %vm263_vm0, %v3956_v28, 0.0 }
 0x1e3   : > { %2219 = vst.msk [vmem:[%s3871_s25 + $0x20] sm:$0xff] %vm263_vm0, %v2187_v33  ;;  %v2254_v10 = vsel %vm263_vm0, %v2187_v33, 0.0  ;;  %v2322_v37 = vmul.f32 %v2187_v33, %v2187_v33  ;;  %v2157_v52 = vmul.f32 %v3855_v17, %v2045_v36  ;;  %v4023_v50 = vadd.f32 %v2164_v8, %v2000_v27 }
 0x1e4   : > { %v2356_v6 = vadd.f32 %v2355_v43, %v2354_v56  ;;  %v2255_v5 = vadd.f32 %v2254_v10, %v2253_v58  ;;  %v2081_v13 = vpop.permute.xlu0 %2080  ;;  %v1784_v33 = vmul.f32 %v3701_v57, %v4329_v42  ;;  %v2004_v56 = vadd.f32 %v1972_v7, %v3974_v26 }
 0x1e5   : > { %v2357_v54 = vsel %vm263_vm0, %v2322_v37, 0.0  ;;  %v2189_v4 = vadd.f32 %v2157_v52, %v3757_v20  ;;  %v2166_v18 = vmul.f32 %v3855_v17, %v2081_v13  ;;  %2228 = vst.msk [vmem:[%s3871_s25 + $0x68] sm:$0xff] %vm263_vm0, %v4023_v50  ;;  %v2006_v49 = vadd.f32 %v1974_v16, %v3976_v11 }
 0x1e6   : > { %v2358_v32 = vadd.f32 %v2357_v54, %v2356_v6  ;;  %v2257_v60 = vadd.f32 %v2256_v0, %v2255_v5  ;;  %v2053_v24 = vpop.permute.xlu1 %2052  ;;  %v2363_v37 = vsel %vm263_vm0, %v2325_v19, 0.0  ;;  %v2327_v8 = vmul.f32 %v3978_v3, %v3978_v3 }
 0x1e7   : > { %2221 = vst.msk [vmem:[%s3871_s25 + $0x30] sm:$0xff] %vm263_vm0, %v2189_v4  ;;  %v2258_v20 = vsel %vm263_vm0, %v2189_v4, 0.0  ;;  %v2324_v21 = vmul.f32 %v2189_v4, %v2189_v4  ;;  %v2159_v55 = vmul.f32 %v3855_v17, %v2053_v24  ;;  %v4038_v27 = vadd.f32 %v2166_v18, %v2002_v51 }
 0x1e8   : > { %v2360_v34 = vadd.f32 %v2359_v30, %v2358_v32  ;;  %v2259_v59 = vadd.f32 %v2258_v20, %v2257_v60  ;;  %v2089_v46 = vpop.permute.xlu0 %2088  ;;  %v1976_v11 = vmul.f32 %v3734_v23, %v3848_v15  ;;  %v1978_v54 = vmul.f32 %v3734_v23, %v3859_v1 }
 0x1e9   : > { %v2361_v43 = vsel %vm263_vm0, %v2324_v21, 0.0  ;;  %v2191_v10 = vadd.f32 %v2159_v55, %v3768_v41  ;;  %2230 = vst.msk [vmem:[%s3871_s25 + $0x78] sm:$0xff] %vm263_vm0, %v4038_v27  ;;  %v2168_v28 = vmul.f32 %v3855_v17, %v2089_v46  ;;  %v2264_v4 = vsel %vm263_vm0, %v3978_v3, 0.0 }
 0x1ea   : > { %v2362_v58 = vadd.f32 %v2361_v43, %v2360_v34  ;;  %v2261_v36 = vadd.f32 %v2260_v63, %v2259_v59  ;;  %v2061_v53 = vpop.permute.xlu1 %2060  ;;  %v2367_v1 = vsel %vm263_vm0, %v2327_v8, 0.0  ;;  %v2329_v3 = vmul.f32 %v4000_v45, %v4000_v45 }
 0x1eb   : > { %v2161_v52 = vmul.f32 %v3855_v17, %v2061_v53  ;;  %2223 = vst.msk [vmem:[%s3871_s25 + $0x40] sm:$0xff] %vm263_vm0, %v2191_v10  ;;  %v2262_v41 = vsel %vm263_vm0, %v2191_v10, 0.0  ;;  %v2326_v51 = vmul.f32 %v2191_v10, %v2191_v10  ;;  %v4063_v5 = vadd.f32 %v2168_v28, %v2004_v56 }
 0x1ec   : > { %v2364_v26 = vadd.f32 %v2363_v37, %v2362_v58  ;;  %v2263_v7 = vadd.f32 %v2262_v41, %v2261_v36  ;;  %v2097_v0 = vpop.permute.xlu0 %2096  ;;  %v1816_v19 = vadd.f32 %v1784_v33, %v3939_v12  ;;  %v2008_v55 = vadd.f32 %v1976_v11, %v3990_v25 }
 0x1ed   : > { %v2193_v6 = vadd.f32 %v2161_v52, %v3778_v62  ;;  %v2365_v13 = vsel %vm263_vm0, %v2326_v51, 0.0  ;;  %v2170_v32 = vmul.f32 %v3855_v17, %v2097_v0  ;;  %2232 = vst.msk [vmem:[%s3871_s25 + $0x88] sm:$0xff] %vm263_vm0, %v4063_v5  ;;  %v2010_v42 = vadd.f32 %v1978_v54, %v1814_v40 }
 0x1ee   : > { %v2069_v16 = vpop.permute.xlu1 %2068  ;;  %v2366_v60 = vadd.f32 %v2365_v13, %v2364_v26  ;;  %v2265_v24 = vadd.f32 %v2264_v4, %v2263_v7  ;;  %v2268_v63 = vsel %vm263_vm0, %v4000_v45, 0.0  ;;  %v2371_v36 = vsel %vm263_vm0, %v2329_v3, 0.0 }
 0x1ef   : > { %2225 = vst.msk [vmem:[%s3871_s25 + $0x50] sm:$0xff] %vm263_vm0, %v2193_v6  ;;  %v2266_v62 = vsel %vm263_vm0, %v2193_v6, 0.0  ;;  %v2328_v15 = vmul.f32 %v2193_v6, %v2193_v6  ;;  %v2163_v18 = vmul.f32 %v3855_v17, %v2069_v16  ;;  %v4081_v30 = vadd.f32 %v2170_v32, %v2006_v49 }
 0x1f0   : > { %v2368_v20 = vadd.f32 %v2367_v1, %v2366_v60  ;;  %v2267_v21 = vadd.f32 %v2266_v62, %v2265_v24  ;;  %v2105_v59 = vpop.permute.xlu0 %2104  ;;  %v2331_v25 = vmul.f32 %v4023_v50, %v4023_v50  ;;  %v1980_v52 = vmul.f32 %v3734_v23, %v3879_v35 }
 0x1f1   : > { %v2369_v34 = vsel %vm263_vm0, %v2328_v15, 0.0  ;;  %v2195_v43 = vadd.f32 %v2163_v18, %v3788_v31  ;;  %2234 = vst.msk [vmem:[%s3871_s25 + $0x98] sm:$0xff] %vm263_vm0, %v4081_v30  ;;  %v2172_v58 = vmul.f32 %v3855_v17, %v2105_v59  ;;  %v2272_v28 = vsel %vm263_vm0, %v4023_v50, 0.0 }
 0x1f2   : > { %v2077_v46 = vpop.permute.xlu1 %2076  ;;  %v2370_v56 = vadd.f32 %v2369_v34, %v2368_v20  ;;  %v2269_v12 = vadd.f32 %v2268_v63, %v2267_v21  ;;  %v2375_v35 = vsel %vm263_vm0, %v2331_v25, 0.0  ;;  %v2333_v50 = vmul.f32 %v4038_v27, %v4038_v27 }
 0x1f3   : > { %v2165_v33 = vmul.f32 %v3855_v17, %v2077_v46  ;;  %2227 = vst.msk [vmem:[%s3871_s25 + $0x60] sm:$0xff] %vm263_vm0, %v2195_v43  ;;  %v2270_v31 = vsel %vm263_vm0, %v2195_v43, 0.0  ;;  %v2330_v45 = vmul.f32 %v2195_v43, %v2195_v43  ;;  %v4101_v49 = vadd.f32 %v2172_v58, %v2008_v55 }
 0x1f4   : > { %v2372_v40 = vadd.f32 %v2371_v36, %v2370_v56  ;;  %v2271_v10 = vadd.f32 %v2270_v31, %v2269_v12  ;;  %v2113_v37 = vpop.permute.xlu0 %2112  ;;  %v1983_v32 = vmul.f32 %v3734_v23, %v3846_v39  ;;  %v2012_v60 = vadd.f32 %v1980_v52, %v1816_v19 }
 0x1f5   : > { %v2197_v53 = vadd.f32 %v2165_v33, %v3797_v14  ;;  %v2373_v8 = vsel %vm263_vm0, %v2330_v45, 0.0  ;;  %v2174_v41 = vmul.f32 %v3855_v17, %v2113_v37  ;;  %2236 = vst.msk [vmem:[%s3871_s25 + $0xa8] sm:$0xff] %vm263_vm0, %v4101_v49  ;;  %v2276_v24 = vsel %vm263_vm0, %v4038_v27, 0.0 }
 0x1f6   : > { %v2085_v26 = vpop.permute.xlu1 %2084  ;;  %v2374_v51 = vadd.f32 %v2373_v8, %v2372_v40  ;;  %v2273_v11 = vadd.f32 %v2272_v28, %v2271_v10  ;;  %v2379_v21 = vsel %vm263_vm0, %v2333_v50, 0.0  ;;  %v2335_v39 = vmul.f32 %v4063_v5, %v4063_v5 }
 0x1f7   : > { %2229 = vst.msk [vmem:[%s3871_s25 + $0x70] sm:$0xff] %vm263_vm0, %v2197_v53  ;;  %v2274_v14 = vsel %vm263_vm0, %v2197_v53, 0.0  ;;  %v2332_v7 = vmul.f32 %v2197_v53, %v2197_v53  ;;  %v2167_v6 = vmul.f32 %v3855_v17, %v2085_v26  ;;  %v4119_v0 = vadd.f32 %v2174_v41, %v2010_v42 }
 0x1f8   : > { %v2376_v54 = vadd.f32 %v2375_v35, %v2374_v51  ;;  %v2275_v4 = vadd.f32 %v2274_v14, %v2273_v11  ;;  %v2121_v16 = vpop.permute.xlu0 %2120  ;;  %v2015_v63 = vadd.f32 %v1983_v32, %v3729_v29  ;;  %v2280_v43 = vsel %vm263_vm0, %v4063_v5, 0.0 }
 0x1f9   : > { %v2377_v13 = vsel %vm263_vm0, %v2332_v7, 0.0  ;;  %v2199_v62 = vadd.f32 %v2167_v6, %v3806_v61  ;;  %2238 = vst.msk [vmem:[%s3871_s25 + $0xb8] sm:$0xff] %vm263_vm0, %v4119_v0  ;;  %v2176_v20 = vmul.f32 %v3855_v17, %v2121_v16  ;;  %v2383_v29 = vsel %vm263_vm0, %v2335_v39, 0.0 }
 0x1fa   : > { %v2093_v15 = vpop.permute.xlu1 %2092  ;;  %v2378_v1 = vadd.f32 %v2377_v13, %v2376_v54  ;;  %v2277_v3 = vadd.f32 %v2276_v24, %v2275_v4  ;;  %v2337_v5 = vmul.f32 %v4081_v30, %v4081_v30  ;;  %v2284_v53 = vsel %vm263_vm0, %v4081_v30, 0.0 }
 0x1fb   : > { %v2169_v18 = vmul.f32 %v3855_v17, %v2093_v15  ;;  %2231 = vst.msk [vmem:[%s3871_s25 + $0x80] sm:$0xff] %vm263_vm0, %v2199_v62  ;;  %v2278_v61 = vsel %vm263_vm0, %v2199_v62, 0.0  ;;  %v2334_v27 = vmul.f32 %v2199_v62, %v2199_v62  ;;  %v4139_v55 = vadd.f32 %v2176_v20, %v2012_v60  ;;  %v4330_v15 = vld [vmem:[#allocation8_spill] sm:$0xff] }
 0x1fc   : > { %v2380_v19 = vadd.f32 %v2379_v21, %v2378_v1  ;;  %v2279_v34 = vadd.f32 %v2278_v61, %v2277_v3  ;;  %v2133_v42 = vpop.permute.xlu0 %2132  ;;  %v2387_v41 = vsel %vm263_vm0, %v2337_v5, 0.0  ;;  %v2339_v51 = vmul.f32 %v4101_v49, %v4101_v49  ;;  %v4331_v3 = vld [vmem:[#allocation20_spill] sm:$0xff] }
 0x1fd   : > { %v2201_v59 = vadd.f32 %v2169_v18, %v3815_v48  ;;  %v2381_v46 = vsel %vm263_vm0, %v2334_v27, 0.0  ;;  %v2179_v12 = vmul.f32 %v3855_v17, %v2133_v42  ;;  %2240 = vst.msk [vmem:[%s3871_s25 + $0xc8] sm:$0xff] %vm263_vm0, %v4139_v55  ;;  %v2288_v35 = vsel %vm263_vm0, %v4101_v49, 0.0 }
 0x1fe   : > { %v2101_v56 = vpop.permute.xlu1 %2100  ;;  %v2382_v33 = vadd.f32 %v2381_v46, %v2380_v19  ;;  %v2281_v58 = vadd.f32 %v2280_v43, %v2279_v34  ;;  %v2391_v32 = vsel %vm263_vm0, %v2339_v51, 0.0  ;;  %v2341_v60 = vmul.f32 %v4119_v0, %v4119_v0 }
 0x1ff   : > { %2233 = vst.msk [vmem:[%s3871_s25 + $0x90] sm:$0xff] %vm263_vm0, %v2201_v59  ;;  %v2282_v48 = vsel %vm263_vm0, %v2201_v59, 0.0  ;;  %v2336_v36 = vmul.f32 %v2201_v59, %v2201_v59  ;;  %v2171_v25 = vmul.f32 %v3855_v17, %v2101_v56  ;;  %v4156_v31 = vadd.f32 %v2179_v12, %v2015_v63 }
 0x200   : > { %v2384_v45 = vadd.f32 %v2383_v29, %v2382_v33  ;;  %v2283_v40 = vadd.f32 %v2282_v48, %v2281_v58  ;;  %v1590_v1 = vmul.f32 %v3697_v44, %v4330_v15  ;;  %v1786_v18 = vmul.f32 %v3701_v57, %v4331_v3  ;;  %v4335_v15 = vld [vmem:[#allocation10_spill] sm:$0xff] }
 0x201   : > { %v2385_v10 = vsel %vm263_vm0, %v2336_v36, 0.0  ;;  %v2203_v37 = vadd.f32 %v2171_v25, %v3824_v47  ;;  %2243 = vst.msk [vmem:[%s3871_s25 + $0xe0] sm:$0xff] %vm263_vm0, %v4156_v31  ;;  %v2292_v20 = vsel %vm263_vm0, %v4119_v0, 0.0  ;;  %v1982_v61 = vmul.f32 %v3734_v23, %v3911_v9 }
 0x202   : > { %v2109_v52 = vpop.permute.xlu1 %2108  ;;  %v2386_v28 = vadd.f32 %v2385_v10, %v2384_v45  ;;  %v2285_v8 = vadd.f32 %v2284_v53, %v2283_v40  ;;  %v2395_v59 = vsel %vm263_vm0, %v2341_v60, 0.0  ;;  %v2343_v42 = vmul.f32 %v4139_v55, %v4139_v55 }
 0x203   : > { %v2173_v26 = vmul.f32 %v3855_v17, %v2109_v52  ;;  %2235 = vst.msk [vmem:[%s3871_s25 + $0xa0] sm:$0xff] %vm263_vm0, %v2203_v37  ;;  %v2286_v30 = vsel %vm263_vm0, %v2203_v37, 0.0  ;;  %v2338_v11 = vmul.f32 %v2203_v37, %v2203_v37  ;;  %v1818_v9 = vadd.f32 %v1786_v18, %v1590_v1 }
 0x204   : > { %v2388_v47 = vadd.f32 %v2387_v41, %v2386_v28  ;;  %v2287_v14 = vadd.f32 %v2286_v30, %v2285_v8  ;;  %v2296_v56 = vsel %vm263_vm0, %v4139_v55, 0.0  ;;  %v2399_v25 = vsel %vm263_vm0, %v2343_v42, 0.0  ;;  %v4332_v30 = vld [vmem:[#allocation4_spill] sm:$0xff] }
 0x205   : > { %v2205_v7 = vadd.f32 %v2173_v26, %v3829_v2  ;;  %v2389_v50 = vsel %vm263_vm0, %v2338_v11, 0.0  ;;  %v2014_v5 = vadd.f32 %v1982_v61, %v1818_v9  ;;  %v2346_v52 = vmul.f32 %v4156_v31, %v4156_v31 }
 0x206   : > { %v2117_v6 = vpop.permute.xlu1 %2116  ;;  %v2390_v54 = vadd.f32 %v2389_v50, %v2388_v47  ;;  %v2289_v4 = vadd.f32 %v2288_v35, %v2287_v14  ;;  %v2302_v41 = vsel %vm263_vm0, %v4156_v31, 0.0  ;;  %v1788_v11 = vmul.f32 %v3701_v57, %v4332_v30  ;;  %v4333_v50 = vld [vmem:[#allocation9_spill] sm:$0xff]  ;;  %v1949_v31 = vpop.permute.xlu0 %1948 }
 0x207   : > { %2237 = vst.msk [vmem:[%s3871_s25 + $0xb0] sm:$0xff] %vm263_vm0, %v2205_v7  ;;  %v2290_v13 = vsel %vm263_vm0, %v2205_v7, 0.0  ;;  %v2340_v16 = vmul.f32 %v2205_v7, %v2205_v7  ;;  %v2175_v2 = vmul.f32 %v3855_v17, %v2117_v6  ;;  %v2405_v35 = vsel %vm263_vm0, %v2346_v52, 0.0 }
 0x208   : > { %v2392_v24 = vadd.f32 %v2391_v32, %v2390_v54  ;;  %v2291_v49 = vadd.f32 %v2290_v13, %v2289_v4  ;;  %v1592_v6 = vmul.f32 %v3697_v44, %v4333_v50  ;;  %v1594_v1 = vmul.f32 %v3697_v44, %v4335_v15 }
 0x209   : > { %v2393_v62 = vsel %vm263_vm0, %v2340_v16, 0.0  ;;  %v2207_v21 = vadd.f32 %v2175_v2, %v3835_v22  ;;  %v1986_v3 = vmul.f32 %v3734_v23, %v1949_v31 }
 0x20a   : > { %v2125_v39 = vpop.permute.xlu1 %2124  ;;  %v2394_v27 = vadd.f32 %v2393_v62, %v2392_v24  ;;  %v2293_v19 = vadd.f32 %v2292_v20, %v2291_v49  ;;  %v1820_v13 = vadd.f32 %v1788_v11, %v1592_v6  ;;  %v4334_v24 = vld [vmem:[#allocation5_spill] sm:$0xff]  ;;  %v4336_v20 = vld [vmem:[#allocation6_spill] sm:$0xff] }
 0x20b   : > { %v2177_v34 = vmul.f32 %v3855_v17, %v2125_v39  ;;  %2239 = vst.msk [vmem:[%s3871_s25 + $0xc0] sm:$0xff] %vm263_vm0, %v2207_v21  ;;  %v2294_v0 = vsel %vm263_vm0, %v2207_v21, 0.0  ;;  %v2342_v63 = vmul.f32 %v2207_v21, %v2207_v21  ;;  %v1790_v49 = vmul.f32 %v3701_v57, %v4334_v24 }
 0x20c   : > { %v2396_v22 = vadd.f32 %v2395_v59, %v2394_v27  ;;  %v2295_v43 = vadd.f32 %v2294_v0, %v2293_v19 }
 0x20d   : > { %v2209_v46 = vadd.f32 %v2177_v34, %v3842_v38  ;;  %v2397_v12 = vsel %vm263_vm0, %v2342_v63, 0.0  ;;  %v1822_v57 = vadd.f32 %v1790_v49, %v1594_v1 }
 0x20e   : > { %v2129_v33 = vpop.permute.xlu1 %2128  ;;  %v2398_v58 = vadd.f32 %v2397_v12, %v2396_v22  ;;  %v2297_v48 = vadd.f32 %v2296_v56, %v2295_v43 }
 0x20f   : > { %2241 = vst.msk [vmem:[%s3871_s25 + $0xd0] sm:$0xff] %vm263_vm0, %v2209_v46  ;;  %v2298_v36 = vsel %vm263_vm0, %v2209_v46, 0.0  ;;  %v2344_v29 = vmul.f32 %v2209_v46, %v2209_v46  ;;  %v2178_v38 = vmul.f32 %v3855_v17, %v2129_v33  ;;  %v2018_v0 = vadd.f32 %v1986_v3, %v1822_v57 }
 0x210   : > { %v2400_v45 = vadd.f32 %v2399_v25, %v2398_v58  ;;  %v2299_v40 = vadd.f32 %v2298_v36, %v2297_v48 }
 0x211   : > { %v2401_v55 = vsel %vm263_vm0, %v2344_v29, 0.0  ;;  %v2210_v10 = vadd.f32 %v2178_v38, %v2014_v5 }
 0x212   : > { %v2402_v53 = vadd.f32 %v2401_v55, %v2400_v45 }
 0x213   : > { %v1941_v37 = vpop.permute.xlu1 %1940  ;;  %2242 = vst.msk [vmem:[%s3871_s25 + $0xd8] sm:$0xff] %vm263_vm0, %v2210_v10  ;;  %v2300_v28 = vsel %vm263_vm0, %v2210_v10, 0.0  ;;  %v2345_v8 = vmul.f32 %v2210_v10, %v2210_v10 }
 0x214   : > { %v2301_v26 = vadd.f32 %v2300_v28, %v2299_v40  ;;  %v1984_v54 = vmul.f32 %v3734_v23, %v1941_v37 }
 0x215   : > { %v2403_v51 = vsel %vm263_vm0, %v2345_v8, 0.0 }
 0x216   : > { %v2404_v47 = vadd.f32 %v2403_v51, %v2402_v53  ;;  %v2303_v7 = vadd.f32 %v2302_v41, %v2301_v26  ;;  %v2016_v32 = vadd.f32 %v1984_v54, %v1820_v13 }
 0x217   : > { %v1945_v14 = vpop.permute.xlu1 %1944 }
 0x218   : > { %v2406_v4 = vadd.f32 %v2405_v35, %v2404_v47  ;;  %v1985_v60 = vmul.f32 %v3734_v23, %v1945_v14 }
 0x21a   : > { %v2017_v21 = vadd.f32 %v1985_v60, %v4336_v20 }
 0x21c   : > { %v2137_v16 = vpop.permute.xlu1 %2136 }
 0x21d   : > { %v2180_v2 = vmul.f32 %v3855_v17, %v2137_v16 }
 0x21f   : > { %v2212_v62 = vadd.f32 %v2180_v2, %v2016_v32 }
 0x220   : > { %v2141_v18 = vpop.permute.xlu1 %2140 }
 0x221   : > { %2244 = vst.msk [vmem:[%s3871_s25 + $0xe8] sm:$0xff] %vm263_vm0, %v2212_v62  ;;  %v2304_v39 = vsel %vm263_vm0, %v2212_v62, 0.0  ;;  %v2347_v61 = vmul.f32 %v2212_v62, %v2212_v62  ;;  %v2181_v27 = vmul.f32 %v3855_v17, %v2141_v18 }
 0x222   : > { %v2305_v19 = vadd.f32 %v2304_v39, %v2303_v7 }
 0x223   : > { %v2407_v34 = vsel %vm263_vm0, %v2347_v61, 0.0  ;;  %v2213_v59 = vadd.f32 %v2181_v27, %v2017_v21 }
 0x224   : > { %v2408_v42 = vadd.f32 %v2407_v34, %v2406_v4  ;;  %v2145_v44 = vpop.permute.xlu1 %2144 }
 0x225   : > { %2245 = vst.msk [vmem:[%s3871_s25 + $0xf0] sm:$0xff] %vm263_vm0, %v2213_v59  ;;  %v2306_v23 = vsel %vm263_vm0, %v2213_v59, 0.0  ;;  %v2348_v63 = vmul.f32 %v2213_v59, %v2213_v59  ;;  %v2182_v22 = vmul.f32 %v3855_v17, %v2145_v44 }
 0x226   : > { %v2307_v43 = vadd.f32 %v2306_v23, %v2305_v19 }
 0x227   : > { %v2409_v46 = vsel %vm263_vm0, %v2348_v63, 0.0  ;;  %v2214_v9 = vadd.f32 %v2182_v22, %v2018_v0 }
 0x228   : > { %v2410_v56 = vadd.f32 %v2409_v46, %v2408_v42 }
 0x229   : > { %2246 = vst.msk [vmem:[%s3871_s25 + $0xf8] sm:$0xff] %vm263_vm0, %v2214_v9  ;;  %v2308_v12 = vsel %vm263_vm0, %v2214_v9, 0.0  ;;  %v2349_v33 = vmul.f32 %v2214_v9, %v2214_v9 }
 0x22a   : > { %v2309_v58 = vadd.f32 %v2308_v12, %v2307_v43 }
 0x22b   : > { %v2411_v48 = vsel %vm263_vm0, %v2349_v33, 0.0 }
 0x22c   : > { %v2310_v36 = vrot.slane %v2309_v58, 4  ;;  %v2412_v29 = vadd.f32 %v2411_v48, %v2410_v56 }
 0x22e   : > { %v2311_v5 = vadd.f32 %v2310_v36, %v2309_v58  ;;  %v2413_v25 = vrot.slane %v2412_v29, 4 }
 0x230   : > { %v2312_v38 = vrot.slane %v2311_v5, 2  ;;  %v2414_v17 = vadd.f32 %v2413_v25, %v2412_v29 }
 0x232   : > { %v2313_v45 = vadd.f32 %v2312_v38, %v2311_v5  ;;  %v2415_v40 = vrot.slane %v2414_v17, 2 }
 0x234   : > { %v2314_v55 = vrot.slane %v2313_v45, 1  ;;  %v2416_v10 = vadd.f32 %v2415_v40, %v2414_v17 }
 0x236   : > { %v2315_v53 = vadd.f32 %v2314_v55, %v2313_v45  ;;  %v2417_v37 = vrot.slane %v2416_v10, 1 }
 0x238   : > { %2317 = vst.msk [vmem:[%s262_s28] sm:$0x1] %vm2316_vm2, %v2315_v53  ;;  %v2418_v52 = vadd.f32 %v2417_v37, %v2416_v10 }
 0x23a   : > { %2419 = vst.msk [vmem:[%s262_s28 + $0x1] sm:$0x1] %vm2316_vm2, %v2418_v52 }
 0x23b PF: > { %s17_s21 = sadd.s32 1, %s2555_s21  }
 0x23c   : > { %p14_p4 = scmp.ge.s32.totalorder %s17_s21, 4  }
 0x23e   :  { %16 = sbr.rel (!%p14_p4) target bundleno = 1 (0x1), region = 84 }

// kernel: sep_conv_forward.3
= control target key start
LH: loop header
LB: loop body
LE: loop exit
PB: predicated region body
PF: predicated region fallthrough
CT: control target
= control target key end

     0   :  { %s2598_s21 = smov 0   ;;  %s4254_s0 = inlined_call_operand.vmem [shape: f32[2,16,16,4], index: 0, kind: input, shape index: {}]   ;;  %s4255_s1 = inlined_call_operand.vmem [shape: f32[3,3,4], index: 1, kind: input, shape index: {}]   ;;  %s4256_s2 = inlined_call_operand.vmem [shape: f32[4,8], index: 2, kind: input, shape index: {}]   ;;  %s4257_s3 = inlined_call_operand.vmem [shape: f32[1,4], index: 3, kind: input, shape index: {}]   ;;  %s4258_s4 = inlined_call_operand.vmem [shape: f32[1,4], index: 4, kind: input, shape index: {}]   ;;  %s4259_s5 = inlined_call_operand.vmem [shape: f32[2,16,16,8], index: 5, kind: output, shape index: {0}]   ;;  %s4260_s6 = inlined_call_operand.vmem [shape: f32[2,2,8], index: 6, kind: output, shape index: {1}]  }
   0x1 LB: > { %s2507_s22 = sadd.s32 4294967295, %s2556_s21   ;;  %p2511_p0 = scmp.ge.s32.totalorder %s2556_s21, 1  ;;  %s2556_s21 = sphi %s2598_s21, %s17_s21  }
   0x2   : > { %p215_p1 = scmp.lt.s32.totalorder %s2556_s21, 3 }
   0x4   : > { %p216_p2 = pnand %p2511_p0, %p215_p1 }
   0x6   : > { %219 = sbr.rel (%p216_p2) target bundleno = 571 (0x23b), region = 40 }
   0xd   : > { %p2608_p3 = scmp.lt.s32.totalorder %s2507_s22, 1  ;;  %vm263_vm0 = vcmask 31744   ;;  %vm266_vm1 = vcmask 25600   ;;  %v2558_v0 = vmov 0   ;;  %v2559_v1 = vmov 0.0  }
   0xe   : > { %2536 = vset.pattern.permute.xlu0 %v2558_v0  ;;  %264 = vst.msk [vmem:[#allocation2] sm:$0xff] %vm263_vm0, %v2559_v1  ;;  %265 = vst.msk [vmem:[#allocation2 + $0x8] sm:$0xff] %vm263_vm0, %v2559_v1  ;;  %v529_v2 = vlaneseq  ;;  %2537 = vset.pattern.permute.xlu1 %v2558_v0  ;;  %v2678_v4 = vld [vmem:[%s4257_s3] ss:$0 sm:$0xff]  ;;  %v495_v17 = vld [vmem:[%s4255_s1 + $0x4] sm:$0x7] }
   0xf   : > { %268 = vst.msk [vmem:[#allocation2 + $0x18] sm:$0xff] %vm263_vm0, %v2559_v1  ;;  %269 = vst.msk [vmem:[#allocation2 + $0x20] sm:$0xff] %vm263_vm0, %v2559_v1  ;;  %s4339_s22 = smov (!%p2608_p3, %s2507_s22), 1  ;;  %v494_v5 = vld [vmem:[%s4255_s1] sm:$0x7]  ;;  %vm2215_vm2 = vcmask 64512  }
  0x10   : > { %270 = vst.msk [vmem:[#allocation2 + $0x28] sm:$0x3] %vm266_vm1, %v2559_v1  ;;  %273 = vst.msk [vmem:[#allocation2 + $0x40] sm:$0x3] %vm266_vm1, %v2559_v1  ;;  %v2672_v3 = vshrl.u32 %v529_v2, 7  ;;  %s2521_s24 = sshll.u32 %s4339_s22, 8 }
  0x11   : > { %271 = vst.msk [vmem:[#allocation2 + $0x30] sm:$0xff] %vm263_vm0, %v2559_v1  ;;  %272 = vst.msk [vmem:[#allocation2 + $0x38] sm:$0xff] %vm263_vm0, %v2559_v1  ;;  %s2688_s7 = scalar_lea.vmem %s4254_s0, %s2521_s24  ;;  %v2693_v6 = vld [vmem:[%s4258_s4] ss:$0 sm:$0xff]  ;;  %v496_v28 = vld [vmem:[%s4255_s1 + $0x8] sm:$0x7]  ;;  %s3872_s25 = scalar_lea.vmem %s4259_s5, %s2521_s24 }
  0x12   : > { %267 = vst.msk [vmem:[#allocation2 + $0x10] sm:$0x3] %vm266_vm1, %v2559_v1  ;;  %276 = vst.msk [vmem:[#allocation2 + $0x58] sm:$0x3] %vm266_vm1, %v2559_v1  ;;  %v2696_v7 = vsub.s32 0, %v2672_v3  ;;  %v2699_v8 = vsub.s32 1, %v2672_v3 }
  0x13   : > { %274 = vst.msk [vmem:[#allocation2 + $0x48] sm:$0xff] %vm263_vm0, %v2559_v1  ;;  %275 = vst.msk [vmem:[#allocation2 + $0x50] sm:$0xff] %vm263_vm0, %v2559_v1  ;;  %v2702_v9 = vsub.s32 2, %v2672_v3  ;;  %v319_v10 = vld [vmem:[%s2688_s7] sm:$0xff]  ;;  %v320_v11 = vld [vmem:[%s2688_s7 + $0x8] sm:$0xff]  ;;  %s2516_s24 = sshll.u32 %s4339_s22, 1 }
  0x14   : > { %277 = vst.msk [vmem:[#allocation2 + $0x60] sm:$0xff] %vm263_vm0, %v2559_v1  ;;  %278 = vst.msk [vmem:[#allocation2 + $0x68] sm:$0xff] %vm263_vm0, %v2559_v1  ;;  %v321_v12 = vld [vmem:[%s2688_s7 + $0x10] sm:$0xff]  ;;  %v322_v13 = vld [vmem:[%s2688_s7 + $0x18] sm:$0xff]  ;;  %v358_v14 = vmul.f32 %v2678_v4, %v319_v10  ;;  %v359_v15 = vmul.f32 %v2678_v4, %v320_v11  ;;  %v2715_v18 = vrot.slane %v494_v5, %v2696_v7  ;;  %s262_s28 = scalar_lea.vmem %s4260_s6, %s2516_s24  ;;  %vm2317_vm3 = vcmask 57344  }
  0x15   : > { %279 = vst.msk [vmem:[#allocation2 + $0x70] sm:$0x3] %vm266_vm1, %v2559_v1  ;;  %282 = vst.msk [vmem:[#allocation2 + $0x88] sm:$0x3] %vm266_vm1, %v2559_v1  ;;  %v360_v16 = vmul.f32 %v2678_v4, %v321_v12  ;;  %v361_v19 = vmul.f32 %v2678_v4, %v322_v13  ;;  %v497_v20 = vld [vmem:[#allocation2] sm:$0xff]  ;;  %v2719_v22 = vrot.slane %v494_v5, %v2699_v8  ;;  %v498_v34 = vld [vmem:[#allocation2 + $0x8] sm:$0xff] }
  0x16   : > { %280 = vst.msk [vmem:[#allocation2 + $0x78] sm:$0xff] %vm263_vm0, %v2559_v1  ;;  %281 = vst.msk [vmem:[#allocation2 + $0x80] sm:$0xff] %vm263_vm0, %v2559_v1  ;;  %v597_v21 = vld [vmem:[#allocation2 + $0x1] sm:$0xff]  ;;  %v2722_v24 = vrot.slane %v494_v5, %v2702_v9  ;;  %v397_v25 = vadd.f32 %v2693_v6, %v358_v14  ;;  %v398_v26 = vadd.f32 %v2693_v6, %v359_v15  ;;  %v325_v43 = vld [vmem:[%s2688_s7 + $0x30] sm:$0xff] }
  0x17   : > { %283 = vst.msk [vmem:[#allocation2 + $0x90] sm:$0xff] %vm263_vm0, %v2559_v1  ;;  %284 = vst.msk [vmem:[#allocation2 + $0x98] sm:$0xff] %vm263_vm0, %v2559_v1  ;;  %v697_v23 = vld [vmem:[#allocation2 + $0x2] sm:$0xff]  ;;  %v399_v27 = vadd.f32 %v2693_v6, %v360_v16  ;;  %v533_v29 = vmul.f32 %v2715_v18, %v497_v20  ;;  %v400_v30 = vadd.f32 %v2693_v6, %v361_v19  ;;  %v326_v48 = vld [vmem:[%s2688_s7 + $0x38] sm:$0xff] }
  0x18   : > { %285 = vst.msk [vmem:[#allocation2 + $0xa0] sm:$0x3] %vm266_vm1, %v2559_v1  ;;  %288 = vst.msk [vmem:[#allocation2 + $0xb8] sm:$0x3] %vm266_vm1, %v2559_v1  ;;  %v633_v31 = vmul.f32 %v2719_v22, %v597_v21  ;;  %v733_v32 = vmul.f32 %v2722_v24, %v697_v23  ;;  %v2735_v33 = vrot.slane %v495_v17, %v2696_v7  ;;  %v323_v36 = vld [vmem:[%s2688_s7 + $0x20] sm:$0xff]  ;;  %v429_v37 = vmax.f32 %v397_v25, 0.0 }
  0x19   : > { %286 = vst.msk [vmem:[#allocation2 + $0xa8] sm:$0xff] %vm263_vm0, %v2559_v1  ;;  %287 = vst.msk [vmem:[#allocation2 + $0xb0] sm:$0xff] %vm263_vm0, %v2559_v1  ;;  %v598_v35 = vld [vmem:[#allocation2 + $0x9] sm:$0xff]  ;;  %v430_v38 = vmax.f32 %v398_v26, 0.0  ;;  %v431_v39 = vmax.f32 %v399_v27, 0.0  ;;  %v2739_v40 = vrot.slane %v495_v17, %v2699_v8  ;;  %v432_v44 = vmax.f32 %v400_v30, 0.0 }
  0x1a   : > { %289 = vst.msk [vmem:[#allocation2 + $0xc0] sm:$0xff] %vm263_vm0, %v2559_v1  ;;  %290 = vst.msk [vmem:[#allocation2 + $0xc8] sm:$0xff] %vm263_vm0, %v2559_v1  ;;  %v698_v41 = vld [vmem:[#allocation2 + $0xa] sm:$0xff]  ;;  %v665_v45 = vadd.f32 %v633_v31, %v533_v29  ;;  %v2744_v46 = vrot.slane %v495_v17, %v2702_v9  ;;  %v2747_v47 = vrot.slane %v496_v28, %v2696_v7  ;;  %v327_v49 = vld [vmem:[%s2688_s7 + $0x40] sm:$0xff] }
  0x1b   : > { %291 = vst.msk [vmem:[#allocation2 + $0xd0] sm:$0x3] %vm266_vm1, %v2559_v1  ;;  %294 = vst.msk [vmem:[#allocation2 + $0xe8] sm:$0x3] %vm266_vm1, %v2559_v1  ;;  %v324_v42 = vld [vmem:[%s2688_s7 + $0x28] sm:$0xff]  ;;  %v2756_v51 = vrot.slane %v496_v28, %v2699_v8  ;;  %v2759_v52 = vrot.slane %v496_v28, %v2702_v9  ;;  %v534_v53 = vmul.f32 %v2715_v18, %v498_v34  ;;  %v329_v55 = vld [vmem:[%s2688_s7 + $0x50] sm:$0xff] }
  0x1c   : > { %292 = vst.msk [vmem:[#allocation2 + $0xd8] sm:$0xff] %vm263_vm0, %v2559_v1  ;;  %293 = vst.msk [vmem:[#allocation2 + $0xe0] sm:$0xff] %vm263_vm0, %v2559_v1  ;;  %v328_v50 = vld [vmem:[%s2688_s7 + $0x48] sm:$0xff]  ;;  %v634_v54 = vmul.f32 %v2719_v22, %v598_v35  ;;  %v734_v56 = vmul.f32 %v2722_v24, %v698_v41  ;;  %v362_v57 = vmul.f32 %v2678_v4, %v323_v36  ;;  %v330_v0 = vld [vmem:[%s2688_s7 + $0x58] sm:$0xff] }
  0x1d   : > { %295 = vst.msk [vmem:[#allocation2 + $0xf0] sm:$0xff] %vm263_vm0, %v2559_v1  ;;  %296 = vst.msk [vmem:[#allocation2 + $0xf8] sm:$0xff] %vm263_vm0, %v2559_v1  ;;  %v363_v58 = vmul.f32 %v2678_v4, %v324_v42  ;;  %v364_v59 = vmul.f32 %v2678_v4, %v325_v43  ;;  %v365_v61 = vmul.f32 %v2678_v4, %v326_v48  ;;  %v331_v15 = vld [vmem:[%s2688_s7 + $0x60] sm:$0xff]  ;;  %v332_v16 = vld [vmem:[%s2688_s7 + $0x68] sm:$0xff] }
  0x1e   : > { %297 = vst.msk [vmem:[#allocation2 + $0x100] sm:$0x3] %vm266_vm1, %v2559_v1  ;;  %300 = vst.msk [vmem:[#allocation2 + $0x118] sm:$0x3] %vm266_vm1, %v2559_v1  ;;  %v666_v60 = vadd.f32 %v634_v54, %v534_v53  ;;  %v366_v62 = vmul.f32 %v2678_v4, %v327_v49  ;;  %v367_v63 = vmul.f32 %v2678_v4, %v328_v50  ;;  %v333_v23 = vld [vmem:[%s2688_s7 + $0x70] sm:$0xff] }
  0x1f   : > { %298 = vst.msk [vmem:[#allocation2 + $0x108] sm:$0xff] %vm263_vm0, %v2559_v1  ;;  %299 = vst.msk [vmem:[#allocation2 + $0x110] sm:$0xff] %vm263_vm0, %v2559_v1  ;;  %v402_v2 = vadd.f32 %v2693_v6, %v363_v58  ;;  %v403_v5 = vadd.f32 %v2693_v6, %v364_v59  ;;  %v368_v10 = vmul.f32 %v2678_v4, %v329_v55 }
  0x20   : > { %301 = vst.msk [vmem:[#allocation2 + $0x120] sm:$0xff] %vm263_vm0, %v2559_v1  ;;  %302 = vst.msk [vmem:[#allocation2 + $0x128] sm:$0xff] %vm263_vm0, %v2559_v1  ;;  %v765_v11 = vadd.f32 %v733_v32, %v665_v45  ;;  %v404_v12 = vadd.f32 %v2693_v6, %v365_v61  ;;  %v405_v13 = vadd.f32 %v2693_v6, %v366_v62 }
  0x21   : > { %303 = vst.msk [vmem:[#allocation2 + $0x130] sm:$0x3] %vm266_vm1, %v2559_v1  ;;  %306 = vst.msk [vmem:[#allocation2 + $0x148] sm:$0x3] %vm266_vm1, %v2559_v1  ;;  %v406_v14 = vadd.f32 %v2693_v6, %v367_v63  ;;  %v434_v19 = vmax.f32 %v402_v2, 0.0  ;;  %v435_v20 = vmax.f32 %v403_v5, 0.0  ;;  %v369_v21 = vmul.f32 %v2678_v4, %v330_v0 }
  0x22   : > { %304 = vst.msk [vmem:[#allocation2 + $0x138] sm:$0xff] %vm263_vm0, %v2559_v1  ;;  %305 = vst.msk [vmem:[#allocation2 + $0x140] sm:$0xff] %vm263_vm0, %v2559_v1  ;;  %v766_v25 = vadd.f32 %v734_v56, %v666_v60  ;;  %v436_v26 = vmax.f32 %v404_v12, 0.0  ;;  %v437_v27 = vmax.f32 %v405_v13, 0.0  ;;  %v2788_v31 = vadd.f32 %v2693_v6, %v368_v10 }
  0x23   : > { %307 = vst.msk [vmem:[#allocation2 + $0x150] sm:$0xff] %vm263_vm0, %v2559_v1  ;;  %308 = vst.msk [vmem:[#allocation2 + $0x158] sm:$0xff] %vm263_vm0, %v2559_v1  ;;  %v438_v28 = vmax.f32 %v406_v14, 0.0  ;;  %v2791_v32 = vadd.f32 %v2693_v6, %v369_v21  ;;  %v2794_v34 = vmul.f32 %v2678_v4, %v331_v15  ;;  %v2797_v35 = vmul.f32 %v2678_v4, %v332_v16 }
  0x24   : > { %309 = vst.msk [vmem:[#allocation2 + $0x160] sm:$0x3] %vm266_vm1, %v2559_v1  ;;  %312 = vst.msk [vmem:[#allocation2 + $0x178] sm:$0x3] %vm266_vm1, %v2559_v1  ;;  %v2806_v43 = vmul.f32 %v2678_v4, %v333_v23 }
  0x25   : > { %310 = vst.msk [vmem:[#allocation2 + $0x168] sm:$0xff] %vm263_vm0, %v2559_v1  ;;  %311 = vst.msk [vmem:[#allocation2 + $0x170] sm:$0xff] %vm263_vm0, %v2559_v1 }
  0x26   : > { %313 = vst.msk [vmem:[#allocation2 + $0x180] sm:$0xff] %vm263_vm0, %v2559_v1  ;;  %314 = vst.msk [vmem:[#allocation2 + $0x188] sm:$0xff] %vm263_vm0, %v2559_v1 }
  0x27   : > { %315 = vst.msk [vmem:[#allocation2 + $0x190] sm:$0x3] %vm266_vm1, %v2559_v1  ;;  %318 = vst.msk [vmem:[#allocation2 + $0x1a8] sm:$0x3] %vm266_vm1, %v2559_v1 }
  0x28   : > { %316 = vst.msk [vmem:[#allocation2 + $0x198] sm:$0xff] %vm263_vm0, %v2559_v1  ;;  %317 = vst.msk [vmem:[#allocation2 + $0x1a0] sm:$0xff] %vm263_vm0, %v2559_v1  ;;  %v401_v1 = vadd.f32 %v2693_v6, %v362_v57 }
  0x29   : > { %4282 = vst [vmem:[#allocation3_spill] sm:$0xff] %v2672_v3  ;;  %4283 = vst [vmem:[#allocation4_spill] sm:$0xff] %v2696_v7 }
  0x2a   : > { %4284 = vst [vmem:[#allocation5_spill] sm:$0xff] %v2699_v8  ;;  %4285 = vst [vmem:[#allocation6_spill] sm:$0xff] %v2702_v9  ;;  %v433_v17 = vmax.f32 %v401_v1, 0.0 }
  0x2b   : > { %462 = vst.msk [vmem:[#allocation2 + $0x19] sm:$0xff] %vm263_vm0, %v429_v37  ;;  %463 = vst.msk [vmem:[#allocation2 + $0x21] sm:$0xff] %vm263_vm0, %v430_v38 }
  0x2c   : > { %464 = vst.msk [vmem:[#allocation2 + $0x31] sm:$0xff] %vm263_vm0, %v431_v39  ;;  %465 = vst.msk [vmem:[#allocation2 + $0x39] sm:$0xff] %vm263_vm0, %v432_v44 }
  0x2d   : > { %466 = vst.msk [vmem:[#allocation2 + $0x49] sm:$0xff] %vm263_vm0, %v433_v17  ;;  %467 = vst.msk [vmem:[#allocation2 + $0x51] sm:$0xff] %vm263_vm0, %v434_v19 }
  0x2e   : > { %468 = vst.msk [vmem:[#allocation2 + $0x61] sm:$0xff] %vm263_vm0, %v435_v20  ;;  %469 = vst.msk [vmem:[#allocation2 + $0x69] sm:$0xff] %vm263_vm0, %v436_v26 }
  0x2f   : > { %470 = vst.msk [vmem:[#allocation2 + $0x79] sm:$0xff] %vm263_vm0, %v437_v27  ;;  %471 = vst.msk [vmem:[#allocation2 + $0x81] sm:$0xff] %vm263_vm0, %v438_v28 }
  0x32   : > { %v797_v29 = vld [vmem:[#allocation2 + $0x18] sm:$0xff]  ;;  %v798_v50 = vld [vmem:[#allocation2 + $0x20] sm:$0xff] }
  0x33   : > { %v897_v30 = vld [vmem:[#allocation2 + $0x19] sm:$0xff]  ;;  %v833_v36 = vmul.f32 %v2735_v33, %v797_v29  ;;  %v1098_v39 = vld [vmem:[#allocation2 + $0x30] sm:$0xff]  ;;  %v535_v42 = vmul.f32 %v797_v29, %v2715_v18  ;;  %v898_v53 = vld [vmem:[#allocation2 + $0x21] sm:$0xff]  ;;  %v834_v57 = vmul.f32 %v2735_v33, %v798_v50 }
  0x34   : > { %v933_v37 = vmul.f32 %v2739_v40, %v897_v30  ;;  %v997_v38 = vld [vmem:[#allocation2 + $0x1a] sm:$0xff]  ;;  %v1198_v41 = vld [vmem:[#allocation2 + $0x31] sm:$0xff]  ;;  %v1134_v45 = vmul.f32 %v2747_v47, %v1098_v39  ;;  %v635_v54 = vmul.f32 %v897_v30, %v2719_v22  ;;  %v934_v58 = vmul.f32 %v2739_v40, %v898_v53  ;;  %v998_v59 = vld [vmem:[#allocation2 + $0x22] sm:$0xff] }
  0x35   : > { %v1033_v44 = vmul.f32 %v2744_v46, %v997_v38  ;;  %v1234_v48 = vmul.f32 %v2756_v51, %v1198_v41  ;;  %v1298_v49 = vld [vmem:[#allocation2 + $0x32] sm:$0xff]  ;;  %v865_v55 = vadd.f32 %v833_v36, %v765_v11  ;;  %v1034_v62 = vmul.f32 %v2744_v46, %v998_v59  ;;  %v2824_v10 = vld [vmem:[#allocation2 + $0x3a] sm:$0xff]  ;;  %v1100_v21 = vld [vmem:[#allocation2 + $0x48] sm:$0xff] }
  0x36   : > { %v1334_v56 = vmul.f32 %v2759_v52, %v1298_v49  ;;  %v2815_v60 = vld [vmem:[#allocation2 + $0x38] sm:$0xff]  ;;  %v667_v1 = vadd.f32 %v635_v54, %v535_v42  ;;  %v866_v5 = vadd.f32 %v834_v57, %v766_v25  ;;  %v735_v11 = vmul.f32 %v997_v38, %v2722_v24  ;;  %v1200_v23 = vld [vmem:[#allocation2 + $0x49] sm:$0xff] }
  0x37   : > { %v2817_v61 = vld [vmem:[#allocation2 + $0x39] sm:$0xff]  ;;  %v1135_v63 = vmul.f32 %v2747_v47, %v2815_v60  ;;  %v965_v2 = vadd.f32 %v933_v37, %v865_v55  ;;  %v835_v12 = vmul.f32 %v1098_v39, %v2735_v33  ;;  %v1335_v13 = vmul.f32 %v2759_v52, %v2824_v10  ;;  %v1300_v38 = vld [vmem:[#allocation2 + $0x4a] sm:$0xff] }
  0x38   : > { %v1235_v0 = vmul.f32 %v2756_v51, %v2817_v61  ;;  %v935_v14 = vmul.f32 %v1198_v41, %v2739_v40  ;;  %v537_v15 = vmul.f32 %v1098_v39, %v2715_v18  ;;  %v637_v16 = vmul.f32 %v1198_v41, %v2719_v22  ;;  %v2841_v55 = vld [vmem:[#allocation2 + $0x60] sm:$0xff] }
  0x39   : > { %v1065_v17 = vadd.f32 %v1033_v44, %v965_v2  ;;  %v966_v19 = vadd.f32 %v934_v58, %v866_v5  ;;  %v767_v20 = vadd.f32 %v735_v11, %v667_v1  ;;  %v737_v25 = vmul.f32 %v1298_v49, %v2722_v24 }
  0x3a   : > { %v1035_v26 = vmul.f32 %v1298_v49, %v2744_v46  ;;  %v1136_v27 = vmul.f32 %v2747_v47, %v1100_v21  ;;  %v1236_v28 = vmul.f32 %v2756_v51, %v1200_v23  ;;  %v669_v29 = vadd.f32 %v637_v16, %v537_v15 }
  0x3b   : > { %v1166_v30 = vadd.f32 %v1134_v45, %v1065_v17  ;;  %v1066_v36 = vadd.f32 %v1034_v62, %v966_v19  ;;  %v867_v37 = vadd.f32 %v835_v12, %v767_v20  ;;  %v837_v39 = vmul.f32 %v1100_v21, %v2735_v33  ;;  %v2845_v62 = vld [vmem:[#allocation2 + $0x61] sm:$0xff] }
  0x3c   : > { %v1336_v41 = vmul.f32 %v2759_v52, %v1300_v38  ;;  %v769_v42 = vadd.f32 %v737_v25, %v669_v29  ;;  %v937_v44 = vmul.f32 %v1200_v23, %v2739_v40  ;;  %v1037_v54 = vmul.f32 %v1300_v38, %v2744_v46  ;;  %v2869_v25 = vld [vmem:[#allocation2 + $0x51] sm:$0xff] }
  0x3d   : > { %v1266_v49 = vadd.f32 %v1234_v48, %v1166_v30  ;;  %v1167_v57 = vadd.f32 %v1135_v63, %v1066_v36  ;;  %v967_v58 = vadd.f32 %v935_v14, %v867_v37  ;;  %v1138_v45 = vmul.f32 %v2747_v47, %v2841_v55  ;;  %v2853_v48 = vld [vmem:[#allocation2 + $0x62] sm:$0xff] }
  0x3e   : > { %v869_v1 = vadd.f32 %v837_v39, %v769_v42  ;;  %v1238_v2 = vmul.f32 %v2756_v51, %v2845_v62  ;;  %v536_v5 = vmul.f32 %v798_v50, %v2715_v18  ;;  %v636_v11 = vmul.f32 %v898_v53, %v2719_v22 }
  0x3f   : > { %v2851_v12 = vadd.f32 %v1334_v56, %v1266_v49  ;;  %v1267_v15 = vadd.f32 %v1235_v0, %v1167_v57  ;;  %v1067_v16 = vadd.f32 %v1035_v26, %v967_v58  ;;  %v736_v63 = vmul.f32 %v998_v59, %v2722_v24  ;;  %v2867_v59 = vld [vmem:[#allocation2 + $0x50] sm:$0xff] }
  0x40   : > { %v969_v14 = vadd.f32 %v937_v44, %v869_v1  ;;  %v1338_v17 = vmul.f32 %v2759_v52, %v2853_v48  ;;  %v668_v19 = vadd.f32 %v636_v11, %v536_v5  ;;  %v836_v20 = vmul.f32 %v2815_v60, %v2735_v33 }
  0x41   : > { %1401 = vperm.xlu0 %2536, %v2851_v12   ;;  %v2861_v50 = vadd.f32 %v1335_v13, %v1267_v15  ;;  %v1168_v53 = vadd.f32 %v1136_v27, %v1067_v16  ;;  %v936_v56 = vmul.f32 %v2817_v61, %v2739_v40  ;;  %v1036_v0 = vmul.f32 %v2824_v10, %v2744_v46  ;;  %v1301_v27 = vld [vmem:[#allocation2 + $0x52] sm:$0xff]  ;;  %v2897_v16 = vld [vmem:[#allocation2 + $0x7a] sm:$0xff] }
  0x42   : > { %v1069_v26 = vadd.f32 %v1037_v54, %v969_v14  ;;  %v768_v29 = vadd.f32 %v736_v63, %v668_v19  ;;  %v1137_v30 = vmul.f32 %v2747_v47, %v2867_v59  ;;  %v1237_v13 = vmul.f32 %v2756_v51, %v2869_v25 }
  0x43   : > { %v1268_v36 = vadd.f32 %v1236_v28, %v1168_v53  ;;  %v539_v37 = vmul.f32 %v1100_v21, %v2715_v18  ;;  %v639_v39 = vmul.f32 %v1200_v23, %v2719_v22  ;;  %v739_v42 = vmul.f32 %v1300_v38, %v2722_v24  ;;  %v2888_v23 = vld [vmem:[#allocation2 + $0x78] sm:$0xff] }
  0x44   : > { %v1170_v44 = vadd.f32 %v1138_v45, %v1069_v26  ;;  %v868_v49 = vadd.f32 %v836_v20, %v768_v29  ;;  %v1337_v57 = vmul.f32 %v2759_v52, %v1301_v27  ;;  %v839_v54 = vmul.f32 %v2841_v55, %v2735_v33  ;;  %v2890_v38 = vld [vmem:[#allocation2 + $0x79] sm:$0xff] }
  0x45   : > { %1406 = vperm.xlu0 %2536, %v2861_v50   ;;  %v2882_v58 = vadd.f32 %v1336_v41, %v1268_v36  ;;  %v671_v1 = vadd.f32 %v639_v39, %v539_v37  ;;  %v939_v28 = vmul.f32 %v2845_v62, %v2739_v40  ;;  %v1039_v21 = vmul.f32 %v2853_v48, %v2744_v46  ;;  %v2916_v37 = vld [vmem:[#allocation2 + $0x69] sm:$0xff] }
  0x46   : > { %v1270_v45 = vadd.f32 %v1238_v2, %v1170_v44  ;;  %v968_v5 = vadd.f32 %v936_v56, %v868_v49  ;;  %v1140_v11 = vmul.f32 %v2747_v47, %v2888_v23  ;;  %v1240_v41 = vmul.f32 %v2756_v51, %v2890_v38  ;;  %v2924_v49 = vld [vmem:[#allocation2 + $0x6a] sm:$0xff] }
  0x47   : > { %1411 = vperm.xlu1 %2537, %v2882_v58   ;;  %v771_v15 = vadd.f32 %v739_v42, %v671_v1  ;;  %v538_v63 = vmul.f32 %v2815_v60, %v2715_v18  ;;  %v638_v14 = vmul.f32 %v2817_v61, %v2719_v22  ;;  %v738_v2 = vmul.f32 %v2824_v10, %v2722_v24  ;;  %v2914_v61 = vld [vmem:[#allocation2 + $0x68] sm:$0xff] }
  0x48   : > { %v2905_v19 = vadd.f32 %v1338_v17, %v1270_v45  ;;  %v1068_v20 = vadd.f32 %v1036_v0, %v968_v5  ;;  %v1340_v53 = vmul.f32 %v2759_v52, %v2897_v16  ;;  %v838_v56 = vmul.f32 %v2867_v59, %v2735_v33 }
  0x49   : > { %v871_v26 = vadd.f32 %v839_v54, %v771_v15  ;;  %v670_v29 = vadd.f32 %v638_v14, %v538_v63  ;;  %v938_v60 = vmul.f32 %v2869_v25, %v2739_v40  ;;  %v1038_v36 = vmul.f32 %v1301_v27, %v2744_v46 }
  0x4a   : > { %1421 = vperm.xlu0 %2536, %v2905_v19   ;;  %v1169_v10 = vadd.f32 %v1137_v30, %v1068_v20  ;;  %v1139_v17 = vmul.f32 %v2747_v47, %v2914_v61  ;;  %v1239_v0 = vmul.f32 %v2756_v51, %v2916_v37  ;;  %v439_v39 = vmax.f32 %v2788_v31, 0.0 }
  0x4b   : > { %v971_v42 = vadd.f32 %v939_v28, %v871_v26  ;;  %v770_v44 = vadd.f32 %v738_v2, %v670_v29  ;;  %v440_v54 = vmax.f32 %v2791_v32, 0.0  ;;  %v541_v1 = vmul.f32 %v2841_v55, %v2715_v18  ;;  %v2955_v29 = vld [vmem:[#allocation2 + $0x80] sm:$0xff] }
  0x4c   : > { %v1269_v45 = vadd.f32 %v1237_v13, %v1169_v10  ;;  %v1339_v30 = vmul.f32 %v2759_v52, %v2924_v49  ;;  %472 = vst.msk [vmem:[#allocation2 + $0x91] sm:$0xff] %vm263_vm0, %v439_v39  ;;  %v641_v5 = vmul.f32 %v2845_v62, %v2719_v22  ;;  %v741_v31 = vmul.f32 %v2853_v48, %v2722_v24  ;;  %v2961_v10 = vld [vmem:[#allocation2 + $0x81] sm:$0xff] }
  0x4d   : > { %v1071_v28 = vadd.f32 %v1039_v21, %v971_v42  ;;  %v870_v15 = vadd.f32 %v838_v56, %v770_v44  ;;  %473 = vst.msk [vmem:[#allocation2 + $0x99] sm:$0xff] %vm263_vm0, %v440_v54  ;;  %v841_v32 = vmul.f32 %v2888_v23, %v2735_v33  ;;  %v941_v55 = vmul.f32 %v2890_v38, %v2739_v40  ;;  %v2965_v54 = vld [vmem:[#allocation2 + $0x82] sm:$0xff] }
  0x4e   : > { %v2941_v13 = vadd.f32 %v1337_v57, %v1269_v45  ;;  %v673_v63 = vadd.f32 %v641_v5, %v541_v1  ;;  %v540_v14 = vmul.f32 %v2867_v59, %v2715_v18  ;;  %v640_v62 = vmul.f32 %v2869_v25, %v2719_v22 }
  0x4f   : > { %v1172_v48 = vadd.f32 %v1140_v11, %v1071_v28  ;;  %v970_v21 = vadd.f32 %v938_v60, %v870_v15  ;;  %v1041_v2 = vmul.f32 %v2897_v16, %v2744_v46  ;;  %v740_v20 = vmul.f32 %v1301_v27, %v2722_v24 }
  0x50   : > { %1416 = vperm.xlu1 %2537, %v2941_v13   ;;  %v773_v56 = vadd.f32 %v741_v31, %v673_v63  ;;  %v672_v26 = vadd.f32 %v640_v62, %v540_v14  ;;  %v840_v57 = vmul.f32 %v2914_v61, %v2735_v33  ;;  %v940_v59 = vmul.f32 %v2916_v37, %v2739_v40 }
  0x51   : > { %v1272_v25 = vadd.f32 %v1240_v41, %v1172_v48  ;;  %v1070_v11 = vadd.f32 %v1038_v36, %v970_v21  ;;  %v1040_v60 = vmul.f32 %v2924_v49, %v2744_v46  ;;  %v1141_v27 = vmul.f32 %v2747_v47, %v2955_v29 }
  0x52   : > { %v873_v39 = vadd.f32 %v841_v32, %v773_v56  ;;  %v772_v42 = vadd.f32 %v740_v20, %v672_v26  ;;  %v1241_v44 = vmul.f32 %v2756_v51, %v2961_v10  ;;  %v409_v1 = vadd.f32 %v2693_v6, %v2794_v34 }
  0x53   : > { %v2969_v41 = vadd.f32 %v1340_v53, %v1272_v25  ;;  %v1171_v36 = vadd.f32 %v1139_v17, %v1070_v11  ;;  %v1106_v45 = vld [vmem:[#allocation2 + $0x90] sm:$0xff]  ;;  %v1341_v5 = vmul.f32 %v2759_v52, %v2965_v54  ;;  %v410_v31 = vadd.f32 %v2693_v6, %v2797_v35 }
  0x54   : > { %v973_v28 = vadd.f32 %v941_v55, %v873_v39  ;;  %v1142_v15 = vmul.f32 %v2747_v47, %v1106_v45  ;;  %v1206_v32 = vld [vmem:[#allocation2 + $0x91] sm:$0xff]  ;;  %v872_v63 = vadd.f32 %v840_v57, %v772_v42  ;;  %v543_v14 = vmul.f32 %v2888_v23, %v2715_v18 }
  0x55   : > { %1431 = vperm.xlu0 %2536, %v2969_v41   ;;  %v1271_v34 = vadd.f32 %v1239_v0, %v1171_v36  ;;  %v1242_v53 = vmul.f32 %v2756_v51, %v1206_v32  ;;  %v441_v17 = vmax.f32 %v409_v1, 0.0  ;;  %v442_v62 = vmax.f32 %v410_v31, 0.0  ;;  %v1306_v21 = vld [vmem:[#allocation2 + $0x92] sm:$0xff] }
  0x56   : > { %v1073_v48 = vadd.f32 %v1041_v2, %v973_v28  ;;  %v972_v20 = vadd.f32 %v940_v59, %v872_v63  ;;  %v643_v35 = vmul.f32 %v2890_v38, %v2719_v22  ;;  %v743_v55 = vmul.f32 %v2897_v16, %v2722_v24  ;;  %v334_v39 = vld [vmem:[%s2688_s7 + $0x78] sm:$0xff] }
  0x57   : > { %v2984_v56 = vadd.f32 %v1339_v30, %v1271_v34  ;;  %v1342_v23 = vmul.f32 %v2759_v52, %v1306_v21  ;;  %474 = vst.msk [vmem:[#allocation2 + $0xa9] sm:$0xff] %vm263_vm0, %v441_v17  ;;  %475 = vst.msk [vmem:[#allocation2 + $0xb1] sm:$0xff] %vm263_vm0, %v442_v62  ;;  %v843_v0 = vmul.f32 %v1106_v45, %v2735_v33  ;;  %v3004_v36 = vld [vmem:[#allocation2 + $0x98] sm:$0xff] }
  0x58   : > { %v943_v2 = vmul.f32 %v1206_v32, %v2739_v40  ;;  %v1174_v26 = vadd.f32 %v1142_v15, %v1073_v48  ;;  %v1072_v57 = vadd.f32 %v1040_v60, %v972_v20  ;;  %v675_v59 = vadd.f32 %v643_v35, %v543_v14  ;;  %v3006_v31 = vld [vmem:[#allocation2 + $0x99] sm:$0xff] }
  0x59   : > { %v542_v38 = vmul.f32 %v2914_v61, %v2715_v18  ;;  %1426 = vperm.xlu1 %2537, %v2984_v56   ;;  %v1043_v16 = vmul.f32 %v1306_v21, %v2744_v46  ;;  %v642_v30 = vmul.f32 %v2916_v37, %v2719_v22  ;;  %v742_v25 = vmul.f32 %v2924_v49, %v2722_v24 }
  0x5a   : > { %v842_v11 = vmul.f32 %v2955_v29, %v2735_v33  ;;  %v1274_v42 = vadd.f32 %v1242_v53, %v1174_v26  ;;  %v1173_v60 = vadd.f32 %v1141_v27, %v1072_v57  ;;  %v775_v1 = vadd.f32 %v743_v55, %v675_v59  ;;  %v3024_v26 = vld [vmem:[#allocation2 + $0x9a] sm:$0xff] }
  0x5b   : > { %v942_v61 = vmul.f32 %v2961_v10, %v2739_v40  ;;  %v674_v28 = vadd.f32 %v642_v30, %v542_v38  ;;  %v1042_v37 = vmul.f32 %v2965_v54, %v2744_v46  ;;  %v1143_v49 = vmul.f32 %v2747_v47, %v3004_v36 }
  0x5c   : > { %v1243_v15 = vmul.f32 %v2756_v51, %v3006_v31  ;;  %v3014_v63 = vadd.f32 %v1342_v23, %v1274_v42  ;;  %v1273_v27 = vadd.f32 %v1241_v44, %v1173_v60  ;;  %v875_v14 = vadd.f32 %v843_v0, %v775_v1 }
  0x5d   : > { %v373_v34 = vmul.f32 %v2678_v4, %v334_v39  ;;  %v774_v53 = vadd.f32 %v742_v25, %v674_v28  ;;  %v411_v17 = vadd.f32 %v2693_v6, %v2806_v43  ;;  %v545_v62 = vmul.f32 %v1106_v45, %v2715_v18 }
  0x5e   : > { %v645_v48 = vmul.f32 %v1206_v32, %v2719_v22  ;;  %1441 = vperm.xlu0 %2536, %v3014_v63   ;;  %v3022_v20 = vadd.f32 %v1341_v5, %v1273_v27  ;;  %v975_v35 = vadd.f32 %v943_v2, %v875_v14  ;;  %v1108_v55 = vld [vmem:[#allocation2 + $0xa8] sm:$0xff]  ;;  %v745_v0 = vmul.f32 %v1306_v21, %v2722_v24 }
  0x5f   : > { %v1208_v23 = vld [vmem:[#allocation2 + $0xa9] sm:$0xff]  ;;  %v412_v44 = vadd.f32 %v2693_v6, %v373_v34  ;;  %v1144_v57 = vmul.f32 %v2747_v47, %v1108_v55  ;;  %v874_v45 = vadd.f32 %v842_v11, %v774_v53  ;;  %v1343_v32 = vmul.f32 %v2759_v52, %v3024_v26  ;;  %v335_v34 = vld [vmem:[%s2688_s7 + $0x80] sm:$0xff] }
  0x60   : > { %v1244_v43 = vmul.f32 %v2756_v51, %v1208_v23  ;;  %1436 = vperm.xlu1 %2537, %v3022_v20   ;;  %v1075_v5 = vadd.f32 %v1043_v16, %v975_v35  ;;  %v1308_v2 = vld [vmem:[#allocation2 + $0xaa] sm:$0xff]  ;;  %v443_v59 = vmax.f32 %v411_v17, 0.0  ;;  %v677_v30 = vadd.f32 %v645_v48, %v545_v62 }
  0x61   : > { %v444_v38 = vmax.f32 %v412_v44, 0.0  ;;  %v1344_v25 = vmul.f32 %v2759_v52, %v1308_v2  ;;  %v974_v39 = vadd.f32 %v942_v61, %v874_v45  ;;  %v845_v21 = vmul.f32 %v1108_v55, %v2735_v33  ;;  %v3052_v35 = vld [vmem:[#allocation2 + $0xb1] sm:$0xff] }
  0x62   : > { %v945_v42 = vmul.f32 %v1208_v23, %v2739_v40  ;;  %v1176_v60 = vadd.f32 %v1144_v57, %v1075_v5  ;;  %476 = vst.msk [vmem:[#allocation2 + $0xc1] sm:$0xff] %vm263_vm0, %v443_v59  ;;  %v777_v11 = vadd.f32 %v745_v0, %v677_v30  ;;  %v544_v16 = vmul.f32 %v2955_v29, %v2715_v18  ;;  %v3050_v29 = vld [vmem:[#allocation2 + $0xb0] sm:$0xff] }
  0x63   : > { %477 = vst.msk [vmem:[#allocation2 + $0xc9] sm:$0xff] %vm263_vm0, %v444_v38  ;;  %v644_v1 = vmul.f32 %v2961_v10, %v2719_v22  ;;  %v1074_v28 = vadd.f32 %v1042_v37, %v974_v39  ;;  %v1045_v61 = vmul.f32 %v1308_v2, %v2744_v46  ;;  %v744_v27 = vmul.f32 %v2965_v54, %v2722_v24  ;;  %v336_v10 = vld [vmem:[%s2688_s7 + $0x88] sm:$0xff] }
  0x64   : > { %v844_v14 = vmul.f32 %v3004_v36, %v2735_v33  ;;  %v1276_v53 = vadd.f32 %v1244_v43, %v1176_v60  ;;  %v877_v17 = vadd.f32 %v845_v21, %v777_v11  ;;  %v944_v48 = vmul.f32 %v3006_v31, %v2739_v40  ;;  %v3068_v60 = vld [vmem:[#allocation2 + $0xb2] sm:$0xff] }
  0x65   : > { %v676_v62 = vadd.f32 %v644_v1, %v544_v16  ;;  %v1175_v37 = vadd.f32 %v1143_v49, %v1074_v28  ;;  %v1044_v44 = vmul.f32 %v3024_v26, %v2744_v46  ;;  %v1145_v54 = vmul.f32 %v2747_v47, %v3050_v29 }
  0x66   : > { %v1245_v0 = vmul.f32 %v2756_v51, %v3052_v35  ;;  %v3061_v57 = vadd.f32 %v1344_v25, %v1276_v53  ;;  %v977_v43 = vadd.f32 %v945_v42, %v877_v17  ;;  %v374_v5 = vmul.f32 %v2678_v4, %v335_v34 }
  0x67   : > { %v776_v45 = vadd.f32 %v744_v27, %v676_v62  ;;  %v1275_v59 = vadd.f32 %v1243_v15, %v1175_v37  ;;  %v375_v38 = vmul.f32 %v2678_v4, %v336_v10  ;;  %v547_v49 = vmul.f32 %v1108_v55, %v2715_v18 }
  0x68   : > { %v647_v30 = vmul.f32 %v1208_v23, %v2719_v22  ;;  %1451 = vperm.xlu0 %2536, %v3061_v57   ;;  %v1077_v39 = vadd.f32 %v1045_v61, %v977_v43  ;;  %v413_v25 = vadd.f32 %v2693_v6, %v374_v5  ;;  %v747_v42 = vmul.f32 %v1308_v2, %v2722_v24 }
  0x69   : > { %v876_v21 = vadd.f32 %v844_v14, %v776_v45  ;;  %v3072_v11 = vadd.f32 %v1343_v32, %v1275_v59  ;;  %v1110_v16 = vld [vmem:[#allocation2 + $0xc0] sm:$0xff]  ;;  %v1345_v1 = vmul.f32 %v2759_v52, %v3068_v60  ;;  %v414_v55 = vadd.f32 %v2693_v6, %v375_v38  ;;  %v337_v59 = vld [vmem:[%s2688_s7 + $0x90] sm:$0xff] }
  0x6a   : > { %v1210_v15 = vld [vmem:[#allocation2 + $0xc1] sm:$0xff]  ;;  %v679_v23 = vadd.f32 %v647_v30, %v547_v49  ;;  %v1146_v28 = vmul.f32 %v2747_v47, %v1110_v16  ;;  %v546_v14 = vmul.f32 %v3004_v36, %v2715_v18  ;;  %v445_v2 = vmax.f32 %v413_v25, 0.0 }
  0x6b   : > { %v1246_v61 = vmul.f32 %v2756_v51, %v1210_v15  ;;  %v976_v27 = vadd.f32 %v944_v48, %v876_v21  ;;  %1446 = vperm.xlu1 %2537, %v3072_v11   ;;  %v1310_v32 = vld [vmem:[#allocation2 + $0xc2] sm:$0xff]  ;;  %v446_v34 = vmax.f32 %v414_v55, 0.0  ;;  %v847_v17 = vmul.f32 %v1110_v16, %v2735_v33  ;;  %v338_v21 = vld [vmem:[%s2688_s7 + $0x98] sm:$0xff] }
  0x6c   : > { %v779_v53 = vadd.f32 %v747_v42, %v679_v23  ;;  %v1178_v62 = vadd.f32 %v1146_v28, %v1077_v39  ;;  %v1346_v10 = vmul.f32 %v2759_v52, %v1310_v32  ;;  %v947_v43 = vmul.f32 %v1210_v15, %v2739_v40  ;;  %478 = vst.msk [vmem:[#allocation2 + $0xd9] sm:$0xff] %vm263_vm0, %v445_v2  ;;  %v3097_v39 = vld [vmem:[#allocation2 + $0xc8] sm:$0xff] }
  0x6d   : > { %v1076_v37 = vadd.f32 %v1044_v44, %v976_v27  ;;  %479 = vst.msk [vmem:[#allocation2 + $0xe1] sm:$0xff] %vm263_vm0, %v446_v34  ;;  %v1047_v48 = vmul.f32 %v1310_v32, %v2744_v46  ;;  %v646_v45 = vmul.f32 %v3006_v31, %v2719_v22  ;;  %v746_v5 = vmul.f32 %v3024_v26, %v2722_v24  ;;  %v3104_v55 = vld [vmem:[#allocation2 + $0xc9] sm:$0xff] }
  0x6e   : > { %v879_v36 = vadd.f32 %v847_v17, %v779_v53  ;;  %v1278_v38 = vadd.f32 %v1246_v61, %v1178_v62  ;;  %v846_v44 = vmul.f32 %v3050_v29, %v2735_v33  ;;  %v946_v30 = vmul.f32 %v3052_v35, %v2739_v40 }
  0x6f   : > { %v1177_v49 = vadd.f32 %v1145_v54, %v1076_v37  ;;  %v678_v42 = vadd.f32 %v646_v45, %v546_v14  ;;  %v1046_v31 = vmul.f32 %v3068_v60, %v2744_v46  ;;  %v1147_v26 = vmul.f32 %v2747_v47, %v3097_v39  ;;  %v3119_v37 = vld [vmem:[#allocation2 + $0xca] sm:$0xff] }
  0x70   : > { %v979_v25 = vadd.f32 %v947_v43, %v879_v36  ;;  %v3106_v54 = vadd.f32 %v1346_v10, %v1278_v38  ;;  %v1247_v28 = vmul.f32 %v2756_v51, %v3104_v55  ;;  %v376_v61 = vmul.f32 %v2678_v4, %v337_v59 }
  0x71   : > { %v1277_v23 = vadd.f32 %v1245_v0, %v1177_v49  ;;  %v778_v2 = vadd.f32 %v746_v5, %v678_v42  ;;  %v377_v14 = vmul.f32 %v2678_v4, %v338_v21  ;;  %v549_v34 = vmul.f32 %v1110_v16, %v2715_v18 }
  0x72   : > { %v1079_v27 = vadd.f32 %v1047_v48, %v979_v25  ;;  %1461 = vperm.xlu0 %2536, %v3106_v54   ;;  %v415_v17 = vadd.f32 %v2693_v6, %v376_v61  ;;  %v649_v62 = vmul.f32 %v1210_v15, %v2719_v22  ;;  %v749_v0 = vmul.f32 %v1310_v32, %v2722_v24 }
  0x73   : > { %v3114_v53 = vadd.f32 %v1345_v1, %v1277_v23  ;;  %v878_v10 = vadd.f32 %v846_v44, %v778_v2  ;;  %v416_v43 = vadd.f32 %v2693_v6, %v377_v14  ;;  %v548_v36 = vmul.f32 %v3050_v29, %v2715_v18  ;;  %v1112_v1 = vld [vmem:[#allocation2 + $0xd8] sm:$0xff]  ;;  %v339_v14 = vld [vmem:[%s2688_s7 + $0xa0] sm:$0xff] }
  0x74   : > { %v648_v16 = vmul.f32 %v3052_v35, %v2719_v22  ;;  %v1212_v48 = vld [vmem:[#allocation2 + $0xd9] sm:$0xff]  ;;  %v1347_v15 = vmul.f32 %v2759_v52, %v3119_v37  ;;  %v447_v45 = vmax.f32 %v415_v17, 0.0  ;;  %v681_v32 = vadd.f32 %v649_v62, %v549_v34  ;;  %v340_v34 = vld [vmem:[%s2688_s7 + $0xa8] sm:$0xff] }
  0x75   : > { %1456 = vperm.xlu1 %2537, %v3114_v53   ;;  %v748_v5 = vmul.f32 %v3068_v60, %v2722_v24  ;;  %v1148_v59 = vmul.f32 %v2747_v47, %v1112_v1  ;;  %v1248_v29 = vmul.f32 %v2756_v51, %v1212_v48  ;;  %v978_v38 = vadd.f32 %v946_v30, %v878_v10  ;;  %v1312_v49 = vld [vmem:[#allocation2 + $0xda] sm:$0xff] }
  0x76   : > { %v848_v35 = vmul.f32 %v3097_v39, %v2735_v33  ;;  %v448_v44 = vmax.f32 %v416_v43, 0.0  ;;  %480 = vst.msk [vmem:[#allocation2 + $0xf1] sm:$0xff] %vm263_vm0, %v447_v45  ;;  %v781_v21 = vadd.f32 %v749_v0, %v681_v32  ;;  %v849_v25 = vmul.f32 %v1112_v1, %v2735_v33  ;;  %v3147_v10 = vld [vmem:[#allocation2 + $0xe0] sm:$0xff] }
  0x77   : > { %v949_v42 = vmul.f32 %v1212_v48, %v2739_v40  ;;  %v1180_v23 = vadd.f32 %v1148_v59, %v1079_v27  ;;  %v1348_v60 = vmul.f32 %v2759_v52, %v1312_v49  ;;  %v1078_v61 = vadd.f32 %v1046_v31, %v978_v38 }
  0x78   : > { %v680_v2 = vadd.f32 %v648_v16, %v548_v36  ;;  %481 = vst.msk [vmem:[#allocation2 + $0xf9] sm:$0xff] %vm263_vm0, %v448_v44  ;;  %v881_v30 = vadd.f32 %v849_v25, %v781_v21  ;;  %v1049_v17 = vmul.f32 %v1312_v49, %v2744_v46  ;;  %v948_v62 = vmul.f32 %v3104_v55, %v2739_v40  ;;  %v3151_v36 = vld [vmem:[#allocation2 + $0xe1] sm:$0xff] }
  0x79   : > { %v1048_v0 = vmul.f32 %v3119_v37, %v2744_v46  ;;  %v1280_v27 = vadd.f32 %v1248_v29, %v1180_v23  ;;  %v1179_v43 = vadd.f32 %v1147_v26, %v1078_v61  ;;  %v1149_v31 = vmul.f32 %v2747_v47, %v3147_v10 }
  0x7a   : > { %v780_v45 = vadd.f32 %v748_v5, %v680_v2  ;;  %v981_v16 = vadd.f32 %v949_v42, %v881_v30  ;;  %v1249_v32 = vmul.f32 %v2756_v51, %v3151_v36  ;;  %v378_v59 = vmul.f32 %v2678_v4, %v339_v14 }
  0x7b   : > { %v379_v38 = vmul.f32 %v2678_v4, %v340_v34  ;;  %v3157_v44 = vadd.f32 %v1348_v60, %v1280_v27  ;;  %v1279_v21 = vadd.f32 %v1247_v28, %v1179_v43  ;;  %v551_v26 = vmul.f32 %v1112_v1, %v2715_v18  ;;  %v3171_v34 = vld [vmem:[#allocation2 + $0xe2] sm:$0xff] }
  0x7c   : > { %v880_v25 = vadd.f32 %v848_v35, %v780_v45  ;;  %v1081_v5 = vadd.f32 %v1049_v17, %v981_v16  ;;  %v417_v29 = vadd.f32 %v2693_v6, %v378_v59  ;;  %v651_v42 = vmul.f32 %v1212_v48, %v2719_v22 }
  0x7d   : > { %v418_v23 = vadd.f32 %v2693_v6, %v379_v38  ;;  %1471 = vperm.xlu0 %2536, %v3157_v44   ;;  %v3164_v61 = vadd.f32 %v1347_v15, %v1279_v21  ;;  %v1114_v2 = vld [vmem:[#allocation2 + $0xf0] sm:$0xff]  ;;  %v751_v60 = vmul.f32 %v1312_v49, %v2722_v24  ;;  %v550_v28 = vmul.f32 %v3097_v39, %v2715_v18 }
  0x7e   : > { %v1214_v14 = vld [vmem:[#allocation2 + $0xf1] sm:$0xff]  ;;  %v980_v4 = vadd.f32 %v948_v62, %v880_v25  ;;  %v1150_v1 = vmul.f32 %v2747_v47, %v1114_v2  ;;  %v449_v6 = vmax.f32 %v417_v29, 0.0  ;;  %v1349_v17 = vmul.f32 %v2759_v52, %v3171_v34 }
  0x7f   : > { %v1250_v35 = vmul.f32 %v2756_v51, %v1214_v14  ;;  %v450_v48 = vmax.f32 %v418_v23, 0.0  ;;  %1466 = vperm.xlu1 %2537, %v3164_v61   ;;  %v1314_v15 = vld [vmem:[#allocation2 + $0xf2] sm:$0xff]  ;;  %v683_v49 = vadd.f32 %v651_v42, %v551_v26  ;;  %v851_v62 = vmul.f32 %v1114_v2, %v2735_v33 }
  0x80   : > { %v1080_v30 = vadd.f32 %v1048_v0, %v980_v4  ;;  %v1182_v39 = vadd.f32 %v1150_v1, %v1081_v5  ;;  %v1350_v27 = vmul.f32 %v2759_v52, %v1314_v15  ;;  %482 = vst.msk [vmem:[#allocation2 + $0x109] sm:$0xff] %vm263_vm0, %v449_v6  ;;  %v951_v43 = vmul.f32 %v1214_v14, %v2739_v40  ;;  %v341_v21 = vld [vmem:[%s2688_s7 + $0xb0] sm:$0xff]  ;;  %v3191_v23 = vld [vmem:[#allocation2 + $0xf8] sm:$0xff]  ;;  %v3207_v6 = vld [vmem:[%s4257_s3] ss:$0 sm:$0xff] }
  0x81   : > { %483 = vst.msk [vmem:[#allocation2 + $0x111] sm:$0xff] %vm263_vm0, %v450_v48  ;;  %v650_v45 = vmul.f32 %v3104_v55, %v2719_v22  ;;  %v783_v16 = vadd.f32 %v751_v60, %v683_v49  ;;  %v1051_v59 = vmul.f32 %v1314_v15, %v2744_v46  ;;  %v750_v38 = vmul.f32 %v3119_v37, %v2722_v24  ;;  %v342_v42 = vld [vmem:[%s2688_s7 + $0xb8] sm:$0xff] }
  0x82   : > { %v1181_v0 = vadd.f32 %v1149_v31, %v1080_v30  ;;  %v1282_v25 = vadd.f32 %v1250_v35, %v1182_v39  ;;  %v850_v5 = vmul.f32 %v3147_v10, %v2735_v33  ;;  %v950_v29 = vmul.f32 %v3151_v36, %v2739_v40  ;;  %v3198_v60 = vld [vmem:[#allocation2 + $0xf9] sm:$0xff] }
  0x83   : > { %v682_v26 = vadd.f32 %v650_v45, %v550_v28  ;;  %v883_v31 = vadd.f32 %v851_v62, %v783_v16  ;;  %v1050_v4 = vmul.f32 %v3171_v34, %v2744_v46  ;;  %v1151_v37 = vmul.f32 %v2747_v47, %v3191_v23 }
  0x84   : > { %v1281_v55 = vadd.f32 %v1249_v32, %v1181_v0  ;;  %v3200_v28 = vadd.f32 %v1350_v27, %v1282_v25  ;;  %v1251_v35 = vmul.f32 %v2756_v51, %v3198_v60  ;;  %v380_v32 = vmul.f32 %v3207_v6, %v341_v21  ;;  %v3218_v27 = vld [vmem:[%s4258_s4] ss:$0 sm:$0xff] }
  0x85   : > { %v782_v1 = vadd.f32 %v750_v38, %v682_v26  ;;  %v983_v30 = vadd.f32 %v951_v43, %v883_v31  ;;  %v381_v49 = vmul.f32 %v3207_v6, %v342_v42  ;;  %v553_v62 = vmul.f32 %v1114_v2, %v2715_v18  ;;  %v3224_v2 = vld [vmem:[#allocation2 + $0xfa] sm:$0xff] }
  0x86   : > { %v3210_v48 = vadd.f32 %v1349_v17, %v1281_v55  ;;  %1481 = vperm.xlu0 %2536, %v3200_v28   ;;  %v419_v45 = vadd.f32 %v3218_v27, %v380_v32  ;;  %v653_v0 = vmul.f32 %v1214_v14, %v2719_v22  ;;  %v753_v17 = vmul.f32 %v1314_v15, %v2722_v24 }
  0x87   : > { %v882_v39 = vadd.f32 %v850_v5, %v782_v1  ;;  %v1083_v43 = vadd.f32 %v1051_v59, %v983_v30  ;;  %v1116_v16 = vld [vmem:[#allocation2 + $0x108] sm:$0xff]  ;;  %v420_v21 = vadd.f32 %v3218_v27, %v381_v49  ;;  %v552_v25 = vmul.f32 %v3147_v10, %v2715_v18 }
  0x88   : > { %1476 = vperm.xlu1 %2537, %v3210_v48   ;;  %v1216_v38 = vld [vmem:[#allocation2 + $0x109] sm:$0xff]  ;;  %v652_v26 = vmul.f32 %v3151_v36, %v2719_v22  ;;  %v1152_v5 = vmul.f32 %v2747_v47, %v1116_v16  ;;  %v1351_v59 = vmul.f32 %v2759_v52, %v3224_v2  ;;  %v451_v55 = vmax.f32 %v419_v45, 0.0  ;;  %v3270_v9 = vld [vmem:[#allocation2 + $0x112] sm:$0xff] }
  0x89   : > { %v1252_v14 = vmul.f32 %v2756_v51, %v1216_v38  ;;  %v982_v15 = vadd.f32 %v950_v29, %v882_v39  ;;  %v1316_v42 = vld [vmem:[#allocation2 + $0x10a] sm:$0xff]  ;;  %v452_v31 = vmax.f32 %v420_v21, 0.0  ;;  %v685_v1 = vadd.f32 %v653_v0, %v553_v62  ;;  %v343_v0 = vld [vmem:[%s2688_s7 + $0xc0] sm:$0xff] }
  0x8a   : > { %v853_v32 = vmul.f32 %v1116_v16, %v2735_v33  ;;  %v1184_v30 = vadd.f32 %v1152_v5, %v1083_v43  ;;  %v1352_v10 = vmul.f32 %v2759_v52, %v1316_v42  ;;  %v953_v49 = vmul.f32 %v1216_v38, %v2739_v40  ;;  %484 = vst.msk [vmem:[#allocation2 + $0x121] sm:$0xff] %vm263_vm0, %v451_v55  ;;  %v344_v55 = vld [vmem:[%s2688_s7 + $0xc8] sm:$0xff] }
  0x8b   : > { %v1082_v36 = vadd.f32 %v1050_v4, %v982_v15  ;;  %485 = vst.msk [vmem:[#allocation2 + $0x129] sm:$0xff] %vm263_vm0, %v452_v31  ;;  %v785_v29 = vadd.f32 %v753_v17, %v685_v1  ;;  %v684_v39 = vadd.f32 %v652_v26, %v552_v25  ;;  %v752_v45 = vmul.f32 %v3171_v34, %v2722_v24  ;;  %v3248_v15 = vld [vmem:[#allocation2 + $0x110] sm:$0xff] }
  0x8c   : > { %v852_v62 = vmul.f32 %v3191_v23, %v2735_v33  ;;  %v1284_v43 = vadd.f32 %v1252_v14, %v1184_v30  ;;  %v1053_v5 = vmul.f32 %v1316_v42, %v2744_v46  ;;  %v952_v4 = vmul.f32 %v3198_v60, %v2739_v40  ;;  %v3255_v26 = vld [vmem:[#allocation2 + $0x111] sm:$0xff] }
  0x8d   : > { %v1183_v21 = vadd.f32 %v1151_v37, %v1082_v36  ;;  %v885_v31 = vadd.f32 %v853_v32, %v785_v29  ;;  %v784_v17 = vadd.f32 %v752_v45, %v684_v39  ;;  %v1052_v25 = vmul.f32 %v3224_v2, %v2744_v46 }
  0x8e   : > { %v1153_v34 = vmul.f32 %v2747_v47, %v3248_v15  ;;  %v3257_v14 = vadd.f32 %v1352_v10, %v1284_v43  ;;  %v1253_v1 = vmul.f32 %v2756_v51, %v3255_v26  ;;  %v382_v30 = vmul.f32 %v3207_v6, %v343_v0 }
  0x8f   : > { %v1283_v37 = vadd.f32 %v1251_v35, %v1183_v21  ;;  %v985_v36 = vadd.f32 %v953_v49, %v885_v31  ;;  %v884_v3 = vadd.f32 %v852_v62, %v784_v17  ;;  %v383_v32 = vmul.f32 %v3207_v6, %v344_v55 }
  0x90   : > { %4286 = vst [vmem:[#allocation7_spill] sm:$0xff] %v3257_v14  ;;  %v555_v29 = vmul.f32 %v1116_v16, %v2715_v18  ;;  %1491 = vperm.xlu0 %2536, %v3257_v14   ;;  %v421_v45 = vadd.f32 %v3218_v27, %v382_v30  ;;  %v655_v10 = vmul.f32 %v1216_v38, %v2719_v22 }
  0x91   : > { %v3265_v39 = vadd.f32 %v1351_v59, %v1283_v37  ;;  %v755_v35 = vmul.f32 %v1316_v42, %v2722_v24  ;;  %v1085_v43 = vadd.f32 %v1053_v5, %v985_v36  ;;  %v984_v21 = vadd.f32 %v952_v4, %v884_v3  ;;  %v1118_v16 = vld [vmem:[#allocation2 + $0x120] sm:$0xff] }
  0x92   : > { %v422_v49 = vadd.f32 %v3218_v27, %v383_v32  ;;  %v554_v62 = vmul.f32 %v3191_v23, %v2715_v18  ;;  %v1218_v59 = vld [vmem:[#allocation2 + $0x121] sm:$0xff]  ;;  %v1353_v0 = vmul.f32 %v2759_v52, %v3270_v9  ;;  %v453_v55 = vmax.f32 %v421_v45, 0.0 }
  0x93   : > { %1486 = vperm.xlu1 %2537, %v3265_v39   ;;  %v687_v38 = vadd.f32 %v655_v10, %v555_v29  ;;  %v654_v3 = vmul.f32 %v3198_v60, %v2719_v22  ;;  %v1154_v42 = vmul.f32 %v2747_v47, %v1118_v16  ;;  %v1254_v5 = vmul.f32 %v2756_v51, %v1218_v59  ;;  %v1318_v31 = vld [vmem:[#allocation2 + $0x122] sm:$0xff]  ;;  %v345_v10 = vld [vmem:[%s2688_s7 + $0xd0] sm:$0xff] }
  0x94   : > { %v1084_v4 = vadd.f32 %v1052_v25, %v984_v21  ;;  %v754_v23 = vmul.f32 %v3224_v2, %v2722_v24  ;;  %v454_v17 = vmax.f32 %v422_v49, 0.0  ;;  %486 = vst.msk [vmem:[#allocation2 + $0x139] sm:$0xff] %vm263_vm0, %v453_v55  ;;  %v855_v30 = vmul.f32 %v1118_v16, %v2735_v33  ;;  %v346_v49 = vld [vmem:[%s2688_s7 + $0xd8] sm:$0xff] }
  0x95   : > { %v787_v37 = vadd.f32 %v755_v35, %v687_v38  ;;  %v955_v36 = vmul.f32 %v1218_v59, %v2739_v40  ;;  %v1186_v32 = vadd.f32 %v1154_v42, %v1085_v43  ;;  %v1354_v60 = vmul.f32 %v2759_v52, %v1318_v31 }
  0x96   : > { %v1185_v29 = vadd.f32 %v1153_v34, %v1084_v4  ;;  %v686_v45 = vadd.f32 %v654_v3, %v554_v62  ;;  %487 = vst.msk [vmem:[#allocation2 + $0x141] sm:$0xff] %vm263_vm0, %v454_v17  ;;  %v1055_v2 = vmul.f32 %v1318_v31, %v2744_v46  ;;  %v854_v21 = vmul.f32 %v3248_v15, %v2735_v33  ;;  %v3298_v62 = vld [vmem:[#allocation2 + $0x128] sm:$0xff] }
  0x97   : > { %v887_v25 = vadd.f32 %v855_v30, %v787_v37  ;;  %v954_v35 = vmul.f32 %v3255_v26, %v2739_v40  ;;  %v1286_v55 = vadd.f32 %v1254_v5, %v1186_v32  ;;  %v1054_v34 = vmul.f32 %v3270_v9, %v2744_v46  ;;  %v3300_v3 = vld [vmem:[#allocation2 + $0x129] sm:$0xff] }
  0x98   : > { %v1285_v38 = vadd.f32 %v1253_v1, %v1185_v29  ;;  %v786_v43 = vadd.f32 %v754_v23, %v686_v45  ;;  %v1155_v4 = vmul.f32 %v2747_v47, %v3298_v62  ;;  %v1255_v17 = vmul.f32 %v2756_v51, %v3300_v3 }
  0x99   : > { %v987_v42 = vadd.f32 %v955_v36, %v887_v25  ;;  %v384_v37 = vmul.f32 %v3207_v6, %v345_v10  ;;  %v3307_v30 = vadd.f32 %v1354_v60, %v1286_v55  ;;  %v385_v23 = vmul.f32 %v3207_v6, %v346_v49  ;;  %v3321_v55 = vld [vmem:[#allocation2 + $0x12a] sm:$0xff] }
  0x9a   : > { %v3309_v1 = vadd.f32 %v1353_v0, %v1285_v38  ;;  %v886_v5 = vadd.f32 %v854_v21, %v786_v43  ;;  %v557_v36 = vmul.f32 %v1118_v16, %v2715_v18  ;;  %v657_v45 = vmul.f32 %v1218_v59, %v2719_v22 }
  0x9b   : > { %4287 = vst [vmem:[#allocation8_spill] sm:$0xff] %v3307_v30  ;;  %v1087_v32 = vadd.f32 %v1055_v2, %v987_v42  ;;  %v423_v29 = vadd.f32 %v3218_v27, %v384_v37  ;;  %1501 = vperm.xlu0 %2536, %v3307_v30   ;;  %v1120_v25 = vld [vmem:[#allocation2 + $0x138] sm:$0xff]  ;;  %v424_v0 = vadd.f32 %v3218_v27, %v385_v23 }
  0x9c   : > { %1496 = vperm.xlu1 %2537, %v3309_v1   ;;  %v1220_v10 = vld [vmem:[#allocation2 + $0x139] sm:$0xff]  ;;  %v986_v60 = vadd.f32 %v954_v35, %v886_v5  ;;  %v757_v21 = vmul.f32 %v1318_v31, %v2722_v24  ;;  %v1156_v49 = vmul.f32 %v2747_v47, %v1120_v25  ;;  %v689_v38 = vadd.f32 %v657_v45, %v557_v36 }
  0x9d   : > { %v1256_v2 = vmul.f32 %v2756_v51, %v1220_v10  ;;  %v455_v16 = vmax.f32 %v423_v29, 0.0  ;;  %v1320_v59 = vld [vmem:[#allocation2 + $0x13a] sm:$0xff]  ;;  %v1355_v42 = vmul.f32 %v2759_v52, %v3321_v55  ;;  %v456_v37 = vmax.f32 %v424_v0, 0.0 }
  0x9e   : > { %v1086_v43 = vadd.f32 %v1054_v34, %v986_v60  ;;  %v857_v35 = vmul.f32 %v1120_v25, %v2735_v33  ;;  %v1188_v5 = vadd.f32 %v1156_v49, %v1087_v32  ;;  %v1356_v31 = vmul.f32 %v2759_v52, %v1320_v59  ;;  %v347_v49 = vld [vmem:[%s2688_s7 + $0xe0] sm:$0xff] }
  0x9f   : > { %488 = vst.msk [vmem:[#allocation2 + $0x151] sm:$0xff] %vm263_vm0, %v455_v16  ;;  %v789_v23 = vadd.f32 %v757_v21, %v689_v38  ;;  %v957_v8 = vmul.f32 %v1220_v10, %v2739_v40  ;;  %489 = vst.msk [vmem:[#allocation2 + $0x159] sm:$0xff] %vm263_vm0, %v456_v37  ;;  %v556_v34 = vmul.f32 %v3248_v15, %v2715_v18  ;;  %v348_v21 = vld [vmem:[%s2688_s7 + $0xe8] sm:$0xff] }
  0xa0   : > { %v1187_v29 = vadd.f32 %v1155_v4, %v1086_v43  ;;  %v656_v36 = vmul.f32 %v3255_v26, %v2719_v22  ;;  %v756_v45 = vmul.f32 %v3270_v9, %v2722_v24  ;;  %v1288_v32 = vadd.f32 %v1256_v2, %v1188_v5  ;;  %v3343_v43 = vld [vmem:[#allocation2 + $0x140] sm:$0xff] }
  0xa1   : > { %v889_v60 = vadd.f32 %v857_v35, %v789_v23  ;;  %v1057_v0 = vmul.f32 %v1320_v59, %v2744_v46  ;;  %v856_v4 = vmul.f32 %v3298_v62, %v2735_v33  ;;  %v956_v15 = vmul.f32 %v3300_v3, %v2739_v40 }
  0xa2   : > { %v1287_v16 = vadd.f32 %v1255_v17, %v1187_v29  ;;  %v688_v38 = vadd.f32 %v656_v36, %v556_v34  ;;  %v3345_v26 = vadd.f32 %v1356_v31, %v1288_v32  ;;  %v1056_v9 = vmul.f32 %v3321_v55, %v2744_v46  ;;  %v3356_v34 = vld [vmem:[#allocation2 + $0x141] sm:$0xff] }
  0xa3   : > { %v989_v37 = vadd.f32 %v957_v8, %v889_v60  ;;  %v1157_v2 = vmul.f32 %v2747_v47, %v3343_v43  ;;  %v386_v5 = vmul.f32 %v3207_v6, %v347_v49  ;;  %v387_v23 = vmul.f32 %v3207_v6, %v348_v21 }
  0xa4   : > { %4288 = vst [vmem:[#allocation9_spill] sm:$0xff] %v3345_v26  ;;  %v3351_v35 = vadd.f32 %v1355_v42, %v1287_v16  ;;  %v788_v17 = vadd.f32 %v756_v45, %v688_v38  ;;  %1511 = vperm.xlu0 %2536, %v3345_v26   ;;  %v559_v8 = vmul.f32 %v1120_v25, %v2715_v18 }
  0xa5   : > { %v1089_v29 = vadd.f32 %v1057_v0, %v989_v37  ;;  %v659_v31 = vmul.f32 %v1220_v10, %v2719_v22  ;;  %v759_v36 = vmul.f32 %v1320_v59, %v2722_v24  ;;  %v1257_v60 = vmul.f32 %v2756_v51, %v3356_v34 }
  0xa6   : > { %1506 = vperm.xlu1 %2537, %v3351_v35   ;;  %v1122_v42 = vld [vmem:[#allocation2 + $0x150] sm:$0xff]  ;;  %v888_v45 = vadd.f32 %v856_v4, %v788_v17  ;;  %v425_v49 = vadd.f32 %v3218_v27, %v386_v5  ;;  %v426_v0 = vadd.f32 %v3218_v27, %v387_v23  ;;  %v558_v4 = vmul.f32 %v3298_v62, %v2715_v18  ;;  %v1321_v23 = vld [vmem:[#allocation2 + $0x142] sm:$0xff] }
  0xa7   : > { %v1222_v32 = vld [vmem:[#allocation2 + $0x151] sm:$0xff]  ;;  %v1158_v21 = vmul.f32 %v2747_v47, %v1122_v42  ;;  %v691_v16 = vadd.f32 %v659_v31, %v559_v8  ;;  %v859_v10 = vmul.f32 %v1122_v42, %v2735_v33  ;;  %v1357_v8 = vmul.f32 %v2759_v52, %v1321_v23 }
  0xa8   : > { %v1258_v25 = vmul.f32 %v2756_v51, %v1222_v32  ;;  %v1322_v59 = vld [vmem:[#allocation2 + $0x152] sm:$0xff]  ;;  %v988_v38 = vadd.f32 %v956_v15, %v888_v45  ;;  %v457_v37 = vmax.f32 %v425_v49, 0.0  ;;  %v458_v7 = vmax.f32 %v426_v0, 0.0 }
  0xa9   : > { %v1190_v17 = vadd.f32 %v1158_v21, %v1089_v29  ;;  %v1358_v5 = vmul.f32 %v2759_v52, %v1322_v59  ;;  %v791_v26 = vadd.f32 %v759_v36, %v691_v16  ;;  %v959_v30 = vmul.f32 %v1222_v32, %v2739_v40  ;;  %v349_v29 = vld [vmem:[%s2688_s7 + $0xf0] sm:$0xff]  ;;  %v350_v49 = vld [vmem:[%s2688_s7 + $0xf8] sm:$0xff] }
  0xaa   : > { %v1088_v14 = vadd.f32 %v1056_v9, %v988_v38  ;;  %490 = vst.msk [vmem:[#allocation2 + $0x169] sm:$0xff] %vm263_vm0, %v457_v37  ;;  %491 = vst.msk [vmem:[#allocation2 + $0x171] sm:$0xff] %vm263_vm0, %v458_v7  ;;  %v658_v15 = vmul.f32 %v3300_v3, %v2719_v22  ;;  %v758_v62 = vmul.f32 %v3321_v55, %v2722_v24  ;;  %v3388_v3 = vld [vmem:[#allocation2 + $0x158] sm:$0xff] }
  0xab   : > { %v1290_v31 = vadd.f32 %v1258_v25, %v1190_v17  ;;  %v891_v45 = vadd.f32 %v859_v10, %v791_v26  ;;  %v1059_v36 = vmul.f32 %v1322_v59, %v2744_v46  ;;  %v858_v9 = vmul.f32 %v3343_v43, %v2735_v33 }
  0xac   : > { %v1189_v0 = vadd.f32 %v1157_v2, %v1088_v14  ;;  %v690_v21 = vadd.f32 %v658_v15, %v558_v4  ;;  %v958_v7 = vmul.f32 %v3356_v34, %v2739_v40  ;;  %v1058_v16 = vmul.f32 %v1321_v23, %v2744_v46 }
  0xad   : > { %v3390_v38 = vadd.f32 %v1358_v5, %v1290_v31  ;;  %v991_v55 = vadd.f32 %v959_v30, %v891_v45  ;;  %v1159_v26 = vmul.f32 %v2747_v47, %v3388_v3  ;;  %v388_v25 = vmul.f32 %v3207_v6, %v349_v29  ;;  %v3403_v45 = vld [vmem:[#allocation2 + $0x159] sm:$0xff] }
  0xae   : > { %v1289_v10 = vadd.f32 %v1257_v60, %v1189_v0  ;;  %v790_v37 = vadd.f32 %v758_v62, %v690_v21  ;;  %v389_v14 = vmul.f32 %v3207_v6, %v350_v49  ;;  %v561_v2 = vmul.f32 %v1122_v42, %v2715_v18 }
  0xaf   : > { %4289 = vst [vmem:[#allocation10_spill] sm:$0xff] %v3390_v38  ;;  %1521 = vperm.xlu0 %2536, %v3390_v38   ;;  %v1091_v4 = vadd.f32 %v1059_v36, %v991_v55  ;;  %v427_v17 = vadd.f32 %v3218_v27, %v388_v25  ;;  %v661_v5 = vmul.f32 %v1222_v32, %v2719_v22 }
  0xb0   : > { %v761_v30 = vmul.f32 %v1322_v59, %v2722_v24  ;;  %v3401_v15 = vadd.f32 %v1357_v8, %v1289_v10  ;;  %v890_v31 = vadd.f32 %v858_v9, %v790_v37  ;;  %v428_v60 = vadd.f32 %v3218_v27, %v389_v14  ;;  %v1323_v14 = vld [vmem:[#allocation2 + $0x15a] sm:$0xff] }
  0xb1   : > { %v560_v6 = vmul.f32 %v3343_v43, %v2715_v18  ;;  %v1124_v42 = vld [vmem:[#allocation2 + $0x168] sm:$0xff]  ;;  %v1259_v29 = vmul.f32 %v2756_v51, %v3403_v45  ;;  %v459_v36 = vmax.f32 %v427_v17, 0.0  ;;  %v693_v49 = vadd.f32 %v661_v5, %v561_v2 }
  0xb2   : > { %v1224_v62 = vld [vmem:[#allocation2 + $0x169] sm:$0xff]  ;;  %v660_v32 = vmul.f32 %v3356_v34, %v2719_v22  ;;  %1516 = vperm.xlu1 %2537, %v3401_v15   ;;  %v1160_v59 = vmul.f32 %v2747_v47, %v1124_v42  ;;  %v990_v27 = vadd.f32 %v958_v7, %v890_v31  ;;  %v760_v9 = vmul.f32 %v1321_v23, %v2722_v24 }
  0xb3   : > { %v1260_v8 = vmul.f32 %v2756_v51, %v1224_v62  ;;  %v1324_v43 = vld [vmem:[#allocation2 + $0x16a] sm:$0xff]  ;;  %v460_v0 = vmax.f32 %v428_v60, 0.0  ;;  %492 = vst.msk [vmem:[#allocation2 + $0x181] sm:$0xff] %vm263_vm0, %v459_v36  ;;  %v793_v21 = vadd.f32 %v761_v30, %v693_v49  ;;  %v861_v55 = vmul.f32 %v1124_v42, %v2735_v33 }
  0xb4   : > { %v961_v25 = vmul.f32 %v1224_v62, %v2739_v40  ;;  %v1192_v10 = vadd.f32 %v1160_v59, %v1091_v4  ;;  %v1360_v34 = vmul.f32 %v2759_v52, %v1324_v43  ;;  %v1090_v37 = vadd.f32 %v1058_v16, %v990_v27  ;;  %v1125_v27 = vld [vmem:[#allocation2 + $0x170] sm:$0xff] }
  0xb5   : > { %v692_v2 = vadd.f32 %v660_v32, %v560_v6  ;;  %v1359_v17 = vmul.f32 %v2759_v52, %v1323_v14  ;;  %493 = vst.msk [vmem:[#allocation2 + $0x189] sm:$0xff] %vm263_vm0, %v460_v0  ;;  %v893_v23 = vadd.f32 %v861_v55, %v793_v21  ;;  %v1061_v7 = vmul.f32 %v1324_v43, %v2744_v46  ;;  %v1225_v0 = vld [vmem:[#allocation2 + $0x171] sm:$0xff] }
  0xb6   : > { %v860_v5 = vmul.f32 %v3388_v3, %v2735_v33  ;;  %v1292_v30 = vadd.f32 %v1260_v8, %v1192_v10  ;;  %v1191_v31 = vadd.f32 %v1159_v26, %v1090_v37  ;;  %v960_v4 = vmul.f32 %v3403_v45, %v2739_v40 }
  0xb7   : > { %v792_v60 = vadd.f32 %v760_v9, %v692_v2  ;;  %v993_v36 = vadd.f32 %v961_v25, %v893_v23  ;;  %v1060_v16 = vmul.f32 %v1323_v14, %v2744_v46  ;;  %v563_v6 = vmul.f32 %v1124_v42, %v2715_v18  ;;  %v1325_v9 = vld [vmem:[#allocation2 + $0x172] sm:$0xff] }
  0xb8   : > { %v3429_v49 = vadd.f32 %v1360_v34, %v1292_v30  ;;  %v1291_v32 = vadd.f32 %v1259_v29, %v1191_v31  ;;  %v663_v21 = vmul.f32 %v1224_v62, %v2719_v22  ;;  %v1161_v26 = vmul.f32 %v2747_v47, %v1125_v27  ;;  %v1128_v31 = vld [vmem:[#allocation2 + $0x198] sm:$0xff] }
  0xb9   : > { %v892_v59 = vadd.f32 %v860_v5, %v792_v60  ;;  %v1093_v55 = vadd.f32 %v1061_v7, %v993_v36  ;;  %v1261_v8 = vmul.f32 %v2756_v51, %v1225_v0  ;;  %v763_v25 = vmul.f32 %v1324_v43, %v2722_v24  ;;  %v1228_v60 = vld [vmem:[#allocation2 + $0x199] sm:$0xff] }
  0xba   : > { %4290 = vst [vmem:[#allocation11_spill] sm:$0xff] %v3429_v49  ;;  %1531 = vperm.xlu0 %2536, %v3429_v49   ;;  %v3436_v10 = vadd.f32 %v1359_v17, %v1291_v32  ;;  %v1126_v42 = vld [vmem:[#allocation2 + $0x180] sm:$0xff]  ;;  %v1361_v37 = vmul.f32 %v2759_v52, %v1325_v9  ;;  %v695_v2 = vadd.f32 %v663_v21, %v563_v6 }
  0xbb   : > { %v1226_v34 = vld [vmem:[#allocation2 + $0x181] sm:$0xff]  ;;  %v992_v29 = vadd.f32 %v960_v4, %v892_v59  ;;  %v1162_v62 = vmul.f32 %v2747_v47, %v1126_v42  ;;  %v863_v7 = vmul.f32 %v1126_v42, %v2735_v33  ;;  %v562_v4 = vmul.f32 %v3388_v3, %v2715_v18 }
  0xbc   : > { %4291 = vst [vmem:[#allocation12_spill] sm:$0xff] %v3436_v10  ;;  %v1262_v23 = vmul.f32 %v2756_v51, %v1226_v34  ;;  %v963_v5 = vmul.f32 %v1226_v34, %v2739_v40  ;;  %1526 = vperm.xlu1 %2537, %v3436_v10   ;;  %v1326_v43 = vld [vmem:[#allocation2 + $0x182] sm:$0xff]  ;;  %v795_v17 = vadd.f32 %v763_v25, %v695_v2 }
  0xbd   : > { %v1092_v30 = vadd.f32 %v1060_v16, %v992_v29  ;;  %v662_v36 = vmul.f32 %v3403_v45, %v2719_v22  ;;  %v1194_v6 = vadd.f32 %v1162_v62, %v1093_v55  ;;  %v1362_v32 = vmul.f32 %v2759_v52, %v1326_v43  ;;  %v1127_v62 = vld [vmem:[#allocation2 + $0x188] sm:$0xff] }
  0xbe   : > { %v1063_v59 = vmul.f32 %v1326_v43, %v2744_v46  ;;  %v762_v21 = vmul.f32 %v1323_v14, %v2722_v24  ;;  %v895_v34 = vadd.f32 %v863_v7, %v795_v17  ;;  %v862_v16 = vmul.f32 %v1125_v27, %v2735_v33  ;;  %v1328_v43 = vld [vmem:[#allocation2 + $0x19a] sm:$0xff] }
  0xbf   : > { %v1193_v42 = vadd.f32 %v1161_v26, %v1092_v30  ;;  %v694_v49 = vadd.f32 %v662_v36, %v562_v4  ;;  %v1294_v25 = vadd.f32 %v1262_v23, %v1194_v6  ;;  %v1164_v29 = vmul.f32 %v2747_v47, %v1128_v31  ;;  %v1227_v31 = vld [vmem:[#allocation2 + $0x189] sm:$0xff] }
  0xc0   : > { %v1264_v3 = vmul.f32 %v2756_v51, %v1228_v60  ;;  %v995_v38 = vadd.f32 %v963_v5, %v895_v34  ;;  %v962_v55 = vmul.f32 %v1225_v0, %v2739_v40  ;;  %v1062_v14 = vmul.f32 %v1325_v9, %v2744_v46 }
  0xc1   : > { %v1293_v2 = vadd.f32 %v1261_v8, %v1193_v42  ;;  %v794_v45 = vadd.f32 %v762_v21, %v694_v49  ;;  %v3455_v10 = vadd.f32 %v1362_v32, %v1294_v25  ;;  %v564_v26 = vmul.f32 %v1125_v27, %v2715_v18  ;;  %v1327_v27 = vld [vmem:[#allocation2 + $0x18a] sm:$0xff]  ;;  %v1229_v42 = vld [vmem:[#allocation2 + $0x1a1] sm:$0xff] }
  0xc2   : > { %v664_v7 = vmul.f32 %v1225_v0, %v2719_v22  ;;  %v1095_v30 = vadd.f32 %v1063_v59, %v995_v38  ;;  %v764_v8 = vmul.f32 %v1325_v9, %v2722_v24  ;;  %v864_v5 = vmul.f32 %v1127_v62, %v2735_v33  ;;  %v1129_v9 = vld [vmem:[#allocation2 + $0x1a0] sm:$0xff] }
  0xc3   : > { %v3460_v23 = vadd.f32 %v1361_v37, %v1293_v2  ;;  %v894_v17 = vadd.f32 %v862_v16, %v794_v45  ;;  %1541 = vperm.xlu0 %2536, %v3455_v10   ;;  %v1364_v4 = vmul.f32 %v2759_v52, %v1328_v43  ;;  %v1163_v22 = vmul.f32 %v2747_v47, %v1127_v62  ;;  %v1329_v25 = vld [vmem:[#allocation2 + $0x1a2] sm:$0xff] }
  0xc4   : > { %v696_v49 = vadd.f32 %v664_v7, %v564_v26  ;;  %v1196_v60 = vadd.f32 %v1164_v29, %v1095_v30  ;;  %v964_v38 = vmul.f32 %v1227_v31, %v2739_v40  ;;  %v1263_v24 = vmul.f32 %v2756_v51, %v1227_v31  ;;  %v4292_v26 = vld [vmem:[#allocation7_spill] sm:$0xff]  ;;  %v4293_v7 = vld [vmem:[#allocation12_spill] sm:$0xff] }
  0xc5   : > { %1536 = vperm.xlu1 %2537, %v3460_v23   ;;  %v994_v18 = vadd.f32 %v962_v55, %v894_v17  ;;  %v1064_v33 = vmul.f32 %v1327_v27, %v2744_v46  ;;  %v1363_v21 = vmul.f32 %v2759_v52, %v1327_v27  ;;  %v1165_v16 = vmul.f32 %v2747_v47, %v1129_v9  ;;  %v4294_v17 = vld [vmem:[#allocation8_spill] sm:$0xff] }
  0xc6   : > { %v796_v0 = vadd.f32 %v764_v8, %v696_v49  ;;  %v1296_v37 = vadd.f32 %v1264_v3, %v1196_v60  ;;  %v1265_v3 = vmul.f32 %v2756_v51, %v1229_v42  ;;  %v1365_v46 = vmul.f32 %v2759_v52, %v1329_v25  ;;  %v3499_v51 = vpop.permute.xlu0 %1401  ;;  %v3508_v43 = vpop.permute.xlu1 %1411  ;;  %v4295_v8 = vld [vmem:[#allocation9_spill] sm:$0xff]  ;;  %v4296_v60 = vld [vmem:[#allocation10_spill] sm:$0xff] }
  0xc7   : > { %v1094_v36 = vadd.f32 %v1062_v14, %v994_v18  ;;  %v2560_v55 = vmov 1   ;;  %v4297_v18 = vld [vmem:[#allocation11_spill] sm:$0xff]  ;;  %v4277_v27 = vmov 2  }
  0xc8   : > { %v896_v6 = vadd.f32 %v864_v5, %v796_v0  ;;  %v3471_v32 = vadd.f32 %v1364_v4, %v1296_v37 }
  0xc9   : > { %v1195_v59 = vadd.f32 %v1163_v22, %v1094_v36 }
  0xca   : > { %v996_v34 = vadd.f32 %v964_v38, %v896_v6  ;;  %1551 = vperm.xlu0 %2536, %v3471_v32   ;;  %v3504_v52 = vpop.permute.xlu0 %1406 }
  0xcb   : > { %v1295_v40 = vadd.f32 %v1263_v24, %v1195_v59 }
  0xcc   : > { %v1096_v29 = vadd.f32 %v1064_v33, %v996_v34 }
  0xcd   : > { %v3477_v2 = vadd.f32 %v1363_v21, %v1295_v40 }
  0xce   : > { %v1197_v45 = vadd.f32 %v1165_v16, %v1096_v29  ;;  %2538 = vset.pattern.permute.xlu0 %v2560_v55  ;;  %v3511_v14 = vpop.permute.xlu0 %1421 }
  0xcf   : > { %1546 = vperm.xlu1 %2537, %v3477_v2   ;;  %1628 = vperm.xlu0 %2538, %v2851_v12   ;;  %v3515_v30 = vpop.permute.xlu1 %1416 }
  0xd0   : > { %v1297_v62 = vadd.f32 %v1265_v3, %v1197_v45 }
  0xd2   : > { %v3482_v47 = vadd.f32 %v1365_v46, %v1297_v62 }
  0xd3   : > { %1640 = vperm.xlu0 %2538, %v2941_v13  }
  0xd4   : > { %1556 = vperm.xlu1 %2537, %v3482_v47   ;;  %v3518_v31 = vpop.permute.xlu0 %1431 }
  0xd7   : > { %1648 = vperm.xlu0 %2538, %v2984_v56  }
  0xd8   : > { %2539 = vset.pattern.permute.xlu1 %v2560_v55  ;;  %v3522_v49 = vpop.permute.xlu1 %1426  ;;  %v4279_v55 = vmov 3  }
  0xd9   : > { %1632 = vperm.xlu1 %2539, %v2861_v50  }
  0xdb   : > { %1656 = vperm.xlu0 %2538, %v3022_v20  }
  0xdd   : > { %1636 = vperm.xlu1 %2539, %v2882_v58   ;;  %v3525_v5 = vpop.permute.xlu0 %1441 }
  0xdf   : > { %1664 = vperm.xlu0 %2538, %v3072_v11   ;;  %v3529_v4 = vpop.permute.xlu1 %1436 }
  0xe1   : > { %1644 = vperm.xlu1 %2539, %v2905_v19  }
  0xe3   : > { %1672 = vperm.xlu0 %2538, %v3114_v53  }
  0xe5   : > { %1652 = vperm.xlu1 %2539, %v2969_v41  }
  0xe7   : > { %1680 = vperm.xlu0 %2538, %v3164_v61   ;;  %v3532_v22 = vpop.permute.xlu0 %1451 }
  0xe9   : > { %1660 = vperm.xlu1 %2539, %v3014_v63  }
  0xea   : > { %v3537_v0 = vpop.permute.xlu1 %1446 }
  0xeb   : > { %1688 = vperm.xlu0 %2538, %v3210_v48  }
  0xed   : > { %1668 = vperm.xlu1 %2539, %v3061_v57  }
  0xef   : > { %1696 = vperm.xlu0 %2538, %v3265_v39  }
  0xf1   : > { %1676 = vperm.xlu1 %2539, %v3106_v54   ;;  %v3539_v38 = vpop.permute.xlu0 %1461 }
  0xf3   : > { %1704 = vperm.xlu0 %2538, %v3309_v1  }
  0xf4   : > { %v3543_v37 = vpop.permute.xlu1 %1456 }
  0xf5   : > { %1684 = vperm.xlu1 %2539, %v3157_v44  }
  0xf7   : > { %1712 = vperm.xlu0 %2538, %v3351_v35  }
  0xf9   : > { %1692 = vperm.xlu1 %2539, %v3200_v28  }
  0xfb   : > { %1720 = vperm.xlu0 %2538, %v3401_v15  }
  0xfc   : > { %v3548_v36 = vpop.permute.xlu0 %1471 }
  0xfd   : > { %1700 = vperm.xlu1 %2539, %v4292_v26  }
  0xfe   : > { %v3552_v24 = vpop.permute.xlu1 %1466 }
  0xff   : > { %1728 = vperm.xlu0 %2538, %v4293_v7  }
 0x101   : > { %1708 = vperm.xlu1 %2539, %v4294_v17  }
 0x103   : > { %1736 = vperm.xlu0 %2538, %v3460_v23  }
 0x105   : > { %1716 = vperm.xlu1 %2539, %v4295_v8   ;;  %v3554_v9 = vpop.permute.xlu0 %1481 }
 0x107   : > { %1744 = vperm.xlu0 %2538, %v3477_v2   ;;  %v3558_v6 = vpop.permute.xlu1 %1476 }
 0x109   : > { %1724 = vperm.xlu1 %2539, %v4296_v60  }
 0x10b   : > { %1752 = vperm.xlu0 %2538, %v3482_v47  }
 0x10d   : > { %1732 = vperm.xlu1 %2539, %v4297_v18  }
 0x10f   : > { %2541 = vset.pattern.permute.xlu0 %v4277_v27  ;;  %v3562_v33 = vpop.permute.xlu0 %1491 }
 0x110   : > { %1828 = vperm.xlu0 %2541, %v2861_v50  }
 0x111   : > { %1740 = vperm.xlu1 %2539, %v3455_v10  }
 0x112   : > { %v3566_v59 = vpop.permute.xlu1 %1486 }
 0x114   : > { %1840 = vperm.xlu0 %2541, %v2905_v19  }
 0x115   : > { %1748 = vperm.xlu1 %2539, %v3471_v32  }
 0x118   : > { %1848 = vperm.xlu0 %2541, %v2969_v41  }
 0x119   : > { %2540 = vset.pattern.permute.xlu1 %v4277_v27 }
 0x11a   : > { %1824 = vperm.xlu1 %2540, %v2851_v12   ;;  %v3568_v21 = vpop.permute.xlu0 %1501 }
 0x11b   : > { %v3572_v42 = vpop.permute.xlu1 %1496 }
 0x11c   : > { %1856 = vperm.xlu0 %2541, %v3014_v63  }
 0x11e   : > { %1832 = vperm.xlu1 %2540, %v2882_v58  }
 0x120   : > { %1864 = vperm.xlu0 %2541, %v3061_v57  }
 0x122   : > { %1836 = vperm.xlu1 %2540, %v2941_v13  }
 0x123   : > { %v3576_v34 = vpop.permute.xlu0 %1511 }
 0x124   : > { %1872 = vperm.xlu0 %2541, %v3106_v54  }
 0x125   : > { %v3580_v16 = vpop.permute.xlu1 %1506 }
 0x126   : > { %1844 = vperm.xlu1 %2540, %v2984_v56  }
 0x128   : > { %1880 = vperm.xlu0 %2541, %v3157_v44  }
 0x12a   : > { %1852 = vperm.xlu1 %2540, %v3022_v20  }
 0x12c   : > { %1888 = vperm.xlu0 %2541, %v3200_v28  }
 0x12e   : > { %1860 = vperm.xlu1 %2540, %v3072_v11   ;;  %v3582_v40 = vpop.permute.xlu0 %1521 }
 0x130   : > { %1896 = vperm.xlu0 %2541, %v4292_v26  }
 0x131   : > { %v3586_v25 = vpop.permute.xlu1 %1516 }
 0x132   : > { %1868 = vperm.xlu1 %2540, %v3114_v53   ;;  %4298 = vst [vmem:[#allocation7_spill] sm:$0xff] %v3586_v25  ;;  %v4303_v25 = vmov 3  }
 0x134   : > { %1904 = vperm.xlu0 %2541, %v4294_v17  }
 0x136   : > { %1876 = vperm.xlu1 %2540, %v3164_v61  }
 0x138   : > { %1912 = vperm.xlu0 %2541, %v4295_v8  }
 0x139   : > { %v3590_v29 = vpop.permute.xlu0 %1531 }
 0x13a   : > { %1884 = vperm.xlu1 %2540, %v3210_v48  }
 0x13b   : > { %v3594_v3 = vpop.permute.xlu1 %1526 }
 0x13c   : > { %1920 = vperm.xlu0 %2541, %v4296_v60   ;;  %4299 = vst [vmem:[#allocation12_spill] sm:$0xff] %v3594_v3 }
 0x13e   : > { %1892 = vperm.xlu1 %2540, %v3265_v39  }
 0x140   : > { %1928 = vperm.xlu0 %2541, %v4297_v18  }
 0x142   : > { %1900 = vperm.xlu1 %2540, %v3309_v1   ;;  %v3596_v45 = vpop.permute.xlu0 %1541 }
 0x144   : > { %1936 = vperm.xlu0 %2541, %v3455_v10   ;;  %v3600_v46 = vpop.permute.xlu1 %1536 }
 0x145   : > { %4300 = vst [vmem:[#allocation8_spill] sm:$0xff] %v3600_v46 }
 0x146   : > { %1908 = vperm.xlu1 %2540, %v3351_v35  }
 0x148   : > { %2543 = vset.pattern.permute.xlu0 %v4279_v55 }
 0x149   : > { %v3604_v62 = vpop.permute.xlu0 %1551  ;;  %2020 = vperm.xlu0 %2543, %v2851_v12  }
 0x14a   : > { %1916 = vperm.xlu1 %2540, %v3401_v15  }
 0x14d   : > { %2032 = vperm.xlu0 %2543, %v2941_v13  }
 0x14e   : > { %1924 = vperm.xlu1 %2540, %v4293_v7   ;;  %v3608_v27 = vpop.permute.xlu1 %1546  ;;  %v3611_v3 = vpop.permute.xlu0 %1628 }
 0x14f   : > { %4301 = vst [vmem:[#allocation9_spill] sm:$0xff] %v3608_v27 }
 0x151   : > { %2040 = vperm.xlu0 %2543, %v2984_v56  }
 0x152   : > { %1932 = vperm.xlu1 %2540, %v3460_v23   ;;  %v3617_v55 = vpop.permute.xlu0 %1640 }
 0x153   : > { %v3615_v46 = vpop.permute.xlu1 %1556 }
 0x154   : > { %4302 = vst [vmem:[#allocation10_spill] sm:$0xff] %v3615_v46 }
 0x155   : > { %2048 = vperm.xlu0 %2543, %v3022_v20  }
 0x156   : > { %2542 = vset.pattern.permute.xlu1 %v4303_v25  ;;  %v3622_v12 = vpop.permute.xlu0 %1648 }
 0x157   : > { %2024 = vperm.xlu1 %2542, %v2861_v50  }
 0x158   : > { %v3624_v27 = vpop.permute.xlu1 %1632 }
 0x159   : > { %2056 = vperm.xlu0 %2543, %v3072_v11  }
 0x15a   : > { %v3628_v13 = vpop.permute.xlu0 %1656 }
 0x15b   : > { %2028 = vperm.xlu1 %2542, %v2882_v58  }
 0x15c   : > { %v3630_v56 = vpop.permute.xlu1 %1636 }
 0x15d   : > { %2064 = vperm.xlu0 %2543, %v3114_v53  }
 0x15e   : > { %v3634_v46 = vpop.permute.xlu0 %1664 }
 0x15f   : > { %2036 = vperm.xlu1 %2542, %v2905_v19  }
 0x160   : > { %v1645_v20 = vpop.permute.xlu1 %1644 }
 0x161   : > { %2072 = vperm.xlu0 %2543, %v3164_v61  }
 0x162   : > { %v3638_v50 = vpop.permute.xlu0 %1672 }
 0x163   : > { %2044 = vperm.xlu1 %2542, %v2969_v41   ;;  %4304 = vst [vmem:[#allocation11_spill] sm:$0xff] %v3638_v50 }
 0x164   : > { %v3640_v11 = vpop.permute.xlu1 %1652 }
 0x165   : > { %2080 = vperm.xlu0 %2543, %v3210_v48  }
 0x166   : > { %v3644_v58 = vpop.permute.xlu0 %1680 }
 0x167   : > { %2052 = vperm.xlu1 %2542, %v3014_v63   ;;  %4305 = vst [vmem:[#allocation13_spill] sm:$0xff] %v3644_v58 }
 0x168   : > { %v3646_v53 = vpop.permute.xlu1 %1660 }
 0x169   : > { %2088 = vperm.xlu0 %2543, %v3265_v39  }
 0x16a   : > { %v3650_v19 = vpop.permute.xlu0 %1688 }
 0x16b   : > { %2060 = vperm.xlu1 %2542, %v3061_v57   ;;  %4306 = vst [vmem:[#allocation14_spill] sm:$0xff] %v3650_v19 }
 0x16c   : > { %v3652_v61 = vpop.permute.xlu1 %1668 }
 0x16d   : > { %2096 = vperm.xlu0 %2543, %v3309_v1  }
 0x16e   : > { %v3656_v41 = vpop.permute.xlu0 %1696 }
 0x16f   : > { %2068 = vperm.xlu1 %2542, %v3106_v54   ;;  %4307 = vst [vmem:[#allocation15_spill] sm:$0xff] %v3656_v41 }
 0x170   : > { %v3658_v48 = vpop.permute.xlu1 %1676 }
 0x171   : > { %2104 = vperm.xlu0 %2543, %v3351_v35  }
 0x172   : > { %v3662_v63 = vpop.permute.xlu0 %1704 }
 0x173   : > { %2076 = vperm.xlu1 %2542, %v3157_v44   ;;  %4308 = vst [vmem:[#allocation16_spill] sm:$0xff] %v3662_v63 }
 0x174   : > { %v3664_v39 = vpop.permute.xlu1 %1684 }
 0x175   : > { %2112 = vperm.xlu0 %2543, %v3401_v15  }
 0x176   : > { %v3668_v57 = vpop.permute.xlu0 %1712 }
 0x177   : > { %2084 = vperm.xlu1 %2542, %v3200_v28   ;;  %4309 = vst [vmem:[#allocation17_spill] sm:$0xff] %v3668_v57  ;;  %v4312_v28 = vmov 2  }
 0x178   : > { %v3670_v1 = vpop.permute.xlu1 %1692 }
 0x179   : > { %2120 = vperm.xlu0 %2543, %v4293_v7  }
 0x17a   : > { %v3674_v54 = vpop.permute.xlu0 %1720 }
 0x17b   : > { %2092 = vperm.xlu1 %2542, %v4292_v26   ;;  %4310 = vst [vmem:[#allocation18_spill] sm:$0xff] %v3674_v54  ;;  %v3692_v26 = vld [vmem:[%s4256_s2] sm:$0xf] }
 0x17c   : > { %v3676_v35 = vpop.permute.xlu1 %1700  ;;  %v4315_v54 = vld [vmem:[#allocation5_spill] sm:$0xff] }
 0x17d   : > { %2132 = vperm.xlu0 %2543, %v3455_v10   ;;  %v3702_v57 = vrot.slane %v3692_v26, %v4315_v54 }
 0x17e   : > { %v3680_v44 = vpop.permute.xlu0 %1728 }
 0x17f   : > { %2100 = vperm.xlu1 %2542, %v4294_v17   ;;  %4311 = vst [vmem:[#allocation19_spill] sm:$0xff] %v3680_v44  ;;  %v4314_v17 = vld [vmem:[#allocation4_spill] sm:$0xff] }
 0x180   : > { %v3682_v15 = vpop.permute.xlu1 %1708  ;;  %v3698_v44 = vrot.slane %v3692_v26, %v4314_v17 }
 0x181   : > { %2546 = vset.pattern.permute.xlu0 %v4312_v28 }
 0x182   : > { %1948 = vperm.xlu0 %2546, %v3482_v47   ;;  %v3687_v7 = vpop.permute.xlu0 %1736  ;;  %v1587_v63 = vmul.f32 %v3698_v44, %v3582_v40 }
 0x183   : > { %2108 = vperm.xlu1 %2542, %v4295_v8   ;;  %4313 = vst [vmem:[#allocation20_spill] sm:$0xff] %v3687_v7 }
 0x184   : > { %v3694_v10 = vpop.permute.xlu1 %1716 }
 0x186   : > { %v3705_v8 = vpop.permute.xlu0 %1744  ;;  %2547 = vset.pattern.permute.xlu0 %v4303_v25 }
 0x187   : > { %2116 = vperm.xlu1 %2542, %v4296_v60   ;;  %4316 = vst [vmem:[#allocation4_spill] sm:$0xff] %v3705_v8  ;;  %v1589_v60 = vmul.f32 %v3698_v44, %v3590_v29 }
 0x188   : > { %v1725_v7 = vpop.permute.xlu1 %1724 }
 0x189   : > { %v1783_v41 = vmul.f32 %v3702_v57, %v1725_v7  ;;  %v1567_v7 = vmul.f32 %v3698_v44, %v3511_v14 }
 0x18a   : > { %v3714_v17 = vpop.permute.xlu0 %1752 }
 0x18b   : > { %v3711_v19 = vadd.f32 %v1783_v41, %v1587_v63  ;;  %2124 = vperm.xlu1 %2542, %v4297_v18   ;;  %4317 = vst [vmem:[#allocation5_spill] sm:$0xff] %v3714_v17  ;;  %v1591_v41 = vmul.f32 %v3698_v44, %v3596_v45  ;;  %v1763_v18 = vmul.f32 %v3702_v57, %v1645_v20 }
 0x18c   : > { %v1733_v54 = vpop.permute.xlu1 %1732 }
 0x18d   : > { %v1785_v8 = vmul.f32 %v3702_v57, %v1733_v54  ;;  %v1593_v54 = vmul.f32 %v3698_v44, %v3604_v62 }
 0x18f   : > { %v3719_v58 = vadd.f32 %v1785_v8, %v1589_v60  ;;  %2128 = vperm.xlu1 %2542, %v3460_v23   ;;  %v3722_v40 = vpop.permute.xlu0 %1828  ;;  %v4318_v8 = vld [vmem:[#allocation6_spill] sm:$0xff]  ;;  %v1795_v60 = vadd.f32 %v1763_v18, %v1567_v7  ;;  %v1767_v18 = vmul.f32 %v3702_v57, %v3646_v53 }
 0x190   : > { %v1741_v50 = vpop.permute.xlu1 %1740  ;;  %v3735_v23 = vrot.slane %v3692_v26, %v4318_v8 }
 0x191   : > { %v1787_v63 = vmul.f32 %v3702_v57, %v1741_v50  ;;  %v1765_v50 = vmul.f32 %v3702_v57, %v3640_v11 }
 0x193   : > { %v3730_v29 = vadd.f32 %v1787_v63, %v1591_v41  ;;  %2544 = vset.pattern.permute.xlu1 %v4312_v28  ;;  %v1841_v20 = vpop.permute.xlu0 %1840  ;;  %v1569_v28 = vmul.f32 %v3698_v44, %v3518_v31 }
 0x194   : > { %1940 = vperm.xlu1 %2544, %v3477_v2   ;;  %v1749_v45 = vpop.permute.xlu1 %1748  ;;  %v1959_v41 = vmul.f32 %v3735_v23, %v1841_v20 }
 0x195   : > { %v1789_v14 = vmul.f32 %v3702_v57, %v1749_v45  ;;  %v1797_v17 = vadd.f32 %v1765_v50, %v1569_v28  ;;  %v1571_v45 = vmul.f32 %v3698_v44, %v3525_v5 }
 0x196   : > { %v3748_v8 = vadd.f32 %v1959_v41, %v1795_v60  ;;  %v1769_v60 = vmul.f32 %v3702_v57, %v3652_v61  ;;  %v1575_v61 = vmul.f32 %v3698_v44, %v3539_v38 }
 0x197   : > { %v3746_v63 = vadd.f32 %v1789_v14, %v1593_v54  ;;  %v1849_v62 = vpop.permute.xlu0 %1848  ;;  %v1799_v54 = vadd.f32 %v1767_v18, %v1571_v45  ;;  %v1573_v14 = vmul.f32 %v3698_v44, %v3532_v22 }
 0x198   : > { %1944 = vperm.xlu1 %2544, %v3471_v32   ;;  %v1961_v11 = vmul.f32 %v3735_v23, %v1849_v62 }
 0x199   : > { %4319 = vst [vmem:[#allocation6_spill] sm:$0xff] %v3746_v63  ;;  %v3753_v7 = vpop.permute.xlu1 %1824 }
 0x19a   : > { %v3758_v20 = vadd.f32 %v1961_v11, %v1797_v17  ;;  %v1801_v17 = vadd.f32 %v1769_v60, %v1573_v14  ;;  %v1773_v11 = vmul.f32 %v3702_v57, %v3664_v39  ;;  %v1775_v60 = vmul.f32 %v3702_v57, %v3670_v1 }
 0x19b   : > { %v1857_v31 = vpop.permute.xlu0 %1856  ;;  %v1581_v1 = vmul.f32 %v3698_v44, %v3562_v33  ;;  %v1781_v33 = vmul.f32 %v3702_v57, %v3694_v10 }
 0x19c   : > { %2545 = vset.pattern.permute.xlu1 %v4303_v25  ;;  %v1963_v53 = vmul.f32 %v3735_v23, %v1857_v31  ;;  %v1771_v25 = vmul.f32 %v3702_v57, %v3658_v48  ;;  %v1577_v48 = vmul.f32 %v3698_v44, %v3548_v36  ;;  %v1777_v36 = vmul.f32 %v3702_v57, %v3676_v35 }
 0x19d   : > { %2136 = vperm.xlu1 %2545, %v3477_v2   ;;  %v3764_v50 = vpop.permute.xlu1 %1832  ;;  %v1583_v35 = vmul.f32 %v3698_v44, %v3568_v21 }
 0x19e   : > { %v3769_v41 = vadd.f32 %v1963_v53, %v1799_v54  ;;  %v1803_v22 = vadd.f32 %v1771_v25, %v1575_v61  ;;  %v1805_v38 = vadd.f32 %v1773_v11, %v1577_v48 }
 0x19f   : > { %v1865_v5 = vpop.permute.xlu0 %1864 }
 0x1a0   : > { %v1965_v2 = vmul.f32 %v3735_v23, %v1865_v5 }
 0x1a1   : > { %2140 = vperm.xlu1 %2545, %v3471_v32   ;;  %v3774_v28 = vpop.permute.xlu1 %1836 }
 0x1a2   : > { %v3779_v62 = vadd.f32 %v1965_v2, %v1801_v17 }
 0x1a3   : > { %v1873_v18 = vpop.permute.xlu0 %1872 }
 0x1a4   : > { %v1967_v32 = vmul.f32 %v3735_v23, %v1873_v18 }
 0x1a5   : > { %2144 = vperm.xlu1 %2545, %v3482_v47   ;;  %v3784_v45 = vpop.permute.xlu1 %1844  ;;  %v1579_v47 = vmul.f32 %v3698_v44, %v3554_v9  ;;  %v1779_v9 = vmul.f32 %v3702_v57, %v3682_v15  ;;  %v1585_v15 = vmul.f32 %v3698_v44, %v3576_v34 }
 0x1a6   : > { %v3789_v31 = vadd.f32 %v1967_v32, %v1803_v22  ;;  %v1809_v22 = vadd.f32 %v1777_v36, %v1581_v1 }
 0x1a7   : > { %v1881_v54 = vpop.permute.xlu0 %1880  ;;  %v1807_v17 = vadd.f32 %v1775_v60, %v1579_v47 }
 0x1a8   : > { %v1969_v39 = vmul.f32 %v3735_v23, %v1881_v54 }
 0x1a9   : > { %v3793_v53 = vpop.permute.xlu1 %1852 }
 0x1aa   : > { %v3798_v14 = vadd.f32 %v1969_v39, %v1805_v38  ;;  %v1811_v38 = vadd.f32 %v1779_v9, %v1583_v35  ;;  %v4320_v35 = vld [vmem:[#allocation3_spill] sm:$0xff] }
 0x1ab   : > { %v1889_v5 = vpop.permute.xlu0 %1888 }
 0x1ac   : > { %v1971_v2 = vmul.f32 %v3735_v23, %v1889_v5 }
 0x1ad   : > { %v3802_v25 = vpop.permute.xlu1 %1860 }
 0x1ae   : > { %v3807_v61 = vadd.f32 %v1971_v2, %v1807_v17  ;;  %v1813_v17 = vadd.f32 %v1781_v33, %v1585_v15  ;;  %v1759_v33 = vmul.f32 %v3702_v57, %v3611_v3 }
 0x1af   : > { %v1897_v18 = vpop.permute.xlu0 %1896 }
 0x1b0   : > { %v1973_v32 = vmul.f32 %v3735_v23, %v1897_v18 }
 0x1b1   : > { %v3811_v11 = vpop.permute.xlu1 %1868 }
 0x1b2   : > { %v3816_v48 = vadd.f32 %v1973_v32, %v1809_v22 }
 0x1b3   : > { %v1905_v54 = vpop.permute.xlu0 %1904 }
 0x1b4   : > { %v1975_v39 = vmul.f32 %v3735_v23, %v1905_v54  ;;  %v2149_v54 = vsub.s32 3, %v4320_v35 }
 0x1b5   : > { %v3820_v60 = vpop.permute.xlu1 %1876 }
 0x1b6   : > { %v3825_v47 = vadd.f32 %v1975_v39, %v1811_v38 }
 0x1b7   : > { %v1913_v5 = vpop.permute.xlu0 %1912 }
 0x1b8   : > { %v1977_v21 = vmul.f32 %v3735_v23, %v1913_v5  ;;  %v1955_v5 = vmul.f32 %v3735_v23, %v3753_v7 }
 0x1b9   : > { %v3827_v36 = vpop.permute.xlu1 %1884 }
 0x1ba   : > { %v3830_v2 = vadd.f32 %v1977_v21, %v1813_v17  ;;  %v3856_v17 = vrot.slane %v3692_v26, %v2149_v54  ;;  %v1764_v26 = vmul.f32 %v3702_v57, %v3622_v12  ;;  %v1568_v54 = vmul.f32 %v3698_v44, %v3522_v49 }
 0x1bb   : > { %v1921_v1 = vpop.permute.xlu0 %1920  ;;  %v1574_v49 = vmul.f32 %v3698_v44, %v3543_v37  ;;  %v1761_v37 = vmul.f32 %v3702_v57, %v3630_v56  ;;  %v4321_v56 = vld [vmem:[#allocation11_spill] sm:$0xff] }
 0x1bc   : > { %v1979_v10 = vmul.f32 %v3735_v23, %v1921_v1 }
 0x1bd   : > { %v3832_v18 = vpop.permute.xlu1 %1892 }
 0x1be   : > { %v3836_v22 = vadd.f32 %v1979_v10, %v3711_v19  ;;  %v1563_v19 = vmul.f32 %v3698_v44, %v3499_v51  ;;  %v1566_v10 = vmul.f32 %v3698_v44, %v3515_v30  ;;  %v1958_v51 = vmul.f32 %v3735_v23, %v3774_v28 }
 0x1bf   : > { %v1929_v9 = vpop.permute.xlu0 %1928  ;;  %v1564_v30 = vmul.f32 %v3698_v44, %v3504_v52  ;;  %v1570_v52 = vmul.f32 %v3698_v44, %v3529_v4  ;;  %v1580_v4 = vmul.f32 %v3698_v44, %v3566_v59  ;;  %v1768_v59 = vmul.f32 %v3702_v57, %v3634_v46 }
 0x1c0   : > { %v1981_v32 = vmul.f32 %v3735_v23, %v1929_v9  ;;  %v1791_v21 = vadd.f32 %v1759_v33, %v1563_v19  ;;  %v1960_v19 = vmul.f32 %v3735_v23, %v3784_v45  ;;  %v1576_v45 = vmul.f32 %v3698_v44, %v3552_v24 }
 0x1c1   : > { %v3838_v34 = vpop.permute.xlu1 %1900 }
 0x1c2   : > { %v3843_v38 = vadd.f32 %v1981_v32, %v3719_v58  ;;  %v1762_v58 = vmul.f32 %v3702_v57, %v3617_v55  ;;  %v1987_v9 = vadd.f32 %v1955_v5, %v1791_v21  ;;  %v1565_v5 = vmul.f32 %v3698_v44, %v3508_v43 }
 0x1c3   : > { %v3847_v39 = vpop.permute.xlu0 %1936  ;;  %v1572_v21 = vmul.f32 %v3698_v44, %v3537_v0  ;;  %v1578_v43 = vmul.f32 %v3698_v44, %v3558_v6  ;;  %v1760_v0 = vmul.f32 %v3702_v57, %v3624_v27  ;;  %v1584_v27 = vmul.f32 %v3698_v44, %v3580_v16  ;;  %v4324_v16 = vld [vmem:[#allocation12_spill] sm:$0xff] }
 0x1c4   : > { %v1794_v55 = vadd.f32 %v1762_v58, %v1566_v10  ;;  %v1796_v58 = vadd.f32 %v1764_v26, %v1568_v54  ;;  %v4322_v26 = vld [vmem:[#allocation7_spill] sm:$0xff]  ;;  %v4323_v54 = vld [vmem:[#allocation13_spill] sm:$0xff] }
 0x1c5   : > { %v3849_v15 = vpop.permute.xlu1 %1908  ;;  %v1792_v46 = vadd.f32 %v1760_v0, %v1564_v30 }
 0x1c6   : > { %v1990_v33 = vadd.f32 %v1958_v51, %v1794_v55  ;;  %v1992_v51 = vadd.f32 %v1960_v19, %v1796_v58  ;;  %v1770_v55 = vmul.f32 %v3702_v57, %v4321_v56  ;;  %v1793_v58 = vadd.f32 %v1761_v37, %v1565_v5 }
 0x1c8   : > { %v2021_v3 = vpop.permute.xlu0 %2020  ;;  %v1802_v30 = vadd.f32 %v1770_v55, %v1574_v49 }
 0x1c9   : > { %v3860_v1 = vpop.permute.xlu1 %1916  ;;  %v2151_v32 = vmul.f32 %v3856_v17, %v2021_v3  ;;  %v1766_v3 = vmul.f32 %v3702_v57, %v3628_v13  ;;  %v1582_v13 = vmul.f32 %v3698_v44, %v3572_v42  ;;  %v1956_v42 = vmul.f32 %v3735_v23, %v3722_v40 }
 0x1cb   : > { %v3876_v7 = vadd.f32 %v2151_v32, %v1987_v9  ;;  %v1962_v32 = vmul.f32 %v3735_v23, %v3793_v53  ;;  %v3932_v53 = vmul.f32 %v3698_v44, %v4322_v26  ;;  %v1957_v26 = vmul.f32 %v3735_v23, %v3764_v50 }
 0x1cc   : > { %v2033_v35 = vpop.permute.xlu0 %2032  ;;  %v1988_v5 = vadd.f32 %v1956_v42, %v1792_v46  ;;  %v1966_v42 = vmul.f32 %v3735_v23, %v3811_v11 }
 0x1cd   : > { %v3880_v28 = vpop.permute.xlu1 %1924  ;;  %2216 = vst.msk [vmem:[%s3872_s25] sm:$0xff] %vm2215_vm2, %v3876_v7  ;;  %v2154_v12 = vmul.f32 %v3856_v17, %v2033_v35  ;;  %v1798_v35 = vadd.f32 %v1766_v3, %v1570_v52  ;;  %v1964_v52 = vmul.f32 %v3735_v23, %v3802_v25  ;;  %v1989_v55 = vadd.f32 %v1957_v26, %v1793_v58 }
 0x1cf   : > { %v3902_v10 = vadd.f32 %v2154_v12, %v1990_v33  ;;  %v1772_v33 = vmul.f32 %v3702_v57, %v4323_v54  ;;  %v3940_v12 = vmul.f32 %v3698_v44, %v4324_v16  ;;  %v1994_v63 = vadd.f32 %v1962_v32, %v1798_v35  ;;  %v4326_v54 = vld [vmem:[#allocation15_spill] sm:$0xff]  ;;  %v4327_v32 = vld [vmem:[#allocation16_spill] sm:$0xff] }
 0x1d0   : > { %v2041_v24 = vpop.permute.xlu0 %2040  ;;  %v1776_v50 = vmul.f32 %v3702_v57, %v4326_v54  ;;  %v1778_v25 = vmul.f32 %v3702_v57, %v4327_v32  ;;  %v1998_v54 = vadd.f32 %v1966_v42, %v1802_v30 }
 0x1d1   : > { %v3912_v9 = vpop.permute.xlu1 %1932  ;;  %2219 = vst.msk [vmem:[%s3872_s25 + $0x18] sm:$0xff] %vm2215_vm2, %v3902_v10  ;;  %v2156_v6 = vmul.f32 %v3856_v17, %v2041_v24  ;;  %v4325_v24 = vld [vmem:[#allocation14_spill] sm:$0xff]  ;;  %v1804_v37 = vadd.f32 %v1772_v33, %v1576_v45 }
 0x1d2   : > { %v1774_v56 = vmul.f32 %v3702_v57, %v4325_v24  ;;  %v4328_v24 = vld [vmem:[#allocation17_spill] sm:$0xff]  ;;  %v3975_v26 = vadd.f32 %v1776_v50, %v1580_v4  ;;  %v3977_v11 = vadd.f32 %v1778_v25, %v1582_v13  ;;  %v2322_v4 = vmul.f32 %v3902_v10, %v3902_v10 }
 0x1d3   : > { %v3936_v19 = vadd.f32 %v2156_v6, %v1992_v51  ;;  %v1800_v6 = vadd.f32 %v1768_v59, %v1572_v21  ;;  %v2319_v21 = vmul.f32 %v3876_v7, %v3876_v7 }
 0x1d4   : > { %v2049_v40 = vpop.permute.xlu0 %2048  ;;  %v1806_v16 = vadd.f32 %v1774_v56, %v1578_v43  ;;  %v2248_v43 = vsel %vm2215_vm2, %v3876_v7, 0.0 }
 0x1d5   : > { %2221 = vst.msk [vmem:[%s3872_s25 + $0x28] sm:$0xff] %vm2215_vm2, %v3936_v19  ;;  %v2158_v51 = vmul.f32 %v3856_v17, %v2049_v40  ;;  %v1780_v40 = vmul.f32 %v3702_v57, %v4328_v24  ;;  %v1996_v45 = vadd.f32 %v1964_v52, %v1800_v6  ;;  %v2351_v7 = vsel %vm2215_vm2, %v2319_v21, 0.0  ;;  %v4329_v21 = vld [vmem:[#allocation18_spill] sm:$0xff] }
 0x1d6   : > { %v2025_v3 = vpop.permute.xlu1 %2024 }
 0x1d7   : > { %v2152_v0 = vmul.f32 %v3856_v17, %v2025_v3  ;;  %v3957_v35 = vadd.f32 %v2158_v51, %v1994_v63  ;;  %v1968_v51 = vmul.f32 %v3735_v23, %v3820_v60  ;;  %v3991_v25 = vadd.f32 %v1780_v40, %v1584_v27 }
 0x1d8   : > { %v2057_v59 = vpop.permute.xlu0 %2056  ;;  %v2253_v40 = vsel %vm2215_vm2, %v3902_v10, 0.0 }
 0x1d9   : > { %v2184_v49 = vadd.f32 %v2152_v0, %v1988_v5  ;;  %2223 = vst.msk [vmem:[%s3872_s25 + $0x38] sm:$0xff] %vm2215_vm2, %v3957_v35  ;;  %v2160_v63 = vmul.f32 %v3856_v17, %v2057_v59  ;;  %v1970_v59 = vmul.f32 %v3735_v23, %v3827_v36  ;;  %v2000_v27 = vadd.f32 %v1968_v51, %v1804_v37 }
 0x1da   : > { %v2029_v33 = vpop.permute.xlu1 %2028 }
 0x1db   : > { %2217 = vst.msk [vmem:[%s3872_s25 + $0x8] sm:$0xff] %vm2215_vm2, %v2184_v49  ;;  %v2249_v46 = vsel %vm2215_vm2, %v2184_v49, 0.0  ;;  %v2320_v56 = vmul.f32 %v2184_v49, %v2184_v49  ;;  %v2153_v58 = vmul.f32 %v3856_v17, %v2029_v33  ;;  %v3979_v3 = vadd.f32 %v2160_v63, %v1996_v45 }
 0x1dc   : > { %v2250_v52 = vadd.f32 %v2249_v46, %v2248_v43  ;;  %v2065_v0 = vpop.permute.xlu0 %2064  ;;  %v1782_v49 = vmul.f32 %v3702_v57, %v4329_v21  ;;  %v2356_v43 = vsel %vm2215_vm2, %v2322_v4, 0.0  ;;  %v2324_v46 = vmul.f32 %v3936_v19, %v3936_v19 }
 0x1dd   : > { %v2352_v6 = vsel %vm2215_vm2, %v2320_v56, 0.0  ;;  %v2185_v5 = vadd.f32 %v2153_v58, %v1989_v55  ;;  %2225 = vst.msk [vmem:[%s3872_s25 + $0x48] sm:$0xff] %vm2215_vm2, %v3979_v3  ;;  %v2162_v32 = vmul.f32 %v3856_v17, %v2065_v0  ;;  %v2002_v51 = vadd.f32 %v1970_v59, %v1806_v16 }
 0x1de   : > { %v2353_v50 = vadd.f32 %v2352_v6, %v2351_v7  ;;  %v2037_v13 = vpop.permute.xlu1 %2036  ;;  %v1972_v7 = vmul.f32 %v3735_v23, %v3832_v18  ;;  %v2257_v0 = vsel %vm2215_vm2, %v3936_v19, 0.0  ;;  %v1974_v16 = vmul.f32 %v3735_v23, %v3838_v34 }
 0x1df   : > { %2218 = vst.msk [vmem:[%s3872_s25 + $0x10] sm:$0xff] %vm2215_vm2, %v2185_v5  ;;  %v2251_v60 = vsel %vm2215_vm2, %v2185_v5, 0.0  ;;  %v2321_v24 = vmul.f32 %v2185_v5, %v2185_v5  ;;  %v2155_v30 = vmul.f32 %v3856_v17, %v2037_v13  ;;  %v4001_v45 = vadd.f32 %v2162_v32, %v1998_v54 }
 0x1e0   : > { %v2252_v55 = vadd.f32 %v2251_v60, %v2250_v52  ;;  %v2073_v63 = vpop.permute.xlu0 %2072  ;;  %v2326_v19 = vmul.f32 %v3957_v35, %v3957_v35 }
 0x1e1   : > { %v2354_v42 = vsel %vm2215_vm2, %v2321_v24, 0.0  ;;  %v2187_v33 = vadd.f32 %v2155_v30, %v3748_v8  ;;  %2227 = vst.msk [vmem:[%s3872_s25 + $0x58] sm:$0xff] %vm2215_vm2, %v4001_v45  ;;  %v2164_v8 = vmul.f32 %v3856_v17, %v2073_v63  ;;  %v2360_v30 = vsel %vm2215_vm2, %v2324_v46, 0.0 }
 0x1e2   : > { %v2355_v56 = vadd.f32 %v2354_v42, %v2353_v50  ;;  %v2254_v58 = vadd.f32 %v2253_v40, %v2252_v55  ;;  %v2045_v36 = vpop.permute.xlu1 %2044  ;;  %v1814_v40 = vadd.f32 %v1782_v49, %v3932_v53  ;;  %v4330_v42 = vld [vmem:[#allocation19_spill] sm:$0xff]  ;;  %v2261_v63 = vsel %vm2215_vm2, %v3957_v35, 0.0 }
 0x1e3   : > { %2220 = vst.msk [vmem:[%s3872_s25 + $0x20] sm:$0xff] %vm2215_vm2, %v2187_v33  ;;  %v2255_v10 = vsel %vm2215_vm2, %v2187_v33, 0.0  ;;  %v2323_v37 = vmul.f32 %v2187_v33, %v2187_v33  ;;  %v2157_v52 = vmul.f32 %v3856_v17, %v2045_v36  ;;  %v4024_v50 = vadd.f32 %v2164_v8, %v2000_v27 }
 0x1e4   : > { %v2357_v6 = vadd.f32 %v2356_v43, %v2355_v56  ;;  %v2256_v5 = vadd.f32 %v2255_v10, %v2254_v58  ;;  %v2081_v13 = vpop.permute.xlu0 %2080  ;;  %v1784_v33 = vmul.f32 %v3702_v57, %v4330_v42  ;;  %v2004_v56 = vadd.f32 %v1972_v7, %v3975_v26 }
 0x1e5   : > { %v2358_v54 = vsel %vm2215_vm2, %v2323_v37, 0.0  ;;  %v2189_v4 = vadd.f32 %v2157_v52, %v3758_v20  ;;  %v2166_v18 = vmul.f32 %v3856_v17, %v2081_v13  ;;  %2229 = vst.msk [vmem:[%s3872_s25 + $0x68] sm:$0xff] %vm2215_vm2, %v4024_v50  ;;  %v2006_v49 = vadd.f32 %v1974_v16, %v3977_v11 }
 0x1e6   : > { %v2359_v32 = vadd.f32 %v2358_v54, %v2357_v6  ;;  %v2258_v60 = vadd.f32 %v2257_v0, %v2256_v5  ;;  %v2053_v24 = vpop.permute.xlu1 %2052  ;;  %v2364_v37 = vsel %vm2215_vm2, %v2326_v19, 0.0  ;;  %v2328_v8 = vmul.f32 %v3979_v3, %v3979_v3 }
 0x1e7   : > { %2222 = vst.msk [vmem:[%s3872_s25 + $0x30] sm:$0xff] %vm2215_vm2, %v2189_v4  ;;  %v2259_v20 = vsel %vm2215_vm2, %v2189_v4, 0.0  ;;  %v2325_v21 = vmul.f32 %v2189_v4, %v2189_v4  ;;  %v2159_v55 = vmul.f32 %v3856_v17, %v2053_v24  ;;  %v4039_v27 = vadd.f32 %v2166_v18, %v2002_v51 }
 0x1e8   : > { %v2361_v34 = vadd.f32 %v2360_v30, %v2359_v32  ;;  %v2260_v59 = vadd.f32 %v2259_v20, %v2258_v60  ;;  %v2089_v46 = vpop.permute.xlu0 %2088  ;;  %v1976_v11 = vmul.f32 %v3735_v23, %v3849_v15  ;;  %v1978_v54 = vmul.f32 %v3735_v23, %v3860_v1 }
 0x1e9   : > { %v2362_v43 = vsel %vm2215_vm2, %v2325_v21, 0.0  ;;  %v2191_v10 = vadd.f32 %v2159_v55, %v3769_v41  ;;  %2231 = vst.msk [vmem:[%s3872_s25 + $0x78] sm:$0xff] %vm2215_vm2, %v4039_v27  ;;  %v2168_v35 = vmul.f32 %v3856_v17, %v2089_v46  ;;  %v2265_v4 = vsel %vm2215_vm2, %v3979_v3, 0.0 }
 0x1ea   : > { %v2363_v58 = vadd.f32 %v2362_v43, %v2361_v34  ;;  %v2262_v36 = vadd.f32 %v2261_v63, %v2260_v59  ;;  %v2061_v53 = vpop.permute.xlu1 %2060  ;;  %v2368_v1 = vsel %vm2215_vm2, %v2328_v8, 0.0  ;;  %v2330_v3 = vmul.f32 %v4001_v45, %v4001_v45 }
 0x1eb   : > { %v2161_v52 = vmul.f32 %v3856_v17, %v2061_v53  ;;  %2224 = vst.msk [vmem:[%s3872_s25 + $0x40] sm:$0xff] %vm2215_vm2, %v2191_v10  ;;  %v2263_v41 = vsel %vm2215_vm2, %v2191_v10, 0.0  ;;  %v2327_v51 = vmul.f32 %v2191_v10, %v2191_v10  ;;  %v4064_v5 = vadd.f32 %v2168_v35, %v2004_v56 }
 0x1ec   : > { %v2365_v26 = vadd.f32 %v2364_v37, %v2363_v58  ;;  %v2264_v7 = vadd.f32 %v2263_v41, %v2262_v36  ;;  %v2097_v0 = vpop.permute.xlu0 %2096  ;;  %v1816_v19 = vadd.f32 %v1784_v33, %v3940_v12  ;;  %v2008_v55 = vadd.f32 %v1976_v11, %v3991_v25 }
 0x1ed   : > { %v2193_v6 = vadd.f32 %v2161_v52, %v3779_v62  ;;  %v2366_v13 = vsel %vm2215_vm2, %v2327_v51, 0.0  ;;  %v2170_v32 = vmul.f32 %v3856_v17, %v2097_v0  ;;  %2233 = vst.msk [vmem:[%s3872_s25 + $0x88] sm:$0xff] %vm2215_vm2, %v4064_v5  ;;  %v2010_v42 = vadd.f32 %v1978_v54, %v1814_v40 }
 0x1ee   : > { %v2069_v16 = vpop.permute.xlu1 %2068  ;;  %v2367_v60 = vadd.f32 %v2366_v13, %v2365_v26  ;;  %v2266_v24 = vadd.f32 %v2265_v4, %v2264_v7  ;;  %v2269_v63 = vsel %vm2215_vm2, %v4001_v45, 0.0  ;;  %v2372_v36 = vsel %vm2215_vm2, %v2330_v3, 0.0 }
 0x1ef   : > { %2226 = vst.msk [vmem:[%s3872_s25 + $0x50] sm:$0xff] %vm2215_vm2, %v2193_v6  ;;  %v2267_v62 = vsel %vm2215_vm2, %v2193_v6, 0.0  ;;  %v2329_v15 = vmul.f32 %v2193_v6, %v2193_v6  ;;  %v2163_v18 = vmul.f32 %v3856_v17, %v2069_v16  ;;  %v4082_v30 = vadd.f32 %v2170_v32, %v2006_v49 }
 0x1f0   : > { %v2369_v20 = vadd.f32 %v2368_v1, %v2367_v60  ;;  %v2268_v21 = vadd.f32 %v2267_v62, %v2266_v24  ;;  %v2105_v59 = vpop.permute.xlu0 %2104  ;;  %v2332_v25 = vmul.f32 %v4024_v50, %v4024_v50  ;;  %v1980_v52 = vmul.f32 %v3735_v23, %v3880_v28 }
 0x1f1   : > { %v2370_v34 = vsel %vm2215_vm2, %v2329_v15, 0.0  ;;  %v2195_v43 = vadd.f32 %v2163_v18, %v3789_v31  ;;  %2235 = vst.msk [vmem:[%s3872_s25 + $0x98] sm:$0xff] %vm2215_vm2, %v4082_v30  ;;  %v2172_v58 = vmul.f32 %v3856_v17, %v2105_v59  ;;  %v2273_v35 = vsel %vm2215_vm2, %v4024_v50, 0.0 }
 0x1f2   : > { %v2077_v46 = vpop.permute.xlu1 %2076  ;;  %v2371_v56 = vadd.f32 %v2370_v34, %v2369_v20  ;;  %v2270_v12 = vadd.f32 %v2269_v63, %v2268_v21  ;;  %v2376_v28 = vsel %vm2215_vm2, %v2332_v25, 0.0  ;;  %v2334_v50 = vmul.f32 %v4039_v27, %v4039_v27 }
 0x1f3   : > { %v2165_v33 = vmul.f32 %v3856_v17, %v2077_v46  ;;  %2228 = vst.msk [vmem:[%s3872_s25 + $0x60] sm:$0xff] %vm2215_vm2, %v2195_v43  ;;  %v2271_v31 = vsel %vm2215_vm2, %v2195_v43, 0.0  ;;  %v2331_v45 = vmul.f32 %v2195_v43, %v2195_v43  ;;  %v4102_v49 = vadd.f32 %v2172_v58, %v2008_v55 }
 0x1f4   : > { %v2373_v40 = vadd.f32 %v2372_v36, %v2371_v56  ;;  %v2272_v10 = vadd.f32 %v2271_v31, %v2270_v12  ;;  %v2113_v37 = vpop.permute.xlu0 %2112  ;;  %v1983_v32 = vmul.f32 %v3735_v23, %v3847_v39  ;;  %v2012_v60 = vadd.f32 %v1980_v52, %v1816_v19 }
 0x1f5   : > { %v2197_v53 = vadd.f32 %v2165_v33, %v3798_v14  ;;  %v2374_v8 = vsel %vm2215_vm2, %v2331_v45, 0.0  ;;  %v2174_v41 = vmul.f32 %v3856_v17, %v2113_v37  ;;  %2237 = vst.msk [vmem:[%s3872_s25 + $0xa8] sm:$0xff] %vm2215_vm2, %v4102_v49  ;;  %v2277_v24 = vsel %vm2215_vm2, %v4039_v27, 0.0 }
 0x1f6   : > { %v2085_v26 = vpop.permute.xlu1 %2084  ;;  %v2375_v51 = vadd.f32 %v2374_v8, %v2373_v40  ;;  %v2274_v11 = vadd.f32 %v2273_v35, %v2272_v10  ;;  %v2380_v21 = vsel %vm2215_vm2, %v2334_v50, 0.0  ;;  %v2336_v39 = vmul.f32 %v4064_v5, %v4064_v5 }
 0x1f7   : > { %2230 = vst.msk [vmem:[%s3872_s25 + $0x70] sm:$0xff] %vm2215_vm2, %v2197_v53  ;;  %v2275_v14 = vsel %vm2215_vm2, %v2197_v53, 0.0  ;;  %v2333_v7 = vmul.f32 %v2197_v53, %v2197_v53  ;;  %v2167_v6 = vmul.f32 %v3856_v17, %v2085_v26  ;;  %v4120_v0 = vadd.f32 %v2174_v41, %v2010_v42 }
 0x1f8   : > { %v2377_v54 = vadd.f32 %v2376_v28, %v2375_v51  ;;  %v2276_v4 = vadd.f32 %v2275_v14, %v2274_v11  ;;  %v2121_v16 = vpop.permute.xlu0 %2120  ;;  %v2015_v63 = vadd.f32 %v1983_v32, %v3730_v29  ;;  %v2281_v43 = vsel %vm2215_vm2, %v4064_v5, 0.0 }
 0x1f9   : > { %v2378_v13 = vsel %vm2215_vm2, %v2333_v7, 0.0  ;;  %v2199_v62 = vadd.f32 %v2167_v6, %v3807_v61  ;;  %2239 = vst.msk [vmem:[%s3872_s25 + $0xb8] sm:$0xff] %vm2215_vm2, %v4120_v0  ;;  %v2176_v20 = vmul.f32 %v3856_v17, %v2121_v16  ;;  %v2384_v29 = vsel %vm2215_vm2, %v2336_v39, 0.0 }
 0x1fa   : > { %v2093_v15 = vpop.permute.xlu1 %2092  ;;  %v2379_v1 = vadd.f32 %v2378_v13, %v2377_v54  ;;  %v2278_v3 = vadd.f32 %v2277_v24, %v2276_v4  ;;  %v2338_v5 = vmul.f32 %v4082_v30, %v4082_v30  ;;  %v2285_v53 = vsel %vm2215_vm2, %v4082_v30, 0.0 }
 0x1fb   : > { %v2169_v18 = vmul.f32 %v3856_v17, %v2093_v15  ;;  %2232 = vst.msk [vmem:[%s3872_s25 + $0x80] sm:$0xff] %vm2215_vm2, %v2199_v62  ;;  %v2279_v61 = vsel %vm2215_vm2, %v2199_v62, 0.0  ;;  %v2335_v27 = vmul.f32 %v2199_v62, %v2199_v62  ;;  %v4140_v55 = vadd.f32 %v2176_v20, %v2012_v60  ;;  %v4331_v15 = vld [vmem:[#allocation8_spill] sm:$0xff] }
 0x1fc   : > { %v2381_v19 = vadd.f32 %v2380_v21, %v2379_v1  ;;  %v2280_v34 = vadd.f32 %v2279_v61, %v2278_v3  ;;  %v2133_v42 = vpop.permute.xlu0 %2132  ;;  %v2388_v41 = vsel %vm2215_vm2, %v2338_v5, 0.0  ;;  %v2340_v51 = vmul.f32 %v4102_v49, %v4102_v49  ;;  %v4332_v3 = vld [vmem:[#allocation20_spill] sm:$0xff] }
 0x1fd   : > { %v2201_v59 = vadd.f32 %v2169_v18, %v3816_v48  ;;  %v2382_v46 = vsel %vm2215_vm2, %v2335_v27, 0.0  ;;  %v2179_v12 = vmul.f32 %v3856_v17, %v2133_v42  ;;  %2241 = vst.msk [vmem:[%s3872_s25 + $0xc8] sm:$0xff] %vm2215_vm2, %v4140_v55  ;;  %v2289_v28 = vsel %vm2215_vm2, %v4102_v49, 0.0 }
 0x1fe   : > { %v2101_v56 = vpop.permute.xlu1 %2100  ;;  %v2383_v33 = vadd.f32 %v2382_v46, %v2381_v19  ;;  %v2282_v58 = vadd.f32 %v2281_v43, %v2280_v34  ;;  %v2392_v32 = vsel %vm2215_vm2, %v2340_v51, 0.0  ;;  %v2342_v60 = vmul.f32 %v4120_v0, %v4120_v0 }
 0x1ff   : > { %2234 = vst.msk [vmem:[%s3872_s25 + $0x90] sm:$0xff] %vm2215_vm2, %v2201_v59  ;;  %v2283_v48 = vsel %vm2215_vm2, %v2201_v59, 0.0  ;;  %v2337_v36 = vmul.f32 %v2201_v59, %v2201_v59  ;;  %v2171_v25 = vmul.f32 %v3856_v17, %v2101_v56  ;;  %v4157_v31 = vadd.f32 %v2179_v12, %v2015_v63 }
 0x200   : > { %v2385_v45 = vadd.f32 %v2384_v29, %v2383_v33  ;;  %v2284_v40 = vadd.f32 %v2283_v48, %v2282_v58  ;;  %v1590_v1 = vmul.f32 %v3698_v44, %v4331_v15  ;;  %v1786_v18 = vmul.f32 %v3702_v57, %v4332_v3  ;;  %v4336_v15 = vld [vmem:[#allocation10_spill] sm:$0xff] }
 0x201   : > { %v2386_v10 = vsel %vm2215_vm2, %v2337_v36, 0.0  ;;  %v2203_v37 = vadd.f32 %v2171_v25, %v3825_v47  ;;  %2244 = vst.msk [vmem:[%s3872_s25 + $0xe0] sm:$0xff] %vm2215_vm2, %v4157_v31  ;;  %v2293_v20 = vsel %vm2215_vm2, %v4120_v0, 0.0  ;;  %v1982_v61 = vmul.f32 %v3735_v23, %v3912_v9 }
 0x202   : > { %v2109_v52 = vpop.permute.xlu1 %2108  ;;  %v2387_v35 = vadd.f32 %v2386_v10, %v2385_v45  ;;  %v2286_v8 = vadd.f32 %v2285_v53, %v2284_v40  ;;  %v2396_v59 = vsel %vm2215_vm2, %v2342_v60, 0.0  ;;  %v2344_v42 = vmul.f32 %v4140_v55, %v4140_v55 }
 0x203   : > { %v2173_v26 = vmul.f32 %v3856_v17, %v2109_v52  ;;  %2236 = vst.msk [vmem:[%s3872_s25 + $0xa0] sm:$0xff] %vm2215_vm2, %v2203_v37  ;;  %v2287_v30 = vsel %vm2215_vm2, %v2203_v37, 0.0  ;;  %v2339_v11 = vmul.f32 %v2203_v37, %v2203_v37  ;;  %v1818_v9 = vadd.f32 %v1786_v18, %v1590_v1 }
 0x204   : > { %v2389_v47 = vadd.f32 %v2388_v41, %v2387_v35  ;;  %v2288_v14 = vadd.f32 %v2287_v30, %v2286_v8  ;;  %v2297_v56 = vsel %vm2215_vm2, %v4140_v55, 0.0  ;;  %v2400_v25 = vsel %vm2215_vm2, %v2344_v42, 0.0  ;;  %v4333_v30 = vld [vmem:[#allocation4_spill] sm:$0xff] }
 0x205   : > { %v2205_v7 = vadd.f32 %v2173_v26, %v3830_v2  ;;  %v2390_v50 = vsel %vm2215_vm2, %v2339_v11, 0.0  ;;  %v2014_v5 = vadd.f32 %v1982_v61, %v1818_v9  ;;  %v2347_v52 = vmul.f32 %v4157_v31, %v4157_v31 }
 0x206   : > { %v2117_v6 = vpop.permute.xlu1 %2116  ;;  %v2391_v54 = vadd.f32 %v2390_v50, %v2389_v47  ;;  %v2290_v4 = vadd.f32 %v2289_v28, %v2288_v14  ;;  %v2303_v41 = vsel %vm2215_vm2, %v4157_v31, 0.0  ;;  %v1788_v11 = vmul.f32 %v3702_v57, %v4333_v30  ;;  %v4334_v50 = vld [vmem:[#allocation9_spill] sm:$0xff]  ;;  %v1949_v31 = vpop.permute.xlu0 %1948 }
 0x207   : > { %2238 = vst.msk [vmem:[%s3872_s25 + $0xb0] sm:$0xff] %vm2215_vm2, %v2205_v7  ;;  %v2291_v13 = vsel %vm2215_vm2, %v2205_v7, 0.0  ;;  %v2341_v16 = vmul.f32 %v2205_v7, %v2205_v7  ;;  %v2175_v2 = vmul.f32 %v3856_v17, %v2117_v6  ;;  %v2406_v28 = vsel %vm2215_vm2, %v2347_v52, 0.0 }
 0x208   : > { %v2393_v24 = vadd.f32 %v2392_v32, %v2391_v54  ;;  %v2292_v49 = vadd.f32 %v2291_v13, %v2290_v4  ;;  %v1592_v6 = vmul.f32 %v3698_v44, %v4334_v50  ;;  %v1594_v1 = vmul.f32 %v3698_v44, %v4336_v15 }
 0x209   : > { %v2394_v62 = vsel %vm2215_vm2, %v2341_v16, 0.0  ;;  %v2207_v21 = vadd.f32 %v2175_v2, %v3836_v22  ;;  %v1986_v3 = vmul.f32 %v3735_v23, %v1949_v31 }
 0x20a   : > { %v2125_v39 = vpop.permute.xlu1 %2124  ;;  %v2395_v27 = vadd.f32 %v2394_v62, %v2393_v24  ;;  %v2294_v19 = vadd.f32 %v2293_v20, %v2292_v49  ;;  %v1820_v13 = vadd.f32 %v1788_v11, %v1592_v6  ;;  %v4335_v24 = vld [vmem:[#allocation5_spill] sm:$0xff]  ;;  %v4337_v20 = vld [vmem:[#allocation6_spill] sm:$0xff] }
 0x20b   : > { %v2177_v34 = vmul.f32 %v3856_v17, %v2125_v39  ;;  %2240 = vst.msk [vmem:[%s3872_s25 + $0xc0] sm:$0xff] %vm2215_vm2, %v2207_v21  ;;  %v2295_v0 = vsel %vm2215_vm2, %v2207_v21, 0.0  ;;  %v2343_v63 = vmul.f32 %v2207_v21, %v2207_v21  ;;  %v1790_v49 = vmul.f32 %v3702_v57, %v4335_v24 }
 0x20c   : > { %v2397_v22 = vadd.f32 %v2396_v59, %v2395_v27  ;;  %v2296_v43 = vadd.f32 %v2295_v0, %v2294_v19 }
 0x20d   : > { %v2209_v46 = vadd.f32 %v2177_v34, %v3843_v38  ;;  %v2398_v12 = vsel %vm2215_vm2, %v2343_v63, 0.0  ;;  %v1822_v57 = vadd.f32 %v1790_v49, %v1594_v1 }
 0x20e   : > { %v2129_v33 = vpop.permute.xlu1 %2128  ;;  %v2399_v58 = vadd.f32 %v2398_v12, %v2397_v22  ;;  %v2298_v48 = vadd.f32 %v2297_v56, %v2296_v43 }
 0x20f   : > { %2242 = vst.msk [vmem:[%s3872_s25 + $0xd0] sm:$0xff] %vm2215_vm2, %v2209_v46  ;;  %v2299_v36 = vsel %vm2215_vm2, %v2209_v46, 0.0  ;;  %v2345_v29 = vmul.f32 %v2209_v46, %v2209_v46  ;;  %v2178_v38 = vmul.f32 %v3856_v17, %v2129_v33  ;;  %v2018_v0 = vadd.f32 %v1986_v3, %v1822_v57 }
 0x210   : > { %v2401_v45 = vadd.f32 %v2400_v25, %v2399_v58  ;;  %v2300_v40 = vadd.f32 %v2299_v36, %v2298_v48 }
 0x211   : > { %v2402_v55 = vsel %vm2215_vm2, %v2345_v29, 0.0  ;;  %v2210_v10 = vadd.f32 %v2178_v38, %v2014_v5 }
 0x212   : > { %v2403_v53 = vadd.f32 %v2402_v55, %v2401_v45 }
 0x213   : > { %v1941_v37 = vpop.permute.xlu1 %1940  ;;  %2243 = vst.msk [vmem:[%s3872_s25 + $0xd8] sm:$0xff] %vm2215_vm2, %v2210_v10  ;;  %v2301_v35 = vsel %vm2215_vm2, %v2210_v10, 0.0  ;;  %v2346_v8 = vmul.f32 %v2210_v10, %v2210_v10 }
 0x214   : > { %v2302_v26 = vadd.f32 %v2301_v35, %v2300_v40  ;;  %v1984_v54 = vmul.f32 %v3735_v23, %v1941_v37 }
 0x215   : > { %v2404_v51 = vsel %vm2215_vm2, %v2346_v8, 0.0 }
 0x216   : > { %v2405_v47 = vadd.f32 %v2404_v51, %v2403_v53  ;;  %v2304_v7 = vadd.f32 %v2303_v41, %v2302_v26  ;;  %v2016_v32 = vadd.f32 %v1984_v54, %v1820_v13 }
 0x217   : > { %v1945_v14 = vpop.permute.xlu1 %1944 }
 0x218   : > { %v2407_v4 = vadd.f32 %v2406_v28, %v2405_v47  ;;  %v1985_v60 = vmul.f32 %v3735_v23, %v1945_v14 }
 0x21a   : > { %v2017_v21 = vadd.f32 %v1985_v60, %v4337_v20 }
 0x21c   : > { %v2137_v16 = vpop.permute.xlu1 %2136 }
 0x21d   : > { %v2180_v2 = vmul.f32 %v3856_v17, %v2137_v16 }
 0x21f   : > { %v2212_v62 = vadd.f32 %v2180_v2, %v2016_v32 }
 0x220   : > { %v2141_v18 = vpop.permute.xlu1 %2140 }
 0x221   : > { %2245 = vst.msk [vmem:[%s3872_s25 + $0xe8] sm:$0xff] %vm2215_vm2, %v2212_v62  ;;  %v2305_v39 = vsel %vm2215_vm2, %v2212_v62, 0.0  ;;  %v2348_v61 = vmul.f32 %v2212_v62, %v2212_v62  ;;  %v2181_v27 = vmul.f32 %v3856_v17, %v2141_v18 }
 0x222   : > { %v2306_v19 = vadd.f32 %v2305_v39, %v2304_v7 }
 0x223   : > { %v2408_v34 = vsel %vm2215_vm2, %v2348_v61, 0.0  ;;  %v2213_v59 = vadd.f32 %v2181_v27, %v2017_v21 }
 0x224   : > { %v2409_v42 = vadd.f32 %v2408_v34, %v2407_v4  ;;  %v2145_v44 = vpop.permute.xlu1 %2144 }
 0x225   : > { %2246 = vst.msk [vmem:[%s3872_s25 + $0xf0] sm:$0xff] %vm2215_vm2, %v2213_v59  ;;  %v2307_v23 = vsel %vm2215_vm2, %v2213_v59, 0.0  ;;  %v2349_v63 = vmul.f32 %v2213_v59, %v2213_v59  ;;  %v2182_v22 = vmul.f32 %v3856_v17, %v2145_v44 }
 0x226   : > { %v2308_v43 = vadd.f32 %v2307_v23, %v2306_v19 }
 0x227   : > { %v2410_v46 = vsel %vm2215_vm2, %v2349_v63, 0.0  ;;  %v2214_v9 = vadd.f32 %v2182_v22, %v2018_v0 }
 0x228   : > { %v2411_v56 = vadd.f32 %v2410_v46, %v2409_v42 }
 0x229   : > { %2247 = vst.msk [vmem:[%s3872_s25 + $0xf8] sm:$0xff] %vm2215_vm2, %v2214_v9  ;;  %v2309_v12 = vsel %vm2215_vm2, %v2214_v9, 0.0  ;;  %v2350_v33 = vmul.f32 %v2214_v9, %v2214_v9 }
 0x22a   : > { %v2310_v58 = vadd.f32 %v2309_v12, %v2308_v43 }
 0x22b   : > { %v2412_v48 = vsel %vm2215_vm2, %v2350_v33, 0.0 }
 0x22c   : > { %v2311_v36 = vrot.slane %v2310_v58, 4  ;;  %v2413_v29 = vadd.f32 %v2412_v48, %v2411_v56 }
 0x22e   : > { %v2312_v5 = vadd.f32 %v2311_v36, %v2310_v58  ;;  %v2414_v25 = vrot.slane %v2413_v29, 4 }
 0x230   : > { %v2313_v38 = vrot.slane %v2312_v5, 2  ;;  %v2415_v17 = vadd.f32 %v2414_v25, %v2413_v29 }
 0x232   : > { %v2314_v45 = vadd.f32 %v2313_v38, %v2312_v5  ;;  %v2416_v40 = vrot.slane %v2415_v17, 2 }
 0x234   : > { %v2315_v55 = vrot.slane %v2314_v45, 1  ;;  %v2417_v10 = vadd.f32 %v2416_v40, %v2415_v17 }
 0x236   : > { %v2316_v53 = vadd.f32 %v2315_v55, %v2314_v45  ;;  %v2418_v37 = vrot.slane %v2417_v10, 1 }
 0x238   : > { %2318 = vst.msk [vmem:[%s262_s28] sm:$0x1] %vm2317_vm3, %v2316_v53  ;;  %v2419_v52 = vadd.f32 %v2418_v37, %v2417_v10 }
 0x23a   : > { %2420 = vst.msk [vmem:[%s262_s28 + $0x1] sm:$0x1] %vm2317_vm3, %v2419_v52 }
 0x23b PF: > { %s17_s21 = sadd.s32 1, %s2556_s21  }
 0x23c   : > { %p14_p4 = scmp.ge.s32.totalorder %s17_s21, 4  }
 0x23e   :  { %16 = sbr.rel (!%p14_p4) target bundleno = 1 (0x1), region = 84 }

</bundles_post_ra>
